<compile_context>
chip_gen: v5e
topology: v5e:2x2
jax: 0.10.0
libtpu: 0.0.40
codegen_flags: <defaults>
</compile_context>

<pallas_src>
import functools

import jax
import jax.numpy as jnp
from jax.experimental import pallas as pl
from jax.experimental.pallas import tpu as pltpu


_LANE = 128
_SUBLANE = 8


def _round_up(v, m):
    return (v + m - 1) // m * m


def _tpu_hw():
    """Best-effort (vmem_capacity_bytes, num_tensorcores); conservative fallbacks."""
    vmem_cap = 64 * 1024 * 1024          # safe default = v7x per-TC VMEM
    num_tc = 1
    try:
        info = pltpu.get_tpu_info()
        cap = getattr(info, "vmem_capacity_bytes", None)
        if cap:
            vmem_cap = int(cap)
        for name in ("num_cores", "num_tensorcores", "core_count",
                     "tensorcores_per_chip"):
            val = getattr(info, name, None)
            if val:
                num_tc = max(num_tc, int(val))
                break
    except Exception:
        pass
    if num_tc == 1:
        try:
            if "v7" in jax.devices()[0].device_kind.lower():
                num_tc = 2
        except Exception:
            pass
    return vmem_cap, num_tc


def _cov_kernel(x_ref, o_ref, *, epsilon):
    # x_ref block: (D, N, G) — slab axis G on the 128-wide lane dimension.
    # o_ref block: (N, N, G) — lane-dense row stores and writeback DMA.
    n = x_ref.shape[1]
    x = x_ref[...].astype(jnp.float32)                      # (D, N, G)

    # mean over the slab's N axis (torch dim=2) and center; fold a symmetric
    # 1/sqrt(N) into the single centered operand so each product carries 1/N.
    mean = jnp.mean(x, axis=1, keepdims=True)               # (D, 1, G)
    xc = (x - mean) * jnp.float32(n ** -0.5)                 # (D, N, G)

    # Sublane-index column for the eps * I diagonal (2-D iota, lane-broadcast).
    ridx = jax.lax.broadcasted_iota(jnp.int32, (n, 1), 0)    # (N, 1)
    eps = jnp.float32(epsilon)
    zero = jnp.float32(0.0)

    # Row-by-row lane-dense outer product on the VPU:
    #   out[i, m, g] = sum_d xc[d, m, g] * xc[d, i, g]  (+ eps when m == i)
    # Every operand keeps G on lanes; the reduction is over the leading D axis.
    for i in range(n):                                       # N is small & static (16..32)
        col = xc[:, i:i + 1, :]                              # (D, 1, G) sublane slice
        row = jnp.sum(xc * col, axis=0)                      # (N, G)
        row = row + jnp.where(ridx == i, eps, zero)          # diagonal epsilon
        o_ref[i] = row.astype(o_ref.dtype)


def covariance(x, epsilon=0.001, append_mean=False):
    """Pallas implementation of Covariance.forward (append_mean=False)."""
    if append_mean:
        # TODO(synk): append_mean=True path not implemented (shape-valid only for N==1).
        raise NotImplementedError("append_mean=True is not supported")

    B, C, N, D = x.shape
    BC = B * C

    # Slab axis (B*C) goes last so it sits on the 128-wide lane axis.
    xT = jnp.transpose(x.reshape(BC, N, D), (2, 1, 0))       # (D, N, BC)

    vmem_cap, num_tc = _tpu_hw()
    vmem_limit = int(min(vmem_cap * 3 // 4, 112 * 1024 * 1024))
    sizing_budget = int(vmem_cap * 0.45)

    # Honest per-G VMEM cost: double-buffered in/out pipeline blocks at the I/O
    # dtype + in-kernel f32 copies (x, xc, one product temp) + compiler headroom.
    isz = x.dtype.itemsize
    in_per_g = D * _round_up(N, _SUBLANE)
    out_per_g = N * _round_up(N, _SUBLANE)
    per_g = (2 * (in_per_g + out_per_g) * isz
             + 3 * in_per_g * 4
             + out_per_g * 4)
    g_cap = max(_LANE, (sizing_budget // per_g) // _LANE * _LANE)

    steps = pl.cdiv(BC, g_cap)
    if num_tc >= 2 and steps > 1 and steps % 2:
        steps += 1                        # even split across the two TensorCores
    if steps == 1:
        G = BC                            # single block: lane dim == full array dim
    else:
        G = _round_up(pl.cdiv(BC, steps), _LANE)
        steps = pl.cdiv(BC, G)
        if num_tc >= 2 and steps > 1 and steps % 2:
            steps += 1
    BC_pad = steps * G

    if BC_pad != BC:
        # Zero-pad: padded slabs just produce eps*I and are sliced off below.
        xT = jnp.pad(xT, ((0, 0), (0, 0), (0, BC_pad - BC)))

    kernel = functools.partial(_cov_kernel, epsilon=epsilon)

    out = pl.pallas_call(
        kernel,
        out_shape=jax.ShapeDtypeStruct((N, N, BC_pad), x.dtype),
        grid_spec=pltpu.PrefetchScalarGridSpec(
            num_scalar_prefetch=0,
            grid=(steps,),
            in_specs=[pl.BlockSpec((D, N, G), lambda i: (0, 0, i))],
            out_specs=pl.BlockSpec((N, N, G), lambda i: (0, 0, i)),
        ),
        compiler_params=pltpu.CompilerParams(
            dimension_semantics=("parallel",),
            vmem_limit_bytes=vmem_limit,
        ),
    )(xT)

    out = jnp.transpose(out, (2, 0, 1))                      # (BC_pad, N, N)
    if BC_pad != BC:
        out = out[:BC]
    return out.reshape(B, C, N, N)


def _covariance_ref(x, epsilon=0.001):
    """Pure-JAX reference mirroring the PyTorch forward exactly."""
    N = x.shape[2]
    mean = jnp.mean(x, axis=2, keepdims=True)
    xc = x - mean
    out = jnp.matmul(xc, jnp.swapaxes(xc, 2, 3)) / N
    eye = jnp.eye(out.shape[2], dtype=out.dtype)
    return out + eye * epsilon


if __name__ == "__main__":
    key = jax.random.PRNGKey(0)
    k1, k2 = jax.random.split(key)

    # Test 1: square slabs (benchmark shape).
    B, C, N, D = 2, 4, 16, 16
    x1 = jax.random.normal(k1, (B, C, N, D), dtype=jnp.float32)
    out1 = jax.block_until_ready(covariance(x1, epsilon=0.001))
    ref1 = _covariance_ref(x1, epsilon=0.001)
    assert out1.shape == (B, C, N, N)
    assert jnp.allclose(out1, ref1, atol=1e-5, rtol=1e-5), "mismatch vs reference (test 1)"

    # Test 2: non-square N/D and ragged B*C.
    B2, C2, N2, D2 = 1, 7, 32, 8
    x2 = jax.random.normal(k2, (B2, C2, N2, D2), dtype=jnp.float32)
    out2 = jax.block_until_ready(covariance(x2, epsilon=0.001))
    ref2 = _covariance_ref(x2, epsilon=0.001)
    assert out2.shape == (B2, C2, N2, N2)
    assert jnp.allclose(out2, ref2, atol=1e-5, rtol=1e-5), "mismatch vs reference (test 2)"

    print("KERNEL_OK")
</pallas_src>

<mosaic_0001>
module attributes {stable_mosaic.version = 11 : i64} {
  func.func @_cov_kernel(%arg0: i32, %arg1: memref<16x16x8xf32, #tpu.memory_space<vmem>>, %arg2: memref<16x16x8xf32, #tpu.memory_space<vmem>>) attributes {dimension_semantics = [#tpu.dimension_semantics<parallel>], iteration_bounds = array<i64: 1>, scalar_prefetch = 0 : i64, scratch_operands = 0 : i64, tpu.core_type = #tpu.core_type<tc>, window_params = [{transform_indices = @transform_0, window_bounds = array<i64: 16, 16, 8>}, {transform_indices = @transform_1, window_bounds = array<i64: 16, 16, 8>}]} {
    %c0 = arith.constant 0 : index
    %c0_0 = arith.constant 0 : index
    %c0_1 = arith.constant 0 : index
    %0 = vector.load %arg1[%c0, %c0_0, %c0_1] : memref<16x16x8xf32, #tpu.memory_space<vmem>>, vector<16x16x8xf32>
    %cst = arith.constant dense<0.000000e+00> : vector<16x8xf32>
    %1 = vector.multi_reduction <add>, %0, %cst [1] : vector<16x16x8xf32> to vector<16x8xf32>
    %2 = vector.shape_cast %1 : vector<16x8xf32> to vector<16x1x8xf32>
    %cst_2 = arith.constant 1.600000e+01 : f32
    %3 = vector.broadcast %cst_2 : f32 to vector<16x1x8xf32>
    %4 = arith.divf %2, %3 : vector<16x1x8xf32>
    %5 = vector.broadcast %4 : vector<16x1x8xf32> to vector<16x16x8xf32>
    %6 = arith.subf %0, %5 : vector<16x16x8xf32>
    %cst_3 = arith.constant 2.500000e-01 : f32
    %7 = vector.broadcast %cst_3 : f32 to vector<16x16x8xf32>
    %8 = arith.mulf %6, %7 : vector<16x16x8xf32>
    %9 = tpu.iota {dimensions = array<i32: 0>} : vector<16x1xi32>
    %10 = vector.extract_strided_slice %8 {offsets = [0, 0, 0], sizes = [16, 1, 8], strides = [1, 1, 1]} : vector<16x16x8xf32> to vector<16x1x8xf32>
    %11 = vector.broadcast %10 : vector<16x1x8xf32> to vector<16x16x8xf32>
    %12 = arith.mulf %8, %11 : vector<16x16x8xf32>
    %cst_4 = arith.constant dense<0.000000e+00> : vector<16x8xf32>
    %13 = vector.multi_reduction <add>, %12, %cst_4 [0] : vector<16x16x8xf32> to vector<16x8xf32>
    %c0_i32 = arith.constant 0 : i32
    %14 = vector.broadcast %c0_i32 : i32 to vector<16x1xi32>
    %15 = arith.cmpi eq, %9, %14 : vector<16x1xi32>
    %cst_5 = arith.constant 1.000000e-03 : f32
    %cst_6 = arith.constant 0.000000e+00 : f32
    %16 = vector.broadcast %cst_5 : f32 to vector<16x1xf32>
    %17 = vector.broadcast %cst_6 : f32 to vector<16x1xf32>
    %18 = arith.select %15, %16, %17 : vector<16x1xi1>, vector<16x1xf32>
    %19 = vector.broadcast %18 : vector<16x1xf32> to vector<16x8xf32>
    %20 = arith.addf %13, %19 : vector<16x8xf32>
    %c0_7 = arith.constant 0 : index
    %c0_8 = arith.constant 0 : index
    %c0_9 = arith.constant 0 : index
    %21 = vector.load %arg2[%c0_7, %c0_8, %c0_9] : memref<16x16x8xf32, #tpu.memory_space<vmem>>, vector<1x16x8xf32>
    %22 = vector.shape_cast %21 : vector<1x16x8xf32> to vector<16x8xf32>
    %23 = vector.shape_cast %20 : vector<16x8xf32> to vector<1x16x8xf32>
    tpu.vector_store %arg2[%c0_7, %c0_8, %c0_9], %23 {strides = array<i32>} : memref<16x16x8xf32, #tpu.memory_space<vmem>>, vector<1x16x8xf32>,
    %24 = vector.extract_strided_slice %8 {offsets = [0, 1, 0], sizes = [16, 1, 8], strides = [1, 1, 1]} : vector<16x16x8xf32> to vector<16x1x8xf32>
    %25 = vector.broadcast %24 : vector<16x1x8xf32> to vector<16x16x8xf32>
    %26 = arith.mulf %8, %25 : vector<16x16x8xf32>
    %cst_10 = arith.constant dense<0.000000e+00> : vector<16x8xf32>
    %27 = vector.multi_reduction <add>, %26, %cst_10 [0] : vector<16x16x8xf32> to vector<16x8xf32>
    %c1_i32 = arith.constant 1 : i32
    %28 = vector.broadcast %c1_i32 : i32 to vector<16x1xi32>
    %29 = arith.cmpi eq, %9, %28 : vector<16x1xi32>
    %cst_11 = arith.constant 1.000000e-03 : f32
    %cst_12 = arith.constant 0.000000e+00 : f32
    %30 = vector.broadcast %cst_11 : f32 to vector<16x1xf32>
    %31 = vector.broadcast %cst_12 : f32 to vector<16x1xf32>
    %32 = arith.select %29, %30, %31 : vector<16x1xi1>, vector<16x1xf32>
    %33 = vector.broadcast %32 : vector<16x1xf32> to vector<16x8xf32>
    %34 = arith.addf %27, %33 : vector<16x8xf32>
    %c1 = arith.constant 1 : index
    %c0_13 = arith.constant 0 : index
    %c0_14 = arith.constant 0 : index
    %35 = vector.load %arg2[%c1, %c0_13, %c0_14] : memref<16x16x8xf32, #tpu.memory_space<vmem>>, vector<1x16x8xf32>
    %36 = vector.shape_cast %35 : vector<1x16x8xf32> to vector<16x8xf32>
    %37 = vector.shape_cast %34 : vector<16x8xf32> to vector<1x16x8xf32>
    tpu.vector_store %arg2[%c1, %c0_13, %c0_14], %37 {strides = array<i32>} : memref<16x16x8xf32, #tpu.memory_space<vmem>>, vector<1x16x8xf32>,
    %38 = vector.extract_strided_slice %8 {offsets = [0, 2, 0], sizes = [16, 1, 8], strides = [1, 1, 1]} : vector<16x16x8xf32> to vector<16x1x8xf32>
    %39 = vector.broadcast %38 : vector<16x1x8xf32> to vector<16x16x8xf32>
    %40 = arith.mulf %8, %39 : vector<16x16x8xf32>
    %cst_15 = arith.constant dense<0.000000e+00> : vector<16x8xf32>
    %41 = vector.multi_reduction <add>, %40, %cst_15 [0] : vector<16x16x8xf32> to vector<16x8xf32>
    %c2_i32 = arith.constant 2 : i32
    %42 = vector.broadcast %c2_i32 : i32 to vector<16x1xi32>
    %43 = arith.cmpi eq, %9, %42 : vector<16x1xi32>
    %cst_16 = arith.constant 1.000000e-03 : f32
    %cst_17 = arith.constant 0.000000e+00 : f32
    %44 = vector.broadcast %cst_16 : f32 to vector<16x1xf32>
    %45 = vector.broadcast %cst_17 : f32 to vector<16x1xf32>
    %46 = arith.select %43, %44, %45 : vector<16x1xi1>, vector<16x1xf32>
    %47 = vector.broadcast %46 : vector<16x1xf32> to vector<16x8xf32>
    %48 = arith.addf %41, %47 : vector<16x8xf32>
    %c2 = arith.constant 2 : index
    %c0_18 = arith.constant 0 : index
    %c0_19 = arith.constant 0 : index
    %49 = vector.load %arg2[%c2, %c0_18, %c0_19] : memref<16x16x8xf32, #tpu.memory_space<vmem>>, vector<1x16x8xf32>
    %50 = vector.shape_cast %49 : vector<1x16x8xf32> to vector<16x8xf32>
    %51 = vector.shape_cast %48 : vector<16x8xf32> to vector<1x16x8xf32>
    tpu.vector_store %arg2[%c2, %c0_18, %c0_19], %51 {strides = array<i32>} : memref<16x16x8xf32, #tpu.memory_space<vmem>>, vector<1x16x8xf32>,
    %52 = vector.extract_strided_slice %8 {offsets = [0, 3, 0], sizes = [16, 1, 8], strides = [1, 1, 1]} : vector<16x16x8xf32> to vector<16x1x8xf32>
    %53 = vector.broadcast %52 : vector<16x1x8xf32> to vector<16x16x8xf32>
    %54 = arith.mulf %8, %53 : vector<16x16x8xf32>
    %cst_20 = arith.constant dense<0.000000e+00> : vector<16x8xf32>
    %55 = vector.multi_reduction <add>, %54, %cst_20 [0] : vector<16x16x8xf32> to vector<16x8xf32>
    %c3_i32 = arith.constant 3 : i32
    %56 = vector.broadcast %c3_i32 : i32 to vector<16x1xi32>
    %57 = arith.cmpi eq, %9, %56 : vector<16x1xi32>
    %cst_21 = arith.constant 1.000000e-03 : f32
    %cst_22 = arith.constant 0.000000e+00 : f32
    %58 = vector.broadcast %cst_21 : f32 to vector<16x1xf32>
    %59 = vector.broadcast %cst_22 : f32 to vector<16x1xf32>
    %60 = arith.select %57, %58, %59 : vector<16x1xi1>, vector<16x1xf32>
    %61 = vector.broadcast %60 : vector<16x1xf32> to vector<16x8xf32>
    %62 = arith.addf %55, %61 : vector<16x8xf32>
    %c3 = arith.constant 3 : index
    %c0_23 = arith.constant 0 : index
    %c0_24 = arith.constant 0 : index
    %63 = vector.load %arg2[%c3, %c0_23, %c0_24] : memref<16x16x8xf32, #tpu.memory_space<vmem>>, vector<1x16x8xf32>
    %64 = vector.shape_cast %63 : vector<1x16x8xf32> to vector<16x8xf32>
    %65 = vector.shape_cast %62 : vector<16x8xf32> to vector<1x16x8xf32>
    tpu.vector_store %arg2[%c3, %c0_23, %c0_24], %65 {strides = array<i32>} : memref<16x16x8xf32, #tpu.memory_space<vmem>>, vector<1x16x8xf32>,
    %66 = vector.extract_strided_slice %8 {offsets = [0, 4, 0], sizes = [16, 1, 8], strides = [1, 1, 1]} : vector<16x16x8xf32> to vector<16x1x8xf32>
    %67 = vector.broadcast %66 : vector<16x1x8xf32> to vector<16x16x8xf32>
    %68 = arith.mulf %8, %67 : vector<16x16x8xf32>
    %cst_25 = arith.constant dense<0.000000e+00> : vector<16x8xf32>
    %69 = vector.multi_reduction <add>, %68, %cst_25 [0] : vector<16x16x8xf32> to vector<16x8xf32>
    %c4_i32 = arith.constant 4 : i32
    %70 = vector.broadcast %c4_i32 : i32 to vector<16x1xi32>
    %71 = arith.cmpi eq, %9, %70 : vector<16x1xi32>
    %cst_26 = arith.constant 1.000000e-03 : f32
    %cst_27 = arith.constant 0.000000e+00 : f32
    %72 = vector.broadcast %cst_26 : f32 to vector<16x1xf32>
    %73 = vector.broadcast %cst_27 : f32 to vector<16x1xf32>
    %74 = arith.select %71, %72, %73 : vector<16x1xi1>, vector<16x1xf32>
    %75 = vector.broadcast %74 : vector<16x1xf32> to vector<16x8xf32>
    %76 = arith.addf %69, %75 : vector<16x8xf32>
    %c4 = arith.constant 4 : index
    %c0_28 = arith.constant 0 : index
    %c0_29 = arith.constant 0 : index
    %77 = vector.load %arg2[%c4, %c0_28, %c0_29] : memref<16x16x8xf32, #tpu.memory_space<vmem>>, vector<1x16x8xf32>
    %78 = vector.shape_cast %77 : vector<1x16x8xf32> to vector<16x8xf32>
    %79 = vector.shape_cast %76 : vector<16x8xf32> to vector<1x16x8xf32>
    tpu.vector_store %arg2[%c4, %c0_28, %c0_29], %79 {strides = array<i32>} : memref<16x16x8xf32, #tpu.memory_space<vmem>>, vector<1x16x8xf32>,
    %80 = vector.extract_strided_slice %8 {offsets = [0, 5, 0], sizes = [16, 1, 8], strides = [1, 1, 1]} : vector<16x16x8xf32> to vector<16x1x8xf32>
    %81 = vector.broadcast %80 : vector<16x1x8xf32> to vector<16x16x8xf32>
    %82 = arith.mulf %8, %81 : vector<16x16x8xf32>
    %cst_30 = arith.constant dense<0.000000e+00> : vector<16x8xf32>
    %83 = vector.multi_reduction <add>, %82, %cst_30 [0] : vector<16x16x8xf32> to vector<16x8xf32>
    %c5_i32 = arith.constant 5 : i32
    %84 = vector.broadcast %c5_i32 : i32 to vector<16x1xi32>
    %85 = arith.cmpi eq, %9, %84 : vector<16x1xi32>
    %cst_31 = arith.constant 1.000000e-03 : f32
    %cst_32 = arith.constant 0.000000e+00 : f32
    %86 = vector.broadcast %cst_31 : f32 to vector<16x1xf32>
    %87 = vector.broadcast %cst_32 : f32 to vector<16x1xf32>
    %88 = arith.select %85, %86, %87 : vector<16x1xi1>, vector<16x1xf32>
    %89 = vector.broadcast %88 : vector<16x1xf32> to vector<16x8xf32>
    %90 = arith.addf %83, %89 : vector<16x8xf32>
    %c5 = arith.constant 5 : index
    %c0_33 = arith.constant 0 : index
    %c0_34 = arith.constant 0 : index
    %91 = vector.load %arg2[%c5, %c0_33, %c0_34] : memref<16x16x8xf32, #tpu.memory_space<vmem>>, vector<1x16x8xf32>
    %92 = vector.shape_cast %91 : vector<1x16x8xf32> to vector<16x8xf32>
    %93 = vector.shape_cast %90 : vector<16x8xf32> to vector<1x16x8xf32>
    tpu.vector_store %arg2[%c5, %c0_33, %c0_34], %93 {strides = array<i32>} : memref<16x16x8xf32, #tpu.memory_space<vmem>>, vector<1x16x8xf32>,
    %94 = vector.extract_strided_slice %8 {offsets = [0, 6, 0], sizes = [16, 1, 8], strides = [1, 1, 1]} : vector<16x16x8xf32> to vector<16x1x8xf32>
    %95 = vector.broadcast %94 : vector<16x1x8xf32> to vector<16x16x8xf32>
    %96 = arith.mulf %8, %95 : vector<16x16x8xf32>
    %cst_35 = arith.constant dense<0.000000e+00> : vector<16x8xf32>
    %97 = vector.multi_reduction <add>, %96, %cst_35 [0] : vector<16x16x8xf32> to vector<16x8xf32>
    %c6_i32 = arith.constant 6 : i32
    %98 = vector.broadcast %c6_i32 : i32 to vector<16x1xi32>
    %99 = arith.cmpi eq, %9, %98 : vector<16x1xi32>
    %cst_36 = arith.constant 1.000000e-03 : f32
    %cst_37 = arith.constant 0.000000e+00 : f32
    %100 = vector.broadcast %cst_36 : f32 to vector<16x1xf32>
    %101 = vector.broadcast %cst_37 : f32 to vector<16x1xf32>
    %102 = arith.select %99, %100, %101 : vector<16x1xi1>, vector<16x1xf32>
    %103 = vector.broadcast %102 : vector<16x1xf32> to vector<16x8xf32>
    %104 = arith.addf %97, %103 : vector<16x8xf32>
    %c6 = arith.constant 6 : index
    %c0_38 = arith.constant 0 : index
    %c0_39 = arith.constant 0 : index
    %105 = vector.load %arg2[%c6, %c0_38, %c0_39] : memref<16x16x8xf32, #tpu.memory_space<vmem>>, vector<1x16x8xf32>
    %106 = vector.shape_cast %105 : vector<1x16x8xf32> to vector<16x8xf32>
    %107 = vector.shape_cast %104 : vector<16x8xf32> to vector<1x16x8xf32>
    tpu.vector_store %arg2[%c6, %c0_38, %c0_39], %107 {strides = array<i32>} : memref<16x16x8xf32, #tpu.memory_space<vmem>>, vector<1x16x8xf32>,
    %108 = vector.extract_strided_slice %8 {offsets = [0, 7, 0], sizes = [16, 1, 8], strides = [1, 1, 1]} : vector<16x16x8xf32> to vector<16x1x8xf32>
    %109 = vector.broadcast %108 : vector<16x1x8xf32> to vector<16x16x8xf32>
    %110 = arith.mulf %8, %109 : vector<16x16x8xf32>
    %cst_40 = arith.constant dense<0.000000e+00> : vector<16x8xf32>
    %111 = vector.multi_reduction <add>, %110, %cst_40 [0] : vector<16x16x8xf32> to vector<16x8xf32>
    %c7_i32 = arith.constant 7 : i32
    %112 = vector.broadcast %c7_i32 : i32 to vector<16x1xi32>
    %113 = arith.cmpi eq, %9, %112 : vector<16x1xi32>
    %cst_41 = arith.constant 1.000000e-03 : f32
    %cst_42 = arith.constant 0.000000e+00 : f32
    %114 = vector.broadcast %cst_41 : f32 to vector<16x1xf32>
    %115 = vector.broadcast %cst_42 : f32 to vector<16x1xf32>
    %116 = arith.select %113, %114, %115 : vector<16x1xi1>, vector<16x1xf32>
    %117 = vector.broadcast %116 : vector<16x1xf32> to vector<16x8xf32>
    %118 = arith.addf %111, %117 : vector<16x8xf32>
    %c7 = arith.constant 7 : index
    %c0_43 = arith.constant 0 : index
    %c0_44 = arith.constant 0 : index
    %119 = vector.load %arg2[%c7, %c0_43, %c0_44] : memref<16x16x8xf32, #tpu.memory_space<vmem>>, vector<1x16x8xf32>
    %120 = vector.shape_cast %119 : vector<1x16x8xf32> to vector<16x8xf32>
    %121 = vector.shape_cast %118 : vector<16x8xf32> to vector<1x16x8xf32>
    tpu.vector_store %arg2[%c7, %c0_43, %c0_44], %121 {strides = array<i32>} : memref<16x16x8xf32, #tpu.memory_space<vmem>>, vector<1x16x8xf32>,
    %122 = vector.extract_strided_slice %8 {offsets = [0, 8, 0], sizes = [16, 1, 8], strides = [1, 1, 1]} : vector<16x16x8xf32> to vector<16x1x8xf32>
    %123 = vector.broadcast %122 : vector<16x1x8xf32> to vector<16x16x8xf32>
    %124 = arith.mulf %8, %123 : vector<16x16x8xf32>
    %cst_45 = arith.constant dense<0.000000e+00> : vector<16x8xf32>
    %125 = vector.multi_reduction <add>, %124, %cst_45 [0] : vector<16x16x8xf32> to vector<16x8xf32>
    %c8_i32 = arith.constant 8 : i32
    %126 = vector.broadcast %c8_i32 : i32 to vector<16x1xi32>
    %127 = arith.cmpi eq, %9, %126 : vector<16x1xi32>
    %cst_46 = arith.constant 1.000000e-03 : f32
    %cst_47 = arith.constant 0.000000e+00 : f32
    %128 = vector.broadcast %cst_46 : f32 to vector<16x1xf32>
    %129 = vector.broadcast %cst_47 : f32 to vector<16x1xf32>
    %130 = arith.select %127, %128, %129 : vector<16x1xi1>, vector<16x1xf32>
    %131 = vector.broadcast %130 : vector<16x1xf32> to vector<16x8xf32>
    %132 = arith.addf %125, %131 : vector<16x8xf32>
    %c8 = arith.constant 8 : index
    %c0_48 = arith.constant 0 : index
    %c0_49 = arith.constant 0 : index
    %133 = vector.load %arg2[%c8, %c0_48, %c0_49] : memref<16x16x8xf32, #tpu.memory_space<vmem>>, vector<1x16x8xf32>
    %134 = vector.shape_cast %133 : vector<1x16x8xf32> to vector<16x8xf32>
    %135 = vector.shape_cast %132 : vector<16x8xf32> to vector<1x16x8xf32>
    tpu.vector_store %arg2[%c8, %c0_48, %c0_49], %135 {strides = array<i32>} : memref<16x16x8xf32, #tpu.memory_space<vmem>>, vector<1x16x8xf32>,
    %136 = vector.extract_strided_slice %8 {offsets = [0, 9, 0], sizes = [16, 1, 8], strides = [1, 1, 1]} : vector<16x16x8xf32> to vector<16x1x8xf32>
    %137 = vector.broadcast %136 : vector<16x1x8xf32> to vector<16x16x8xf32>
    %138 = arith.mulf %8, %137 : vector<16x16x8xf32>
    %cst_50 = arith.constant dense<0.000000e+00> : vector<16x8xf32>
    %139 = vector.multi_reduction <add>, %138, %cst_50 [0] : vector<16x16x8xf32> to vector<16x8xf32>
    %c9_i32 = arith.constant 9 : i32
    %140 = vector.broadcast %c9_i32 : i32 to vector<16x1xi32>
    %141 = arith.cmpi eq, %9, %140 : vector<16x1xi32>
    %cst_51 = arith.constant 1.000000e-03 : f32
    %cst_52 = arith.constant 0.000000e+00 : f32
    %142 = vector.broadcast %cst_51 : f32 to vector<16x1xf32>
    %143 = vector.broadcast %cst_52 : f32 to vector<16x1xf32>
    %144 = arith.select %141, %142, %143 : vector<16x1xi1>, vector<16x1xf32>
    %145 = vector.broadcast %144 : vector<16x1xf32> to vector<16x8xf32>
    %146 = arith.addf %139, %145 : vector<16x8xf32>
    %c9 = arith.constant 9 : index
    %c0_53 = arith.constant 0 : index
    %c0_54 = arith.constant 0 : index
    %147 = vector.load %arg2[%c9, %c0_53, %c0_54] : memref<16x16x8xf32, #tpu.memory_space<vmem>>, vector<1x16x8xf32>
    %148 = vector.shape_cast %147 : vector<1x16x8xf32> to vector<16x8xf32>
    %149 = vector.shape_cast %146 : vector<16x8xf32> to vector<1x16x8xf32>
    tpu.vector_store %arg2[%c9, %c0_53, %c0_54], %149 {strides = array<i32>} : memref<16x16x8xf32, #tpu.memory_space<vmem>>, vector<1x16x8xf32>,
    %150 = vector.extract_strided_slice %8 {offsets = [0, 10, 0], sizes = [16, 1, 8], strides = [1, 1, 1]} : vector<16x16x8xf32> to vector<16x1x8xf32>
    %151 = vector.broadcast %150 : vector<16x1x8xf32> to vector<16x16x8xf32>
    %152 = arith.mulf %8, %151 : vector<16x16x8xf32>
    %cst_55 = arith.constant dense<0.000000e+00> : vector<16x8xf32>
    %153 = vector.multi_reduction <add>, %152, %cst_55 [0] : vector<16x16x8xf32> to vector<16x8xf32>
    %c10_i32 = arith.constant 10 : i32
    %154 = vector.broadcast %c10_i32 : i32 to vector<16x1xi32>
    %155 = arith.cmpi eq, %9, %154 : vector<16x1xi32>
    %cst_56 = arith.constant 1.000000e-03 : f32
    %cst_57 = arith.constant 0.000000e+00 : f32
    %156 = vector.broadcast %cst_56 : f32 to vector<16x1xf32>
    %157 = vector.broadcast %cst_57 : f32 to vector<16x1xf32>
    %158 = arith.select %155, %156, %157 : vector<16x1xi1>, vector<16x1xf32>
    %159 = vector.broadcast %158 : vector<16x1xf32> to vector<16x8xf32>
    %160 = arith.addf %153, %159 : vector<16x8xf32>
    %c10 = arith.constant 10 : index
    %c0_58 = arith.constant 0 : index
    %c0_59 = arith.constant 0 : index
    %161 = vector.load %arg2[%c10, %c0_58, %c0_59] : memref<16x16x8xf32, #tpu.memory_space<vmem>>, vector<1x16x8xf32>
    %162 = vector.shape_cast %161 : vector<1x16x8xf32> to vector<16x8xf32>
    %163 = vector.shape_cast %160 : vector<16x8xf32> to vector<1x16x8xf32>
    tpu.vector_store %arg2[%c10, %c0_58, %c0_59], %163 {strides = array<i32>} : memref<16x16x8xf32, #tpu.memory_space<vmem>>, vector<1x16x8xf32>,
    %164 = vector.extract_strided_slice %8 {offsets = [0, 11, 0], sizes = [16, 1, 8], strides = [1, 1, 1]} : vector<16x16x8xf32> to vector<16x1x8xf32>
    %165 = vector.broadcast %164 : vector<16x1x8xf32> to vector<16x16x8xf32>
    %166 = arith.mulf %8, %165 : vector<16x16x8xf32>
    %cst_60 = arith.constant dense<0.000000e+00> : vector<16x8xf32>
    %167 = vector.multi_reduction <add>, %166, %cst_60 [0] : vector<16x16x8xf32> to vector<16x8xf32>
    %c11_i32 = arith.constant 11 : i32
    %168 = vector.broadcast %c11_i32 : i32 to vector<16x1xi32>
    %169 = arith.cmpi eq, %9, %168 : vector<16x1xi32>
    %cst_61 = arith.constant 1.000000e-03 : f32
    %cst_62 = arith.constant 0.000000e+00 : f32
    %170 = vector.broadcast %cst_61 : f32 to vector<16x1xf32>
    %171 = vector.broadcast %cst_62 : f32 to vector<16x1xf32>
    %172 = arith.select %169, %170, %171 : vector<16x1xi1>, vector<16x1xf32>
    %173 = vector.broadcast %172 : vector<16x1xf32> to vector<16x8xf32>
    %174 = arith.addf %167, %173 : vector<16x8xf32>
    %c11 = arith.constant 11 : index
    %c0_63 = arith.constant 0 : index
    %c0_64 = arith.constant 0 : index
    %175 = vector.load %arg2[%c11, %c0_63, %c0_64] : memref<16x16x8xf32, #tpu.memory_space<vmem>>, vector<1x16x8xf32>
    %176 = vector.shape_cast %175 : vector<1x16x8xf32> to vector<16x8xf32>
    %177 = vector.shape_cast %174 : vector<16x8xf32> to vector<1x16x8xf32>
    tpu.vector_store %arg2[%c11, %c0_63, %c0_64], %177 {strides = array<i32>} : memref<16x16x8xf32, #tpu.memory_space<vmem>>, vector<1x16x8xf32>,
    %178 = vector.extract_strided_slice %8 {offsets = [0, 12, 0], sizes = [16, 1, 8], strides = [1, 1, 1]} : vector<16x16x8xf32> to vector<16x1x8xf32>
    %179 = vector.broadcast %178 : vector<16x1x8xf32> to vector<16x16x8xf32>
    %180 = arith.mulf %8, %179 : vector<16x16x8xf32>
    %cst_65 = arith.constant dense<0.000000e+00> : vector<16x8xf32>
    %181 = vector.multi_reduction <add>, %180, %cst_65 [0] : vector<16x16x8xf32> to vector<16x8xf32>
    %c12_i32 = arith.constant 12 : i32
    %182 = vector.broadcast %c12_i32 : i32 to vector<16x1xi32>
    %183 = arith.cmpi eq, %9, %182 : vector<16x1xi32>
    %cst_66 = arith.constant 1.000000e-03 : f32
    %cst_67 = arith.constant 0.000000e+00 : f32
    %184 = vector.broadcast %cst_66 : f32 to vector<16x1xf32>
    %185 = vector.broadcast %cst_67 : f32 to vector<16x1xf32>
    %186 = arith.select %183, %184, %185 : vector<16x1xi1>, vector<16x1xf32>
    %187 = vector.broadcast %186 : vector<16x1xf32> to vector<16x8xf32>
    %188 = arith.addf %181, %187 : vector<16x8xf32>
    %c12 = arith.constant 12 : index
    %c0_68 = arith.constant 0 : index
    %c0_69 = arith.constant 0 : index
    %189 = vector.load %arg2[%c12, %c0_68, %c0_69] : memref<16x16x8xf32, #tpu.memory_space<vmem>>, vector<1x16x8xf32>
    %190 = vector.shape_cast %189 : vector<1x16x8xf32> to vector<16x8xf32>
    %191 = vector.shape_cast %188 : vector<16x8xf32> to vector<1x16x8xf32>
    tpu.vector_store %arg2[%c12, %c0_68, %c0_69], %191 {strides = array<i32>} : memref<16x16x8xf32, #tpu.memory_space<vmem>>, vector<1x16x8xf32>,
    %192 = vector.extract_strided_slice %8 {offsets = [0, 13, 0], sizes = [16, 1, 8], strides = [1, 1, 1]} : vector<16x16x8xf32> to vector<16x1x8xf32>
    %193 = vector.broadcast %192 : vector<16x1x8xf32> to vector<16x16x8xf32>
    %194 = arith.mulf %8, %193 : vector<16x16x8xf32>
    %cst_70 = arith.constant dense<0.000000e+00> : vector<16x8xf32>
    %195 = vector.multi_reduction <add>, %194, %cst_70 [0] : vector<16x16x8xf32> to vector<16x8xf32>
    %c13_i32 = arith.constant 13 : i32
    %196 = vector.broadcast %c13_i32 : i32 to vector<16x1xi32>
    %197 = arith.cmpi eq, %9, %196 : vector<16x1xi32>
    %cst_71 = arith.constant 1.000000e-03 : f32
    %cst_72 = arith.constant 0.000000e+00 : f32
    %198 = vector.broadcast %cst_71 : f32 to vector<16x1xf32>
    %199 = vector.broadcast %cst_72 : f32 to vector<16x1xf32>
    %200 = arith.select %197, %198, %199 : vector<16x1xi1>, vector<16x1xf32>
    %201 = vector.broadcast %200 : vector<16x1xf32> to vector<16x8xf32>
    %202 = arith.addf %195, %201 : vector<16x8xf32>
    %c13 = arith.constant 13 : index
    %c0_73 = arith.constant 0 : index
    %c0_74 = arith.constant 0 : index
    %203 = vector.load %arg2[%c13, %c0_73, %c0_74] : memref<16x16x8xf32, #tpu.memory_space<vmem>>, vector<1x16x8xf32>
    %204 = vector.shape_cast %203 : vector<1x16x8xf32> to vector<16x8xf32>
    %205 = vector.shape_cast %202 : vector<16x8xf32> to vector<1x16x8xf32>
    tpu.vector_store %arg2[%c13, %c0_73, %c0_74], %205 {strides = array<i32>} : memref<16x16x8xf32, #tpu.memory_space<vmem>>, vector<1x16x8xf32>,
    %206 = vector.extract_strided_slice %8 {offsets = [0, 14, 0], sizes = [16, 1, 8], strides = [1, 1, 1]} : vector<16x16x8xf32> to vector<16x1x8xf32>
    %207 = vector.broadcast %206 : vector<16x1x8xf32> to vector<16x16x8xf32>
    %208 = arith.mulf %8, %207 : vector<16x16x8xf32>
    %cst_75 = arith.constant dense<0.000000e+00> : vector<16x8xf32>
    %209 = vector.multi_reduction <add>, %208, %cst_75 [0] : vector<16x16x8xf32> to vector<16x8xf32>
    %c14_i32 = arith.constant 14 : i32
    %210 = vector.broadcast %c14_i32 : i32 to vector<16x1xi32>
    %211 = arith.cmpi eq, %9, %210 : vector<16x1xi32>
    %cst_76 = arith.constant 1.000000e-03 : f32
    %cst_77 = arith.constant 0.000000e+00 : f32
    %212 = vector.broadcast %cst_76 : f32 to vector<16x1xf32>
    %213 = vector.broadcast %cst_77 : f32 to vector<16x1xf32>
    %214 = arith.select %211, %212, %213 : vector<16x1xi1>, vector<16x1xf32>
    %215 = vector.broadcast %214 : vector<16x1xf32> to vector<16x8xf32>
    %216 = arith.addf %209, %215 : vector<16x8xf32>
    %c14 = arith.constant 14 : index
    %c0_78 = arith.constant 0 : index
    %c0_79 = arith.constant 0 : index
    %217 = vector.load %arg2[%c14, %c0_78, %c0_79] : memref<16x16x8xf32, #tpu.memory_space<vmem>>, vector<1x16x8xf32>
    %218 = vector.shape_cast %217 : vector<1x16x8xf32> to vector<16x8xf32>
    %219 = vector.shape_cast %216 : vector<16x8xf32> to vector<1x16x8xf32>
    tpu.vector_store %arg2[%c14, %c0_78, %c0_79], %219 {strides = array<i32>} : memref<16x16x8xf32, #tpu.memory_space<vmem>>, vector<1x16x8xf32>,
    %220 = vector.extract_strided_slice %8 {offsets = [0, 15, 0], sizes = [16, 1, 8], strides = [1, 1, 1]} : vector<16x16x8xf32> to vector<16x1x8xf32>
    %221 = vector.broadcast %220 : vector<16x1x8xf32> to vector<16x16x8xf32>
    %222 = arith.mulf %8, %221 : vector<16x16x8xf32>
    %cst_80 = arith.constant dense<0.000000e+00> : vector<16x8xf32>
    %223 = vector.multi_reduction <add>, %222, %cst_80 [0] : vector<16x16x8xf32> to vector<16x8xf32>
    %c15_i32 = arith.constant 15 : i32
    %224 = vector.broadcast %c15_i32 : i32 to vector<16x1xi32>
    %225 = arith.cmpi eq, %9, %224 : vector<16x1xi32>
    %cst_81 = arith.constant 1.000000e-03 : f32
    %cst_82 = arith.constant 0.000000e+00 : f32
    %226 = vector.broadcast %cst_81 : f32 to vector<16x1xf32>
    %227 = vector.broadcast %cst_82 : f32 to vector<16x1xf32>
    %228 = arith.select %225, %226, %227 : vector<16x1xi1>, vector<16x1xf32>
    %229 = vector.broadcast %228 : vector<16x1xf32> to vector<16x8xf32>
    %230 = arith.addf %223, %229 : vector<16x8xf32>
    %c15 = arith.constant 15 : index
    %c0_83 = arith.constant 0 : index
    %c0_84 = arith.constant 0 : index
    %231 = vector.load %arg2[%c15, %c0_83, %c0_84] : memref<16x16x8xf32, #tpu.memory_space<vmem>>, vector<1x16x8xf32>
    %232 = vector.shape_cast %231 : vector<1x16x8xf32> to vector<16x8xf32>
    %233 = vector.shape_cast %230 : vector<16x8xf32> to vector<1x16x8xf32>
    tpu.vector_store %arg2[%c15, %c0_83, %c0_84], %233 {strides = array<i32>} : memref<16x16x8xf32, #tpu.memory_space<vmem>>, vector<1x16x8xf32>,
    return
  }
  func.func @transform_0(%arg0: i32) -> (i32, i32, i32) {
    %c0_i32 = arith.constant 0 : i32
    %c0_i32_0 = arith.constant 0 : i32
    %c0_i32_1 = arith.constant 0 : i32
    return %c0_i32, %c0_i32_0, %arg0 : i32, i32, i32
  }
  func.func @transform_1(%arg0: i32) -> (i32, i32, i32) {
    %c0_i32 = arith.constant 0 : i32
    %c0_i32_0 = arith.constant 0 : i32
    %c0_i32_1 = arith.constant 0 : i32
    return %c0_i32, %c0_i32_0, %arg0 : i32, i32, i32
  }
}

</mosaic_0001>

<bundles_post_ra>
// kernel: tpu_custom_call.1
= control target key start
LH: loop header
LB: loop body
LE: loop exit
PB: predicated region body
PF: predicated region fallthrough
CT: control target
= control target key end

     0   :  { %vm40_vm0 = vcmask 64512   ;;  %v2216_v44 = vmov 16.0   ;;  %s4030_s0 = inlined_call_operand.vmem [shape: f32[16,16,8], index: 0, kind: input, shape index: {}]   ;;  %s4031_s1 = inlined_call_operand.vmem [shape: f32[16,16,8], index: 1, kind: output, shape index: {}]  }
   0x1   :  { %v2231_v0 = vld [vmem:[%s4030_s0] sm:$0xff]  ;;  %v2236_v1 = vld [vmem:[%s4030_s0 + $0x8] sm:$0xff]  ;;  %v2241_v2 = vld [vmem:[%s4030_s0 + $0x10] sm:$0xff]  ;;  %2214 = vrcp.f32 %v2216_v44 }
   0x2   :  { %v2246_v3 = vld [vmem:[%s4030_s0 + $0x18] sm:$0xff]  ;;  %v2251_v4 = vld [vmem:[%s4030_s0 + $0x20] sm:$0xff]  ;;  %v2256_v5 = vld [vmem:[%s4030_s0 + $0x28] sm:$0xff]  ;;  %v41_v6 = vsel %vm40_vm0, %v2231_v0, 0.0  ;;  %v42_v7 = vsel %vm40_vm0, %v2236_v1, 0.0  ;;  %v50_v8 = vsel %vm40_vm0, %v2241_v2, 0.0 }
   0x3   :  { %v2267_v9 = vld [vmem:[%s4030_s0 + $0x30] sm:$0xff]  ;;  %v2272_v10 = vld [vmem:[%s4030_s0 + $0x38] sm:$0xff]  ;;  %v43_v11 = vadd.f32 %v42_v7, %v41_v6  ;;  %v51_v12 = vsel %vm40_vm0, %v2246_v3, 0.0  ;;  %v59_v13 = vsel %vm40_vm0, %v2251_v4, 0.0  ;;  %v60_v14 = vsel %vm40_vm0, %v2256_v5, 0.0  ;;  %v2283_v15 = vld [vmem:[%s4030_s0 + $0x40] sm:$0xff] }
   0x4   :  { %v2288_v16 = vld [vmem:[%s4030_s0 + $0x48] sm:$0xff]  ;;  %v52_v17 = vadd.f32 %v51_v12, %v50_v8  ;;  %v61_v18 = vadd.f32 %v60_v14, %v59_v13  ;;  %v68_v19 = vsel %vm40_vm0, %v2267_v9, 0.0  ;;  %v69_v20 = vsel %vm40_vm0, %v2272_v10, 0.0  ;;  %v2301_v24 = vld [vmem:[%s4030_s0 + $0x50] sm:$0xff]  ;;  %v2306_v25 = vld [vmem:[%s4030_s0 + $0x58] sm:$0xff] }
   0x5   :  { %v44_v21 = vrot.slane %v43_v11, 4  ;;  %v77_v22 = vsel %vm40_vm0, %v2283_v15, 0.0  ;;  %v78_v23 = vsel %vm40_vm0, %v2288_v16, 0.0  ;;  %v70_v26 = vadd.f32 %v69_v20, %v68_v19  ;;  %v2311_v27 = vld [vmem:[%s4030_s0 + $0x60] sm:$0xff]  ;;  %v2316_v31 = vld [vmem:[%s4030_s0 + $0x68] sm:$0xff]  ;;  %v2321_v32 = vld [vmem:[%s4030_s0 + $0x70] sm:$0xff] }
   0x6   :  { %v53_v28 = vrot.slane %v52_v17, 4  ;;  %v62_v29 = vrot.slane %v61_v18, 4  ;;  %v79_v30 = vadd.f32 %v78_v23, %v77_v22  ;;  %4087 = vst [vmem:[#allocation2_spill] sm:$0xff] %v2316_v31  ;;  %v86_v34 = vsel %vm40_vm0, %v2301_v24, 0.0  ;;  %v2330_v36 = vld [vmem:[%s4030_s0 + $0x78] sm:$0xff]  ;;  %v2335_v37 = vld [vmem:[%s4030_s0 + $0x80] sm:$0xff] }
   0x7   :  { %4088 = vst [vmem:[#allocation3_spill] sm:$0xff] %v2321_v32  ;;  %v45_v33 = vadd.f32 %v44_v21, %v43_v11  ;;  %v87_v35 = vsel %vm40_vm0, %v2306_v25, 0.0  ;;  %v2340_v38 = vld [vmem:[%s4030_s0 + $0x88] sm:$0xff]  ;;  %v2345_v39 = vld [vmem:[%s4030_s0 + $0x90] sm:$0xff]  ;;  %v2350_v40 = vld [vmem:[%s4030_s0 + $0x98] sm:$0xff]  ;;  %v71_v42 = vrot.slane %v70_v26, 4 }
   0x8   :  { %4089 = vst [vmem:[#allocation4_spill] sm:$0xff] %v2330_v36  ;;  %v2355_v41 = vld [vmem:[%s4030_s0 + $0xa0] sm:$0xff]  ;;  %v95_v43 = vsel %vm40_vm0, %v2311_v27, 0.0  ;;  %v2362_v45 = vld [vmem:[%s4030_s0 + $0xa8] sm:$0xff]  ;;  %v2367_v46 = vld [vmem:[%s4030_s0 + $0xb0] sm:$0xff]  ;;  %v54_v48 = vadd.f32 %v53_v28, %v52_v17  ;;  %v63_v49 = vadd.f32 %v62_v29, %v61_v18  ;;  %v80_v50 = vrot.slane %v79_v30, 4  ;;  %v2418_v18 = vpop.eup %2214 }
   0x9   :  { %4090 = vst [vmem:[#allocation5_spill] sm:$0xff] %v2335_v37  ;;  %v2372_v47 = vld [vmem:[%s4030_s0 + $0xb8] sm:$0xff]  ;;  %v88_v51 = vadd.f32 %v87_v35, %v86_v34  ;;  %v2377_v52 = vld [vmem:[%s4030_s0 + $0xc0] sm:$0xff]  ;;  %v46_v53 = vrot.slane %v45_v33, 2  ;;  %v96_v54 = vsel %vm40_vm0, %v2316_v31, 0.0  ;;  %v104_v55 = vsel %vm40_vm0, %v2321_v32, 0.0 }
   0xa   :  { %4091 = vst [vmem:[#allocation6_spill] sm:$0xff] %v2340_v38  ;;  %v105_v56 = vsel %vm40_vm0, %v2330_v36, 0.0  ;;  %v2388_v57 = vld [vmem:[%s4030_s0 + $0xc8] sm:$0xff]  ;;  %v2393_v58 = vld [vmem:[%s4030_s0 + $0xd0] sm:$0xff]  ;;  %v113_v59 = vsel %vm40_vm0, %v2335_v37, 0.0  ;;  %v114_v60 = vsel %vm40_vm0, %v2340_v38, 0.0  ;;  %v72_v13 = vadd.f32 %v71_v42, %v70_v26 }
   0xb   :  { %4092 = vst [vmem:[#allocation7_spill] sm:$0xff] %v2345_v39  ;;  %v122_v61 = vsel %vm40_vm0, %v2345_v39, 0.0  ;;  %v123_v62 = vsel %vm40_vm0, %v2350_v40, 0.0  ;;  %v131_v63 = vsel %vm40_vm0, %v2355_v41, 0.0  ;;  %v132_v6 = vsel %vm40_vm0, %v2362_v45, 0.0  ;;  %v2414_v11 = vld [vmem:[%s4030_s0 + $0xd8] sm:$0xff] }
   0xc   :  { %4093 = vst [vmem:[#allocation8_spill] sm:$0xff] %v2350_v40  ;;  %v140_v7 = vsel %vm40_vm0, %v2367_v46, 0.0  ;;  %v141_v8 = vsel %vm40_vm0, %v2372_v47, 0.0  ;;  %v55_v12 = vrot.slane %v54_v48, 2  ;;  %v97_v14 = vadd.f32 %v96_v54, %v95_v43  ;;  %v2423_v19 = vld [vmem:[%s4030_s0 + $0xe0] sm:$0xff]  ;;  %v2432_v26 = vld [vmem:[%s4030_s0 + $0xe8] sm:$0xff] }
   0xd   :  { %4094 = vst [vmem:[#allocation9_spill] sm:$0xff] %v2355_v41  ;;  %v149_v17 = vsel %vm40_vm0, %v2377_v52, 0.0  ;;  %v106_v20 = vadd.f32 %v105_v56, %v104_v55  ;;  %v115_v21 = vadd.f32 %v114_v60, %v113_v59  ;;  %v150_v22 = vsel %vm40_vm0, %v2388_v57, 0.0  ;;  %v2437_v42 = vld [vmem:[%s4030_s0 + $0xf0] sm:$0xff]  ;;  %v2444_v56 = vld [vmem:[%s4030_s0 + $0xf8] sm:$0xff] }
   0xe   :  { %4095 = vst [vmem:[#allocation10_spill] sm:$0xff] %v2362_v45  ;;  %v158_v23 = vsel %vm40_vm0, %v2393_v58, 0.0  ;;  %v64_v28 = vrot.slane %v63_v49, 2  ;;  %v124_v29 = vadd.f32 %v123_v62, %v122_v61  ;;  %v133_v34 = vadd.f32 %v132_v6, %v131_v63 }
   0xf   :  { %4096 = vst [vmem:[#allocation11_spill] sm:$0xff] %v2367_v46  ;;  %v142_v35 = vadd.f32 %v141_v8, %v140_v7  ;;  %v81_v43 = vadd.f32 %v80_v50, %v79_v30  ;;  %v89_v44 = vrot.slane %v88_v51, 4  ;;  %v151_v54 = vadd.f32 %v150_v22, %v149_v17 }
  0x10   :  { %4097 = vst [vmem:[#allocation12_spill] sm:$0xff] %v2372_v47  ;;  %v159_v55 = vsel %vm40_vm0, %v2414_v11, 0.0  ;;  %v47_v59 = vadd.f32 %v46_v53, %v45_v33  ;;  %v98_v60 = vrot.slane %v97_v14, 4  ;;  %v167_v62 = vsel %vm40_vm0, %v2423_v19, 0.0 }
  0x11   :  { %4098 = vst [vmem:[#allocation13_spill] sm:$0xff] %v2377_v52  ;;  %v160_v61 = vadd.f32 %v159_v55, %v158_v23  ;;  %v73_v63 = vrot.slane %v72_v13, 2  ;;  %v107_v6 = vrot.slane %v106_v20, 4  ;;  %v116_v7 = vrot.slane %v115_v21, 4 }
  0x12   :  { %4099 = vst [vmem:[#allocation14_spill] sm:$0xff] %v2388_v57  ;;  %v168_v30 = vsel %vm40_vm0, %v2432_v26, 0.0  ;;  %v125_v50 = vrot.slane %v124_v29, 4  ;;  %v134_v8 = vrot.slane %v133_v34, 4  ;;  %v143_v17 = vrot.slane %v142_v35, 4 }
  0x13   :  { %4100 = vst [vmem:[#allocation15_spill] sm:$0xff] %v2393_v58  ;;  %v176_v22 = vsel %vm40_vm0, %v2437_v42, 0.0  ;;  %v161_v58 = vrot.slane %v160_v61, 4  ;;  %v169_v33 = vadd.f32 %v168_v30, %v167_v62  ;;  %v177_v53 = vsel %vm40_vm0, %v2444_v56, 0.0 }
  0x14   :  { %4101 = vst [vmem:[#allocation16_spill] sm:$0xff] %v2414_v11  ;;  %v152_v11 = vrot.slane %v151_v54, 4  ;;  %v56_v23 = vadd.f32 %v55_v12, %v54_v48  ;;  %v2454_v55 = vadd.f32 %v64_v28, %v63_v49  ;;  %v99_v57 = vadd.f32 %v98_v60, %v97_v14 }
  0x15   :  { %4102 = vst [vmem:[#allocation17_spill] sm:$0xff] %v2423_v19  ;;  %v90_v19 = vadd.f32 %v89_v44, %v88_v51  ;;  %v108_v52 = vadd.f32 %v107_v6, %v106_v20  ;;  %v117_v47 = vadd.f32 %v116_v7, %v115_v21  ;;  %v178_v46 = vadd.f32 %v177_v53, %v176_v22 }
  0x16   :  { %4103 = vst [vmem:[#allocation18_spill] sm:$0xff] %v2432_v26  ;;  %v170_v26 = vrot.slane %v169_v33, 4  ;;  %v126_v45 = vadd.f32 %v125_v50, %v124_v29  ;;  %v135_v41 = vadd.f32 %v134_v8, %v133_v34  ;;  %v144_v40 = vadd.f32 %v143_v17, %v142_v35 }
  0x17   :  { %4104 = vst [vmem:[#allocation19_spill] sm:$0xff] %v2437_v42  ;;  %v186_v42 = vmul.f32 16.0, %v2418_v18  ;;  %v153_v39 = vadd.f32 %v152_v11, %v151_v54  ;;  %v162_v38 = vadd.f32 %v161_v58, %v160_v61  ;;  %v179_v30 = vrot.slane %v178_v46, 4 }
  0x18   :  { %4105 = vst [vmem:[#allocation20_spill] sm:$0xff] %v2444_v56  ;;  %v171_v62 = vadd.f32 %v170_v26, %v169_v33  ;;  %v48_v37 = vrot.slane %v47_v59, 1  ;;  %v82_v56 = vrot.slane %v81_v43, 2  ;;  %v91_v48 = vrot.slane %v90_v19, 2 }
  0x19   :  { %v100_v49 = vrot.slane %v99_v57, 2  ;;  %v109_v12 = vrot.slane %v108_v52, 2  ;;  %v118_v51 = vrot.slane %v117_v47, 2  ;;  %v180_v14 = vadd.f32 %v179_v30, %v178_v46 }
  0x1a   :  { %v187_v20 = vsub.f32 1.0, %v186_v42  ;;  %v74_v21 = vadd.f32 %v73_v63, %v72_v13  ;;  %v127_v28 = vrot.slane %v126_v45, 2  ;;  %v136_v44 = vrot.slane %v135_v41, 2 }
  0x1b   :  { %v145_v29 = vrot.slane %v144_v40, 2  ;;  %v57_v34 = vrot.slane %v56_v23, 1  ;;  %v154_v35 = vrot.slane %v153_v39, 2  ;;  %v163_v60 = vrot.slane %v162_v38, 2 }
  0x1c   :  { %v172_v6 = vrot.slane %v171_v62, 2  ;;  %v66_v58 = vrot.slane %v2454_v55, 1  ;;  %v83_v11 = vadd.f32 %v82_v56, %v81_v43  ;;  %v92_v26 = vadd.f32 %v91_v48, %v90_v19 }
  0x1d   :  { %v181_v54 = vrot.slane %v180_v14, 2  ;;  %v101_v61 = vadd.f32 %v100_v49, %v99_v57  ;;  %v110_v7 = vadd.f32 %v109_v12, %v108_v52  ;;  %v119_v50 = vadd.f32 %v118_v51, %v117_v47 }
  0x1e   :  { %v188_v8 = vmul.f32 %v2418_v18, %v187_v20  ;;  %v49_v46 = vadd.f32 %v48_v37, %v47_v59  ;;  %v128_v42 = vadd.f32 %v127_v28, %v126_v45  ;;  %v137_v13 = vadd.f32 %v136_v44, %v135_v41 }
  0x1f   :  { %v146_v63 = vadd.f32 %v145_v29, %v144_v40  ;;  %v75_v17 = vrot.slane %v74_v21, 1  ;;  %v155_v22 = vadd.f32 %v154_v35, %v153_v39  ;;  %v164_v33 = vadd.f32 %v163_v60, %v162_v38 }
  0x20   :  { %v173_v53 = vadd.f32 %v172_v6, %v171_v62  ;;  %v58_v30 = vadd.f32 %v57_v34, %v56_v23  ;;  %v84_v36 = vrot.slane %v83_v11, 1  ;;  %v93_v32 = vrot.slane %v92_v26, 1 }
  0x21   :  { %v182_v31 = vadd.f32 %v181_v54, %v180_v14  ;;  %v102_v43 = vrot.slane %v101_v61, 1  ;;  %v111_v19 = vrot.slane %v110_v7, 1  ;;  %v120_v56 = vrot.slane %v119_v50, 1 }
  0x22   :  { %v189_v52 = vadd.f32 %v2418_v18, %v188_v8  ;;  %v129_v47 = vrot.slane %v128_v42, 1  ;;  %v138_v57 = vrot.slane %v137_v13, 1  ;;  %v147_v48 = vrot.slane %v146_v63, 1 }
  0x23   :  { %vm190_vm1 = vweird.f32 %v2418_v18  ;;  %v156_v37 = vrot.slane %v155_v22, 1  ;;  %v165_v40 = vrot.slane %v164_v33, 1  ;;  %v174_v41 = vrot.slane %v173_v53, 1 }
  0x24   :  { %v272_v39 = vlaneseq  ;;  %v67_v38 = vadd.f32 %v66_v58, %v2454_v55  ;;  %v76_v45 = vadd.f32 %v75_v17, %v74_v21  ;;  %v85_v59 = vadd.f32 %v84_v36, %v83_v11 }
  0x25   :  { %v183_v23 = vrot.slane %v182_v31, 1  ;;  %v94_v62 = vadd.f32 %v93_v32, %v92_v26  ;;  %v103_v49 = vadd.f32 %v102_v43, %v101_v61  ;;  %v112_v12 = vadd.f32 %v111_v19, %v110_v7 }
  0x26   :  { %v191_v51 = vsel %vm190_vm1, %v2418_v18, %v189_v52  ;;  %v121_v14 = vadd.f32 %v120_v56, %v119_v50  ;;  %v130_v20 = vadd.f32 %v129_v47, %v128_v42  ;;  %v139_v28 = vadd.f32 %v138_v57, %v137_v13  ;;  %v4107_v52 = vld [vmem:[#allocation2_spill] sm:$0xff]  ;;  %v4108_v47 = vld [vmem:[#allocation3_spill] sm:$0xff]  ;;  %v4109_v57 = vld [vmem:[#allocation4_spill] sm:$0xff] }
  0x27   :  { %v148_v44 = vadd.f32 %v147_v48, %v146_v63  ;;  %v157_v29 = vadd.f32 %v156_v37, %v155_v22  ;;  %v166_v34 = vadd.f32 %v165_v40, %v164_v33  ;;  %v175_v35 = vadd.f32 %v174_v41, %v173_v53  ;;  %v4110_v48 = vld [vmem:[#allocation5_spill] sm:$0xff]  ;;  %v4111_v37 = vld [vmem:[#allocation6_spill] sm:$0xff]  ;;  %v4112_v40 = vld [vmem:[#allocation7_spill] sm:$0xff] }
  0x28   :  { %v2463_v60 = vshrl.u32 %v272_v39, 7  ;;  %v184_v6 = vadd.f32 %v183_v23, %v182_v31  ;;  %v192_v54 = vmul.f32 %v191_v51, %v49_v46  ;;  %v193_v55 = vmul.f32 %v191_v51, %v58_v30  ;;  %v4113_v41 = vld [vmem:[#allocation8_spill] sm:$0xff]  ;;  %v4114_v39 = vld [vmem:[#allocation9_spill] sm:$0xff] }
  0x29   :  { %v194_v21 = vmul.f32 %v191_v51, %v67_v38  ;;  %v195_v36 = vmul.f32 %v191_v51, %v76_v45  ;;  %v196_v58 = vmul.f32 %v191_v51, %v85_v59  ;;  %v197_v32 = vmul.f32 %v191_v51, %v94_v62  ;;  %v4115_v38 = vld [vmem:[#allocation10_spill] sm:$0xff]  ;;  %v4117_v59 = vld [vmem:[#allocation12_spill] sm:$0xff]  ;;  %v4118_v62 = vld [vmem:[#allocation13_spill] sm:$0xff] }
  0x2a   :  { %4106 = vst [vmem:[#allocation21_spill] sm:$0xff] %v2463_v60  ;;  %v198_v11 = vmul.f32 %v191_v51, %v103_v49  ;;  %v199_v26 = vmul.f32 %v191_v51, %v112_v12  ;;  %v200_v61 = vmul.f32 %v191_v51, %v121_v14  ;;  %v201_v18 = vmul.f32 %v191_v51, %v130_v20  ;;  %v4119_v12 = vld [vmem:[#allocation14_spill] sm:$0xff]  ;;  %v4120_v14 = vld [vmem:[#allocation15_spill] sm:$0xff] }
  0x2b   :  { %v202_v7 = vmul.f32 %v191_v51, %v139_v28  ;;  %v2465_v50 = vmul.f32 %v191_v51, %v148_v44  ;;  %v2467_v8 = vmul.f32 %v191_v51, %v157_v29  ;;  %v2469_v42 = vmul.f32 %v191_v51, %v166_v34  ;;  %v4121_v28 = vld [vmem:[#allocation16_spill] sm:$0xff]  ;;  %v4122_v29 = vld [vmem:[#allocation17_spill] sm:$0xff] }
  0x2c   :  { %v2471_v13 = vmul.f32 %v191_v51, %v175_v35  ;;  %v2473_v31 = vmul.f32 %v191_v51, %v184_v6  ;;  %v208_v46 = vsub.f32 %v2231_v0, %v192_v54  ;;  %v209_v63 = vsub.f32 %v2236_v1, %v192_v54  ;;  %v4123_v35 = vld [vmem:[#allocation18_spill] sm:$0xff] }
  0x2d   :  { %v210_v17 = vsub.f32 %v2241_v2, %v193_v55  ;;  %v211_v22 = vsub.f32 %v2246_v3, %v193_v55  ;;  %v212_v33 = vsub.f32 %v2251_v4, %v194_v21  ;;  %v213_v53 = vsub.f32 %v2256_v5, %v194_v21  ;;  %v4124_v55 = vld [vmem:[#allocation19_spill] sm:$0xff] }
  0x2e   :  { %v214_v30 = vsub.f32 %v2267_v9, %v195_v36  ;;  %v215_v43 = vsub.f32 %v2272_v10, %v195_v36  ;;  %v216_v19 = vsub.f32 %v2283_v15, %v196_v58  ;;  %v217_v56 = vsub.f32 %v2288_v16, %v196_v58  ;;  %v4125_v36 = vld [vmem:[#allocation20_spill] sm:$0xff] }
  0x2f   :  { %v218_v0 = vsub.f32 %v2301_v24, %v197_v32  ;;  %v219_v1 = vsub.f32 %v2306_v25, %v197_v32  ;;  %v220_v2 = vsub.f32 %v2311_v27, %v198_v11  ;;  %v221_v3 = vsub.f32 %v4107_v52, %v198_v11  ;;  %v4116_v27 = vld [vmem:[#allocation11_spill] sm:$0xff] }
  0x30   :  { %v222_v4 = vsub.f32 %v4108_v47, %v199_v26  ;;  %v223_v5 = vsub.f32 %v4109_v57, %v199_v26  ;;  %v224_v9 = vsub.f32 %v4110_v48, %v200_v61  ;;  %v225_v10 = vsub.f32 %v4111_v37, %v200_v61 }
  0x31   :  { %v226_v15 = vsub.f32 %v4112_v40, %v201_v18  ;;  %v227_v16 = vsub.f32 %v4113_v41, %v201_v18  ;;  %v228_v24 = vsub.f32 %v4114_v39, %v202_v7  ;;  %v229_v25 = vsub.f32 %v4115_v38, %v202_v7 }
  0x32   :  { %v230_v45 = vsub.f32 %v4116_v27, %v2465_v50  ;;  %v231_v23 = vsub.f32 %v4117_v59, %v2465_v50  ;;  %v232_v49 = vsub.f32 %v4118_v62, %v2467_v8  ;;  %v233_v51 = vsub.f32 %v4119_v12, %v2467_v8 }
  0x33   :  { %v234_v20 = vsub.f32 %v4120_v14, %v2469_v42  ;;  %v235_v44 = vsub.f32 %v4121_v28, %v2469_v42  ;;  %v236_v34 = vsub.f32 %v4122_v29, %v2471_v13  ;;  %v237_v6 = vsub.f32 %v4123_v35, %v2471_v13 }
  0x34   :  { %v2513_v54 = vmul.f32 0.25, %v208_v46  ;;  %v238_v21 = vsub.f32 %v4124_v55, %v2473_v31  ;;  %v239_v58 = vsub.f32 %v4125_v36, %v2473_v31  ;;  %v2519_v32 = vmul.f32 0.25, %v210_v17 }
  0x35   :  { %v2521_v11 = vmul.f32 0.25, %v212_v33  ;;  %v2523_v26 = vmul.f32 0.25, %v209_v63  ;;  %v2525_v61 = vmul.f32 0.25, %v211_v22  ;;  %v2527_v18 = vmul.f32 0.25, %v213_v53 }
  0x36   :  { %v2529_v7 = vmul.f32 0.25, %v214_v30  ;;  %v2531_v50 = vmul.f32 0.25, %v215_v43  ;;  %v2533_v8 = vmul.f32 0.25, %v216_v19  ;;  %v2535_v42 = vmul.f32 0.25, %v217_v56 }
  0x37   :  { %4126 = vst [vmem:[#allocation2_spill] sm:$0xff] %v2521_v11  ;;  %v2537_v13 = vmul.f32 0.25, %v218_v0  ;;  %v2539_v31 = vmul.f32 0.25, %v219_v1  ;;  %v2541_v46 = vmul.f32 0.25, %v220_v2  ;;  %v2543_v63 = vmul.f32 0.25, %v221_v3 }
  0x38   :  { %4127 = vst [vmem:[#allocation3_spill] sm:$0xff] %v2529_v7  ;;  %v275_v17 = vperm.slane %v2513_v54, 0  ;;  %v2546_v22 = vmul.f32 0.25, %v222_v4  ;;  %v2548_v33 = vmul.f32 0.25, %v223_v5  ;;  %v276_v53 = vperm.slane %v2519_v32, 0 }
  0x39   :  { %4128 = vst [vmem:[#allocation4_spill] sm:$0xff] %v2533_v8  ;;  %v277_v30 = vperm.slane %v2521_v11, 0  ;;  %v2552_v43 = vmul.f32 0.25, %v224_v9  ;;  %v2554_v19 = vmul.f32 0.25, %v225_v10  ;;  %v2556_v56 = vmul.f32 0.25, %v226_v15 }
  0x3a   :  { %4129 = vst [vmem:[#allocation5_spill] sm:$0xff] %v2535_v42  ;;  %v2558_v0 = vmul.f32 0.25, %v227_v16  ;;  %v2560_v1 = vmul.f32 0.25, %v228_v24  ;;  %v2562_v2 = vmul.f32 0.25, %v229_v25  ;;  %v2564_v52 = vmul.f32 0.25, %v230_v45 }
  0x3b   :  { %4130 = vst [vmem:[#allocation6_spill] sm:$0xff] %v2537_v13  ;;  %v278_v3 = vperm.slane %v2529_v7, 0  ;;  %v2567_v47 = vmul.f32 0.25, %v231_v23  ;;  %v2569_v4 = vmul.f32 0.25, %v232_v49  ;;  %v2571_v57 = vmul.f32 0.25, %v233_v51 }
  0x3c   :  { %4131 = vst [vmem:[#allocation7_spill] sm:$0xff] %v2541_v46  ;;  %v291_v5 = vmul.f32 %v275_v17, %v2513_v54  ;;  %v2574_v48 = vmul.f32 0.25, %v234_v20  ;;  %v279_v9 = vperm.slane %v2533_v8, 0  ;;  %v293_v37 = vmul.f32 %v276_v53, %v2519_v32 }
  0x3d   :  { %v295_v10 = vmul.f32 %v277_v30, %v2521_v11  ;;  %v2579_v40 = vmul.f32 0.25, %v235_v44  ;;  %v2581_v15 = vmul.f32 0.25, %v236_v34  ;;  %v2583_v41 = vmul.f32 0.25, %v237_v6 }
  0x3e   :  { %v2585_v16 = vmul.f32 0.25, %v238_v21  ;;  %v2587_v39 = vmul.f32 0.25, %v239_v58  ;;  %v280_v24 = vperm.slane %v2537_v13, 0  ;;  %v281_v38 = vperm.slane %v2541_v46, 0 }
  0x3f   :  { %v297_v25 = vmul.f32 %v278_v3, %v2529_v7  ;;  %v282_v27 = vperm.slane %v2546_v22, 0  ;;  %v292_v45 = vmul.f32 %v275_v17, %v2523_v26  ;;  %v294_v59 = vmul.f32 %v276_v53, %v2525_v61 }
  0x40   :  { %4132 = vst [vmem:[#allocation8_spill] sm:$0xff] %v2585_v16  ;;  %v323_v23 = vsel %vm40_vm0, %v291_v5, 0.0  ;;  %v296_v62 = vmul.f32 %v277_v30, %v2527_v18  ;;  %v299_v49 = vmul.f32 %v279_v9, %v2533_v8  ;;  %v324_v12 = vsel %vm40_vm0, %v293_v37, 0.0 }
  0x41   :  { %v326_v51 = vsel %vm40_vm0, %v295_v10, 0.0  ;;  %v283_v14 = vperm.slane %v2552_v43, 0  ;;  %v284_v20 = vperm.slane %v2556_v56, 0  ;;  %v285_v28 = vperm.slane %v2560_v1, 0 }
  0x42   :  { %v325_v44 = vadd.f32 %v324_v12, %v323_v23  ;;  %v286_v29 = vperm.slane %v2564_v52, 0  ;;  %v298_v34 = vmul.f32 %v278_v3, %v2531_v50  ;;  %v301_v35 = vmul.f32 %v280_v24, %v2537_v13 }
  0x43   :  { %v328_v6 = vsel %vm40_vm0, %v297_v25, 0.0  ;;  %v287_v55 = vperm.slane %v2569_v4, 0  ;;  %v300_v21 = vmul.f32 %v279_v9, %v2535_v42  ;;  %v303_v36 = vmul.f32 %v281_v38, %v2541_v46 }
  0x44   :  { %v327_v58 = vadd.f32 %v326_v51, %v325_v44  ;;  %v330_v17 = vsel %vm40_vm0, %v299_v49, 0.0  ;;  %v354_v53 = vsel %vm40_vm0, %v292_v45, 0.0  ;;  %v355_v30 = vsel %vm40_vm0, %v294_v59, 0.0 }
  0x45   :  { %v357_v5 = vsel %vm40_vm0, %v296_v62, 0.0  ;;  %v288_v3 = vperm.slane %v2574_v48, 0  ;;  %v289_v37 = vperm.slane %v2581_v15, 0  ;;  %v356_v25 = vadd.f32 %v355_v30, %v354_v53 }
  0x46   :  { %v329_v10 = vadd.f32 %v328_v6, %v327_v58  ;;  %v302_v23 = vmul.f32 %v280_v24, %v2539_v31  ;;  %v305_v9 = vmul.f32 %v282_v27, %v2546_v22  ;;  %v332_v12 = vsel %vm40_vm0, %v301_v35, 0.0 }
  0x47   :  { %v359_v49 = vsel %vm40_vm0, %v298_v34, 0.0  ;;  %v290_v45 = vperm.slane %v2585_v16, 0  ;;  %v304_v59 = vmul.f32 %v281_v38, %v2543_v63  ;;  %v358_v62 = vadd.f32 %v357_v5, %v356_v25 }
  0x48   :  { %v331_v51 = vadd.f32 %v330_v17, %v329_v10  ;;  %v306_v44 = vmul.f32 %v282_v27, %v2548_v33  ;;  %v307_v42 = vmul.f32 %v283_v14, %v2552_v43  ;;  %v334_v6 = vsel %vm40_vm0, %v303_v36, 0.0 }
  0x49   :  { %v361_v24 = vsel %vm40_vm0, %v300_v21, 0.0  ;;  %v308_v58 = vmul.f32 %v283_v14, %v2554_v19  ;;  %v309_v35 = vmul.f32 %v284_v20, %v2556_v56  ;;  %v360_v34 = vadd.f32 %v359_v49, %v358_v62 }
  0x4a   :  { %v333_v53 = vadd.f32 %v332_v12, %v331_v51  ;;  %v310_v30 = vmul.f32 %v284_v20, %v2558_v0  ;;  %v311_v38 = vmul.f32 %v285_v28, %v2560_v1  ;;  %v336_v17 = vsel %vm40_vm0, %v305_v9, 0.0 }
  0x4b   :  { %v363_v27 = vsel %vm40_vm0, %v302_v23, 0.0  ;;  %v312_v5 = vmul.f32 %v285_v28, %v2562_v2  ;;  %v313_v36 = vmul.f32 %v286_v29, %v2564_v52  ;;  %v362_v21 = vadd.f32 %v361_v24, %v360_v34 }
  0x4c   :  { %v335_v10 = vadd.f32 %v334_v6, %v333_v53  ;;  %v314_v14 = vmul.f32 %v286_v29, %v2567_v47  ;;  %v315_v25 = vmul.f32 %v287_v55, %v2569_v4  ;;  %v338_v12 = vsel %vm40_vm0, %v307_v42, 0.0 }
  0x4d   :  { %v365_v20 = vsel %vm40_vm0, %v304_v59, 0.0  ;;  %v316_v49 = vmul.f32 %v287_v55, %v2571_v57  ;;  %v317_v9 = vmul.f32 %v288_v3, %v2574_v48  ;;  %v364_v23 = vadd.f32 %v363_v27, %v362_v21 }
  0x4e   :  { %v337_v51 = vadd.f32 %v336_v17, %v335_v10  ;;  %v318_v28 = vmul.f32 %v288_v3, %v2579_v40  ;;  %v319_v62 = vmul.f32 %v289_v37, %v2581_v15  ;;  %v340_v6 = vsel %vm40_vm0, %v309_v35, 0.0 }
  0x4f   :  { %v367_v29 = vsel %vm40_vm0, %v306_v44, 0.0  ;;  %v320_v24 = vmul.f32 %v289_v37, %v2583_v41  ;;  %v321_v42 = vmul.f32 %v290_v45, %v2585_v16  ;;  %v366_v59 = vadd.f32 %v365_v20, %v364_v23 }
  0x50   :  { %v339_v53 = vadd.f32 %v338_v12, %v337_v51  ;;  %v322_v55 = vmul.f32 %v290_v45, %v2587_v39  ;;  %v342_v34 = vsel %vm40_vm0, %v311_v38, 0.0  ;;  %v344_v17 = vsel %vm40_vm0, %v313_v36, 0.0 }
  0x51   :  { %v369_v3 = vsel %vm40_vm0, %v308_v58, 0.0  ;;  %v346_v10 = vsel %vm40_vm0, %v315_v25, 0.0  ;;  %v348_v35 = vsel %vm40_vm0, %v317_v9, 0.0  ;;  %v368_v44 = vadd.f32 %v367_v29, %v366_v59 }
  0x52   :  { %v341_v27 = vadd.f32 %v340_v6, %v339_v53  ;;  %v350_v37 = vsel %vm40_vm0, %v319_v62, 0.0  ;;  %v371_v21 = vsel %vm40_vm0, %v310_v30, 0.0  ;;  %v393_v12 = vperm.slane %v2513_v54, 1 }
  0x53   :  { %v394_v45 = vperm.slane %v2519_v32, 1  ;;  %v352_v38 = vsel %vm40_vm0, %v321_v42, 0.0  ;;  %v370_v36 = vadd.f32 %v369_v3, %v368_v44  ;;  %v395_v58 = vperm.slane %v2521_v11, 1 }
  0x54   :  { %v343_v20 = vadd.f32 %v342_v34, %v341_v27  ;;  %v373_v51 = vsel %vm40_vm0, %v312_v5, 0.0  ;;  %v375_v25 = vsel %vm40_vm0, %v314_v14, 0.0  ;;  %v377_v9 = vsel %vm40_vm0, %v316_v49, 0.0 }
  0x55   :  { %v396_v23 = vperm.slane %v2529_v7, 1  ;;  %v372_v30 = vadd.f32 %v371_v21, %v370_v36  ;;  %vm385_vm2 = vcmp.eq.s32.totalorder %v2463_v60, 0  ;;  %v379_v6 = vsel %vm40_vm0, %v318_v28, 0.0 }
  0x56   :  { %v345_v62 = vadd.f32 %v344_v17, %v343_v20  ;;  %v397_v29 = vperm.slane %v2533_v8, 1  ;;  %v409_v42 = vmul.f32 %v393_v12, %v2513_v54  ;;  %v411_v53 = vmul.f32 %v394_v45, %v2519_v32 }
  0x57   :  { %v374_v5 = vadd.f32 %v373_v51, %v372_v30  ;;  %v381_v14 = vsel %vm40_vm0, %v320_v24, 0.0  ;;  %v413_v49 = vmul.f32 %v395_v58, %v2521_v11  ;;  %v383_v34 = vsel %vm40_vm0, %v322_v55, 0.0 }
  0x58   :  { %v347_v59 = vadd.f32 %v346_v10, %v345_v62  ;;  %v4053_v17 = vmov 0.0   ;;  %v398_v27 = vperm.slane %v2537_v13, 1  ;;  %v415_v28 = vmul.f32 %v396_v23, %v2529_v7 }
  0x59   :  { %v387_v3 = vsel %vm385_vm2, 0.001, %v4053_v17  ;;  %v376_v21 = vadd.f32 %v375_v25, %v374_v5  ;;  %v399_v20 = vperm.slane %v2541_v46, 1  ;;  %v400_v10 = vperm.slane %v2546_v22, 1 }
  0x5a   :  { %v349_v44 = vadd.f32 %v348_v35, %v347_v59  ;;  %v401_v36 = vperm.slane %v2552_v43, 1  ;;  %v417_v24 = vmul.f32 %v397_v29, %v2533_v8  ;;  %v441_v51 = vsel %vm40_vm0, %v409_v42, 0.0 }
  0x5b   :  { %v442_v55 = vsel %vm40_vm0, %v411_v53, 0.0  ;;  %v378_v30 = vadd.f32 %v377_v9, %v376_v21  ;;  %v444_v60 = vsel %vm40_vm0, %v413_v49, 0.0  ;;  %v410_v35 = vmul.f32 %v393_v12, %v2523_v26 }
  0x5c   :  { %v351_v62 = vadd.f32 %v350_v37, %v349_v44  ;;  %v443_v17 = vadd.f32 %v442_v55, %v441_v51  ;;  %v412_v25 = vmul.f32 %v394_v45, %v2525_v61  ;;  %v419_v59 = vmul.f32 %v398_v27, %v2537_v13  ;;  %v4133_v51 = vld [vmem:[#allocation5_spill] sm:$0xff] }
  0x5d   :  { %v446_v5 = vsel %vm40_vm0, %v415_v28, 0.0  ;;  %v380_v11 = vadd.f32 %v379_v6, %v378_v30  ;;  %v414_v8 = vmul.f32 %v395_v58, %v2527_v18  ;;  %v402_v53 = vperm.slane %v2556_v56, 1 }
  0x5e   :  { %v353_v7 = vadd.f32 %v352_v38, %v351_v62  ;;  %v445_v42 = vadd.f32 %v444_v60, %v443_v17  ;;  %v403_v37 = vperm.slane %v2560_v1, 1  ;;  %v421_v9 = vmul.f32 %v399_v20, %v2541_v46 }
  0x5f   :  { %v448_v49 = vsel %vm40_vm0, %v417_v24, 0.0  ;;  %v382_v12 = vadd.f32 %v381_v14, %v380_v11  ;;  %v416_v45 = vmul.f32 %v396_v23, %v2531_v50  ;;  %v418_v28 = vmul.f32 %v397_v29, %v4133_v51 }
  0x60   :  { %v389_v44 = vadd.f32 %v387_v3, %v353_v7  ;;  %v447_v21 = vadd.f32 %v446_v5, %v445_v42  ;;  %v423_v38 = vmul.f32 %v400_v10, %v2546_v22  ;;  %v450_v58 = vsel %vm40_vm0, %v419_v59, 0.0 }
  0x61   :  { %v472_v60 = vsel %vm40_vm0, %v410_v35, 0.0  ;;  %v384_v6 = vadd.f32 %v383_v34, %v382_v12  ;;  %v473_v11 = vsel %vm40_vm0, %v412_v25, 0.0  ;;  %v475_v7 = vsel %vm40_vm0, %v414_v8, 0.0 }
  0x62   :  { %391 = vst.msk [vmem:[%s4031_s1] sm:$0xff] %vm40_vm0, %v389_v44  ;;  %v449_v17 = vadd.f32 %v448_v49, %v447_v21  ;;  %v404_v23 = vperm.slane %v2564_v52, 1  ;;  %v425_v29 = vmul.f32 %v401_v36, %v2552_v43  ;;  %v452_v14 = vsel %vm40_vm0, %v421_v9, 0.0 }
  0x63   :  { %v474_v3 = vadd.f32 %v473_v11, %v472_v60  ;;  %392 = vst.msk [vmem:[%s4031_s1 + $0x8] sm:$0xff] %vm40_vm0, %v384_v6  ;;  %v405_v34 = vperm.slane %v2569_v4, 1  ;;  %v420_v24 = vmul.f32 %v398_v27, %v2539_v31  ;;  %v477_v62 = vsel %vm40_vm0, %v416_v45, 0.0 }
  0x64   :  { %v451_v55 = vadd.f32 %v450_v58, %v449_v17  ;;  %v406_v8 = vperm.slane %v2574_v48, 1  ;;  %v427_v30 = vmul.f32 %v402_v53, %v2556_v56  ;;  %v454_v35 = vsel %vm40_vm0, %v423_v38, 0.0 }
  0x65   :  { %v476_v25 = vadd.f32 %v475_v7, %v474_v3  ;;  %v407_v59 = vperm.slane %v2581_v15, 1  ;;  %v422_v5 = vmul.f32 %v399_v20, %v2543_v63  ;;  %v479_v9 = vsel %vm40_vm0, %v418_v28, 0.0 }
  0x66   :  { %v453_v42 = vadd.f32 %v452_v14, %v451_v55  ;;  %v408_v49 = vperm.slane %v2585_v16, 1  ;;  %v429_v27 = vmul.f32 %v403_v37, %v2560_v1  ;;  %v456_v12 = vsel %vm40_vm0, %v425_v29, 0.0 }
  0x67   :  { %v478_v44 = vadd.f32 %v477_v62, %v476_v25  ;;  %v424_v45 = vmul.f32 %v400_v10, %v2548_v33  ;;  %v426_v21 = vmul.f32 %v401_v36, %v2554_v19  ;;  %v481_v58 = vsel %vm40_vm0, %v420_v24, 0.0 }
  0x68   :  { %v455_v38 = vadd.f32 %v454_v35, %v453_v42  ;;  %v428_v60 = vmul.f32 %v402_v53, %v2558_v0  ;;  %v431_v20 = vmul.f32 %v404_v23, %v2564_v52  ;;  %v458_v28 = vsel %vm40_vm0, %v427_v30, 0.0 }
  0x69   :  { %v480_v6 = vadd.f32 %v479_v9, %v478_v44  ;;  %v430_v17 = vmul.f32 %v403_v37, %v2562_v2  ;;  %v432_v11 = vmul.f32 %v404_v23, %v2567_v47  ;;  %v483_v29 = vsel %vm40_vm0, %v422_v5, 0.0 }
  0x6a   :  { %v457_v7 = vadd.f32 %v456_v12, %v455_v38  ;;  %v433_v10 = vmul.f32 %v405_v34, %v2569_v4  ;;  %v435_v36 = vmul.f32 %v406_v8, %v2574_v48  ;;  %v460_v14 = vsel %vm40_vm0, %v429_v27, 0.0 }
  0x6b   :  { %v482_v3 = vadd.f32 %v481_v58, %v480_v6  ;;  %v434_v53 = vmul.f32 %v405_v34, %v2571_v57  ;;  %v436_v24 = vmul.f32 %v406_v8, %v2579_v40  ;;  %v485_v62 = vsel %vm40_vm0, %v424_v45, 0.0  ;;  %v4134_v58 = vld [vmem:[#allocation2_spill] sm:$0xff] }
  0x6c   :  { %v459_v55 = vadd.f32 %v458_v28, %v457_v7  ;;  %v437_v37 = vmul.f32 %v407_v59, %v2581_v15  ;;  %v439_v23 = vmul.f32 %v408_v49, %v2585_v16  ;;  %v462_v30 = vsel %vm40_vm0, %v431_v20, 0.0 }
  0x6d   :  { %v484_v35 = vadd.f32 %v483_v29, %v482_v3  ;;  %v438_v25 = vmul.f32 %v407_v59, %v2583_v41  ;;  %v440_v5 = vmul.f32 %v408_v49, %v2587_v39  ;;  %v487_v9 = vsel %vm40_vm0, %v426_v21, 0.0  ;;  %v4135_v29 = vld [vmem:[#allocation21_spill] sm:$0xff] }
  0x6e   :  { %v461_v42 = vadd.f32 %v460_v14, %v459_v55  ;;  %v464_v34 = vsel %vm40_vm0, %v433_v10, 0.0  ;;  %v466_v8 = vsel %vm40_vm0, %v435_v36, 0.0  ;;  %v489_v12 = vsel %vm40_vm0, %v428_v60, 0.0  ;;  %v4136_v60 = vld [vmem:[#allocation3_spill] sm:$0xff]  ;;  %v4137_v55 = vld [vmem:[#allocation4_spill] sm:$0xff] }
  0x6f   :  { %v486_v27 = vadd.f32 %v485_v62, %v484_v35  ;;  %v512_v45 = vperm.slane %v2513_v54, 2  ;;  %v513_v38 = vperm.slane %v2519_v32, 2  ;;  %v514_v20 = vperm.slane %v4134_v58, 2 }
  0x70   :  { %v463_v44 = vadd.f32 %v462_v30, %v461_v42  ;;  %v468_v59 = vsel %vm40_vm0, %v437_v37, 0.0  ;;  %v470_v49 = vsel %vm40_vm0, %v439_v23, 0.0  ;;  %v491_v21 = vsel %vm40_vm0, %v430_v17, 0.0 }
  0x71   :  { %v488_v28 = vadd.f32 %v487_v9, %v486_v27  ;;  %v493_v7 = vsel %vm40_vm0, %v432_v11, 0.0  ;;  %vm503_vm3 = vcmp.eq.s32.totalorder %v4135_v29, 1  ;;  %v515_v10 = vperm.slane %v4136_v60, 2 }
  0x72   :  { %v465_v6 = vadd.f32 %v464_v34, %v463_v44  ;;  %v495_v14 = vsel %vm40_vm0, %v434_v53, 0.0  ;;  %v497_v3 = vsel %vm40_vm0, %v436_v24, 0.0  ;;  %v516_v62 = vperm.slane %v4137_v55, 2 }
  0x73   :  { %v490_v36 = vadd.f32 %v489_v12, %v488_v28  ;;  %v528_v23 = vmul.f32 %v512_v45, %v2513_v54  ;;  %v530_v30 = vmul.f32 %v513_v38, %v2519_v32  ;;  %v532_v17 = vmul.f32 %v514_v20, %v4134_v58 }
  0x74   :  { %v467_v37 = vadd.f32 %v466_v8, %v465_v6  ;;  %v499_v11 = vsel %vm40_vm0, %v438_v25, 0.0  ;;  %v501_v42 = vsel %vm40_vm0, %v440_v5, 0.0  ;;  %v4138_v9 = vmov 0.0  }
  0x75   :  { %v492_v35 = vadd.f32 %v491_v21, %v490_v36  ;;  %v505_v34 = vsel %vm503_vm3, 0.001, %v4138_v9  ;;  %v517_v53 = vperm.slane %v2537_v13, 2  ;;  %v518_v24 = vperm.slane %v2541_v46, 2 }
  0x76   :  { %v469_v27 = vadd.f32 %v468_v59, %v467_v37  ;;  %v534_v8 = vmul.f32 %v515_v10, %v4136_v60  ;;  %v519_v44 = vperm.slane %v2546_v22, 2  ;;  %v520_v28 = vperm.slane %v2552_v43, 2 }
  0x77   :  { %v494_v12 = vadd.f32 %v493_v7, %v492_v35  ;;  %v536_v21 = vmul.f32 %v516_v62, %v4137_v55  ;;  %v560_v25 = vsel %vm40_vm0, %v528_v23, 0.0  ;;  %v561_v5 = vsel %vm40_vm0, %v530_v30, 0.0 }
  0x78   :  { %v471_v6 = vadd.f32 %v470_v49, %v469_v27  ;;  %v563_v59 = vsel %vm40_vm0, %v532_v17, 0.0  ;;  %v529_v37 = vmul.f32 %v512_v45, %v2523_v26  ;;  %v531_v9 = vmul.f32 %v513_v38, %v2525_v61 }
  0x79   :  { %v496_v36 = vadd.f32 %v495_v14, %v494_v12  ;;  %v562_v29 = vadd.f32 %v561_v5, %v560_v25  ;;  %v533_v35 = vmul.f32 %v514_v20, %v2527_v18  ;;  %v538_v60 = vmul.f32 %v517_v53, %v2537_v13 }
  0x7a   :  { %v507_v7 = vadd.f32 %v505_v34, %v471_v6  ;;  %v565_v55 = vsel %vm40_vm0, %v534_v8, 0.0  ;;  %v521_v23 = vperm.slane %v2556_v56, 2  ;;  %v522_v30 = vperm.slane %v2560_v1, 2 }
  0x7b   :  { %v498_v49 = vadd.f32 %v497_v3, %v496_v36  ;;  %v564_v27 = vadd.f32 %v563_v59, %v562_v29  ;;  %v523_v45 = vperm.slane %v2564_v52, 2  ;;  %v535_v38 = vmul.f32 %v515_v10, %v2531_v50 }
  0x7c   :  { %2182 = vst.msk [vmem:[%s4031_s1 + $0x10] sm:$0xff] %vm40_vm0, %v507_v7  ;;  %v540_v20 = vmul.f32 %v518_v24, %v2541_v46  ;;  %v567_v14 = vsel %vm40_vm0, %v536_v21, 0.0  ;;  %v537_v3 = vmul.f32 %v516_v62, %v4133_v51  ;;  %v542_v34 = vmul.f32 %v519_v44, %v2546_v22 }
  0x7d   :  { %v500_v17 = vadd.f32 %v499_v11, %v498_v49  ;;  %v566_v8 = vadd.f32 %v565_v55, %v564_v27  ;;  %v569_v29 = vsel %vm40_vm0, %v538_v60, 0.0  ;;  %v591_v12 = vsel %vm40_vm0, %v529_v37, 0.0 }
  0x7e   :  { %v592_v6 = vsel %vm40_vm0, %v531_v9, 0.0  ;;  %v594_v25 = vsel %vm40_vm0, %v533_v35, 0.0  ;;  %v524_v10 = vperm.slane %v2569_v4, 2  ;;  %v539_v11 = vmul.f32 %v517_v53, %v2539_v31 }
  0x7f   :  { %v502_v5 = vadd.f32 %v501_v42, %v500_v17  ;;  %v568_v59 = vadd.f32 %v567_v14, %v566_v8  ;;  %v593_v36 = vadd.f32 %v592_v6, %v591_v12  ;;  %v544_v62 = vmul.f32 %v520_v28, %v2552_v43 }
  0x80   :  { %v571_v21 = vsel %vm40_vm0, %v540_v20, 0.0  ;;  %v596_v55 = vsel %vm40_vm0, %v535_v38, 0.0  ;;  %v525_v60 = vperm.slane %v2574_v48, 2  ;;  %v526_v42 = vperm.slane %v2581_v15, 2 }
  0x81   :  { %2183 = vst.msk [vmem:[%s4031_s1 + $0x18] sm:$0xff] %vm40_vm0, %v502_v5  ;;  %v570_v9 = vadd.f32 %v569_v29, %v568_v59  ;;  %v595_v37 = vadd.f32 %v594_v25, %v593_v36  ;;  %v541_v7 = vmul.f32 %v518_v24, %v2543_v63  ;;  %v546_v53 = vmul.f32 %v521_v23, %v2556_v56 }
  0x82   :  { %v573_v35 = vsel %vm40_vm0, %v542_v34, 0.0  ;;  %v598_v49 = vsel %vm40_vm0, %v537_v3, 0.0  ;;  %v527_v27 = vperm.slane %v2585_v16, 2  ;;  %v543_v38 = vmul.f32 %v519_v44, %v2548_v33 }
  0x83   :  { %v572_v20 = vadd.f32 %v571_v21, %v570_v9  ;;  %v597_v14 = vadd.f32 %v596_v55, %v595_v37  ;;  %v545_v17 = vmul.f32 %v520_v28, %v2554_v19  ;;  %v548_v8 = vmul.f32 %v522_v30, %v2560_v1 }
  0x84   :  { %v575_v29 = vsel %vm40_vm0, %v544_v62, 0.0  ;;  %v600_v24 = vsel %vm40_vm0, %v539_v11, 0.0  ;;  %v547_v12 = vmul.f32 %v521_v23, %v2558_v0  ;;  %v549_v34 = vmul.f32 %v522_v30, %v2562_v2 }
  0x85   :  { %v574_v6 = vadd.f32 %v573_v35, %v572_v20  ;;  %v599_v3 = vadd.f32 %v598_v49, %v597_v14  ;;  %v550_v25 = vmul.f32 %v523_v45, %v2564_v52  ;;  %v551_v44 = vmul.f32 %v523_v45, %v2567_v47 }
  0x86   :  { %v577_v5 = vsel %vm40_vm0, %v546_v53, 0.0  ;;  %v602_v28 = vsel %vm40_vm0, %v541_v7, 0.0  ;;  %v552_v59 = vmul.f32 %v524_v10, %v2569_v4  ;;  %v554_v36 = vmul.f32 %v525_v60, %v2574_v48 }
  0x87   :  { %v576_v62 = vadd.f32 %v575_v29, %v574_v6  ;;  %v601_v11 = vadd.f32 %v600_v24, %v599_v3  ;;  %v553_v23 = vmul.f32 %v524_v10, %v2571_v57  ;;  %v555_v30 = vmul.f32 %v525_v60, %v2579_v40 }
  0x88   :  { %v579_v21 = vsel %vm40_vm0, %v548_v8, 0.0  ;;  %v604_v55 = vsel %vm40_vm0, %v543_v38, 0.0  ;;  %v556_v45 = vmul.f32 %v526_v42, %v2581_v15  ;;  %v558_v9 = vmul.f32 %v527_v27, %v2585_v16 }
  0x89   :  { %v578_v37 = vadd.f32 %v577_v5, %v576_v62  ;;  %v603_v7 = vadd.f32 %v602_v28, %v601_v11  ;;  %v557_v53 = vmul.f32 %v526_v42, %v2583_v41  ;;  %v559_v35 = vmul.f32 %v527_v27, %v2587_v39 }
  0x8a   :  { %v581_v49 = vsel %vm40_vm0, %v550_v25, 0.0  ;;  %v606_v10 = vsel %vm40_vm0, %v545_v17, 0.0  ;;  %v583_v60 = vsel %vm40_vm0, %v552_v59, 0.0  ;;  %v585_v14 = vsel %vm40_vm0, %v554_v36, 0.0  ;;  %v4139_v59 = vld [vmem:[#allocation3_spill] sm:$0xff] }
  0x8b   :  { %v580_v20 = vadd.f32 %v579_v21, %v578_v37  ;;  %v605_v38 = vadd.f32 %v604_v55, %v603_v7  ;;  %v608_v8 = vsel %vm40_vm0, %v547_v12, 0.0  ;;  %v631_v29 = vperm.slane %v2513_v54, 3  ;;  %v4140_v21 = vld [vmem:[#allocation21_spill] sm:$0xff]  ;;  %v4141_v55 = vld [vmem:[#allocation4_spill] sm:$0xff] }
  0x8c   :  { %v632_v24 = vperm.slane %v2519_v32, 3  ;;  %v633_v42 = vperm.slane %v4134_v58, 3  ;;  %v587_v27 = vsel %vm40_vm0, %v556_v45, 0.0  ;;  %v589_v3 = vsel %vm40_vm0, %v558_v9, 0.0 }
  0x8d   :  { %v582_v6 = vadd.f32 %v581_v49, %v580_v20  ;;  %v607_v17 = vadd.f32 %v606_v10, %v605_v38  ;;  %v610_v25 = vsel %vm40_vm0, %v549_v34, 0.0  ;;  %v612_v5 = vsel %vm40_vm0, %v551_v44, 0.0 }
  0x8e   :  { %v614_v28 = vsel %vm40_vm0, %v553_v23, 0.0  ;;  %v634_v12 = vperm.slane %v4139_v59, 3  ;;  %v616_v11 = vsel %vm40_vm0, %v555_v30, 0.0  ;;  %vm622_vm4 = vcmp.eq.s32.totalorder %v4140_v21, 2 }
  0x8f   :  { %v584_v36 = vadd.f32 %v583_v60, %v582_v6  ;;  %v609_v62 = vadd.f32 %v608_v8, %v607_v17  ;;  %v635_v37 = vperm.slane %v4141_v55, 3  ;;  %v647_v45 = vmul.f32 %v631_v29, %v2513_v54 }
  0x90   :  { %v649_v9 = vmul.f32 %v632_v24, %v2519_v32  ;;  %v651_v34 = vmul.f32 %v633_v42, %v4134_v58  ;;  %v618_v23 = vsel %vm40_vm0, %v557_v53, 0.0  ;;  %v620_v49 = vsel %vm40_vm0, %v559_v35, 0.0 }
  0x91   :  { %v586_v7 = vadd.f32 %v585_v14, %v584_v36  ;;  %v611_v44 = vadd.f32 %v610_v25, %v609_v62  ;;  %v4142_v10 = vmov 0.0   ;;  %v636_v30 = vperm.slane %v2537_v13, 3 }
  0x92   :  { %v624_v20 = vsel %vm622_vm4, 0.001, %v4142_v10  ;;  %v637_v60 = vperm.slane %v2541_v46, 3  ;;  %v653_v38 = vmul.f32 %v634_v12, %v4139_v59  ;;  %v638_v17 = vperm.slane %v2546_v22, 3 }
  0x93   :  { %v588_v8 = vadd.f32 %v587_v27, %v586_v7  ;;  %v613_v6 = vadd.f32 %v612_v5, %v611_v44  ;;  %v639_v21 = vperm.slane %v2552_v43, 3  ;;  %v655_v14 = vmul.f32 %v635_v37, %v4141_v55 }
  0x94   :  { %v679_v53 = vsel %vm40_vm0, %v647_v45, 0.0  ;;  %v680_v35 = vsel %vm40_vm0, %v649_v9, 0.0  ;;  %v682_v25 = vsel %vm40_vm0, %v651_v34, 0.0  ;;  %v648_v10 = vmul.f32 %v631_v29, %v2523_v26 }
  0x95   :  { %v590_v36 = vadd.f32 %v589_v3, %v588_v8  ;;  %v615_v62 = vadd.f32 %v614_v28, %v613_v6  ;;  %v681_v58 = vadd.f32 %v680_v35, %v679_v53  ;;  %v650_v27 = vmul.f32 %v632_v24, %v2525_v61 }
  0x96   :  { %v652_v5 = vmul.f32 %v633_v42, %v2527_v18  ;;  %v657_v7 = vmul.f32 %v636_v30, %v2537_v13  ;;  %v684_v44 = vsel %vm40_vm0, %v653_v38, 0.0  ;;  %v640_v45 = vperm.slane %v2556_v56, 3 }
  0x97   :  { %v617_v55 = vadd.f32 %v616_v11, %v615_v62  ;;  %v626_v59 = vadd.f32 %v624_v20, %v590_v36  ;;  %v683_v9 = vadd.f32 %v682_v25, %v681_v58  ;;  %v641_v34 = vperm.slane %v2560_v1, 3 }
  0x98   :  { %v654_v3 = vmul.f32 %v634_v12, %v2531_v50  ;;  %v659_v29 = vmul.f32 %v637_v60, %v2541_v46  ;;  %v686_v28 = vsel %vm40_vm0, %v655_v14, 0.0  ;;  %v656_v42 = vmul.f32 %v635_v37, %v4133_v51 }
  0x99   :  { %v619_v24 = vadd.f32 %v618_v23, %v617_v55  ;;  %2184 = vst.msk [vmem:[%s4031_s1 + $0x20] sm:$0xff] %vm40_vm0, %v626_v59  ;;  %v661_v11 = vmul.f32 %v638_v17, %v2546_v22  ;;  %v685_v20 = vadd.f32 %v684_v44, %v683_v9  ;;  %v688_v58 = vsel %vm40_vm0, %v657_v7, 0.0 }
  0x9a   :  { %v710_v38 = vsel %vm40_vm0, %v648_v10, 0.0  ;;  %v711_v12 = vsel %vm40_vm0, %v650_v27, 0.0  ;;  %v713_v8 = vsel %vm40_vm0, %v652_v5, 0.0  ;;  %v642_v55 = vperm.slane %v2564_v52, 3 }
  0x9b   :  { %v621_v6 = vadd.f32 %v620_v49, %v619_v24  ;;  %v687_v23 = vadd.f32 %v686_v28, %v685_v20  ;;  %v712_v14 = vadd.f32 %v711_v12, %v710_v38  ;;  %v658_v59 = vmul.f32 %v636_v30, %v2539_v31 }
  0x9c   :  { %v663_v37 = vmul.f32 %v639_v21, %v2552_v43  ;;  %v690_v53 = vsel %vm40_vm0, %v659_v29, 0.0  ;;  %v715_v35 = vsel %vm40_vm0, %v654_v3, 0.0  ;;  %v643_v10 = vperm.slane %v2569_v4, 3 }
  0x9d   :  { %2185 = vst.msk [vmem:[%s4031_s1 + $0x28] sm:$0xff] %vm40_vm0, %v621_v6  ;;  %v644_v49 = vperm.slane %v2574_v48, 3  ;;  %v689_v25 = vadd.f32 %v688_v58, %v687_v23  ;;  %v714_v36 = vadd.f32 %v713_v8, %v712_v14  ;;  %v660_v62 = vmul.f32 %v637_v60, %v2543_v63 }
  0x9e   :  { %v665_v30 = vmul.f32 %v640_v45, %v2556_v56  ;;  %v692_v27 = vsel %vm40_vm0, %v661_v11, 0.0  ;;  %v717_v5 = vsel %vm40_vm0, %v656_v42, 0.0  ;;  %v645_v7 = vperm.slane %v2581_v15, 3 }
  0x9f   :  { %v646_v44 = vperm.slane %v2585_v16, 3  ;;  %v691_v9 = vadd.f32 %v690_v53, %v689_v25  ;;  %v716_v3 = vadd.f32 %v715_v35, %v714_v36  ;;  %v662_v29 = vmul.f32 %v638_v17, %v2548_v33 }
  0xa0   :  { %v667_v28 = vmul.f32 %v641_v34, %v2560_v1  ;;  %v694_v24 = vsel %vm40_vm0, %v663_v37, 0.0  ;;  %v719_v60 = vsel %vm40_vm0, %v658_v59, 0.0  ;;  %v664_v20 = vmul.f32 %v639_v21, %v2554_v19 }
  0xa1   :  { %v666_v11 = vmul.f32 %v640_v45, %v2558_v0  ;;  %v693_v58 = vadd.f32 %v692_v27, %v691_v9  ;;  %v718_v42 = vadd.f32 %v717_v5, %v716_v3  ;;  %v668_v38 = vmul.f32 %v641_v34, %v2562_v2 }
  0xa2   :  { %v669_v12 = vmul.f32 %v642_v55, %v2564_v52  ;;  %v696_v8 = vsel %vm40_vm0, %v665_v30, 0.0  ;;  %v721_v17 = vsel %vm40_vm0, %v660_v62, 0.0  ;;  %v670_v6 = vmul.f32 %v642_v55, %v2567_v47 }
  0xa3   :  { %v671_v23 = vmul.f32 %v643_v10, %v2569_v4  ;;  %v695_v14 = vadd.f32 %v694_v24, %v693_v58  ;;  %v720_v59 = vadd.f32 %v719_v60, %v718_v42  ;;  %v672_v21 = vmul.f32 %v643_v10, %v2571_v57  ;;  %v4143_v42 = vld [vmem:[#allocation2_spill] sm:$0xff] }
  0xa4   :  { %v673_v45 = vmul.f32 %v644_v49, %v2574_v48  ;;  %v698_v37 = vsel %vm40_vm0, %v667_v28, 0.0  ;;  %v723_v34 = vsel %vm40_vm0, %v662_v29, 0.0  ;;  %v674_v53 = vmul.f32 %v644_v49, %v2579_v40 }
  0xa5   :  { %v675_v35 = vmul.f32 %v645_v7, %v2581_v15  ;;  %v697_v25 = vadd.f32 %v696_v8, %v695_v14  ;;  %v722_v36 = vadd.f32 %v721_v17, %v720_v59  ;;  %v676_v55 = vmul.f32 %v645_v7, %v2583_v41  ;;  %v4144_v17 = vld [vmem:[#allocation3_spill] sm:$0xff] }
  0xa6   :  { %v677_v62 = vmul.f32 %v646_v44, %v2585_v16  ;;  %v700_v30 = vsel %vm40_vm0, %v669_v12, 0.0  ;;  %v725_v10 = vsel %vm40_vm0, %v664_v20, 0.0  ;;  %v678_v27 = vmul.f32 %v646_v44, %v2587_v39 }
  0xa7   :  { %v699_v5 = vadd.f32 %v698_v37, %v697_v25  ;;  %v702_v9 = vsel %vm40_vm0, %v671_v23, 0.0  ;;  %v724_v3 = vadd.f32 %v723_v34, %v722_v36  ;;  %v704_v49 = vsel %vm40_vm0, %v673_v45, 0.0  ;;  %v4145_v45 = vld [vmem:[#allocation21_spill] sm:$0xff]  ;;  %v4146_v34 = vld [vmem:[#allocation4_spill] sm:$0xff] }
  0xa8   :  { %v727_v29 = vsel %vm40_vm0, %v666_v11, 0.0  ;;  %v750_v28 = vperm.slane %v2513_v54, 4  ;;  %v751_v7 = vperm.slane %v2519_v32, 4  ;;  %v706_v60 = vsel %vm40_vm0, %v675_v35, 0.0 }
  0xa9   :  { %v701_v24 = vadd.f32 %v700_v30, %v699_v5  ;;  %v726_v58 = vadd.f32 %v725_v10, %v724_v3  ;;  %v752_v20 = vperm.slane %v4143_v42, 4  ;;  %v708_v44 = vsel %vm40_vm0, %v677_v62, 0.0 }
  0xaa   :  { %v729_v12 = vsel %vm40_vm0, %v668_v38, 0.0  ;;  %v731_v8 = vsel %vm40_vm0, %v670_v6, 0.0  ;;  %v753_v23 = vperm.slane %v4144_v17, 4  ;;  %v733_v59 = vsel %vm40_vm0, %v672_v21, 0.0 }
  0xab   :  { %v703_v14 = vadd.f32 %v702_v9, %v701_v24  ;;  %v728_v11 = vadd.f32 %v727_v29, %v726_v58  ;;  %vm741_vm5 = vcmp.eq.s32.totalorder %v4145_v45, 3  ;;  %v735_v37 = vsel %vm40_vm0, %v674_v53, 0.0 }
  0xac   :  { %v754_v35 = vperm.slane %v4146_v34, 4  ;;  %v766_v25 = vmul.f32 %v750_v28, %v2513_v54  ;;  %v768_v36 = vmul.f32 %v751_v7, %v2519_v32  ;;  %v737_v6 = vsel %vm40_vm0, %v676_v55, 0.0 }
  0xad   :  { %v705_v62 = vadd.f32 %v704_v49, %v703_v14  ;;  %v730_v38 = vadd.f32 %v729_v12, %v728_v11  ;;  %v770_v30 = vmul.f32 %v752_v20, %v4143_v42  ;;  %v739_v10 = vsel %vm40_vm0, %v678_v27, 0.0 }
  0xae   :  { %v4147_v5 = vmov 0.0   ;;  %v755_v9 = vperm.slane %v2537_v13, 4  ;;  %v772_v53 = vmul.f32 %v753_v23, %v4144_v17  ;;  %v756_v24 = vperm.slane %v2541_v46, 4 }
  0xaf   :  { %v743_v21 = vsel %vm741_vm5, 0.001, %v4147_v5  ;;  %v707_v3 = vadd.f32 %v706_v60, %v705_v62  ;;  %v732_v29 = vadd.f32 %v731_v8, %v730_v38  ;;  %v757_v58 = vperm.slane %v2546_v22, 4 }
  0xb0   :  { %v758_v49 = vperm.slane %v2552_v43, 4  ;;  %v774_v55 = vmul.f32 %v754_v35, %v4146_v34  ;;  %v798_v12 = vsel %vm40_vm0, %v766_v25, 0.0  ;;  %v799_v27 = vsel %vm40_vm0, %v768_v36, 0.0 }
  0xb1   :  { %v709_v14 = vadd.f32 %v708_v44, %v707_v3  ;;  %v734_v11 = vadd.f32 %v733_v59, %v732_v29  ;;  %v800_v5 = vadd.f32 %v799_v27, %v798_v12  ;;  %v801_v45 = vsel %vm40_vm0, %v770_v30, 0.0 }
  0xb2   :  { %v767_v60 = vmul.f32 %v750_v28, %v2523_v26  ;;  %v769_v8 = vmul.f32 %v751_v7, %v2525_v61  ;;  %v776_v62 = vmul.f32 %v755_v9, %v2537_v13  ;;  %v803_v38 = vsel %vm40_vm0, %v772_v53, 0.0 }
  0xb3   :  { %v736_v17 = vadd.f32 %v735_v37, %v734_v11  ;;  %v745_v42 = vadd.f32 %v743_v21, %v709_v14  ;;  %v771_v34 = vmul.f32 %v752_v20, %v2527_v18  ;;  %v802_v25 = vadd.f32 %v801_v45, %v800_v5 }
  0xb4   :  { %v759_v36 = vperm.slane %v2556_v56, 4  ;;  %v773_v44 = vmul.f32 %v753_v23, %v2531_v50  ;;  %v778_v59 = vmul.f32 %v756_v24, %v2541_v46  ;;  %v805_v30 = vsel %vm40_vm0, %v774_v55, 0.0 }
  0xb5   :  { %v738_v28 = vadd.f32 %v737_v6, %v736_v17  ;;  %2186 = vst.msk [vmem:[%s4031_s1 + $0x30] sm:$0xff] %vm40_vm0, %v745_v42  ;;  %v760_v7 = vperm.slane %v2560_v1, 4  ;;  %v775_v37 = vmul.f32 %v754_v35, %v4133_v51  ;;  %v804_v20 = vadd.f32 %v803_v38, %v802_v25 }
  0xb6   :  { %v780_v45 = vmul.f32 %v757_v58, %v2546_v22  ;;  %v807_v5 = vsel %vm40_vm0, %v776_v62, 0.0  ;;  %v829_v23 = vsel %vm40_vm0, %v767_v60, 0.0  ;;  %v830_v21 = vsel %vm40_vm0, %v769_v8, 0.0 }
  0xb7   :  { %v740_v53 = vadd.f32 %v739_v10, %v738_v28  ;;  %v806_v17 = vadd.f32 %v805_v30, %v804_v20  ;;  %v831_v6 = vadd.f32 %v830_v21, %v829_v23  ;;  %v832_v3 = vsel %vm40_vm0, %v771_v34, 0.0 }
  0xb8   :  { %v777_v42 = vmul.f32 %v755_v9, %v2539_v31  ;;  %v782_v29 = vmul.f32 %v758_v49, %v2552_v43  ;;  %v809_v35 = vsel %vm40_vm0, %v778_v59, 0.0  ;;  %v834_v55 = vsel %vm40_vm0, %v773_v44, 0.0 }
  0xb9   :  { %2187 = vst.msk [vmem:[%s4031_s1 + $0x38] sm:$0xff] %vm40_vm0, %v740_v53  ;;  %v761_v12 = vperm.slane %v2564_v52, 4  ;;  %v808_v10 = vadd.f32 %v807_v5, %v806_v17  ;;  %v833_v27 = vadd.f32 %v832_v3, %v831_v6  ;;  %v779_v14 = vmul.f32 %v756_v24, %v2543_v63 }
  0xba   :  { %v784_v34 = vmul.f32 %v759_v36, %v2556_v56  ;;  %v811_v9 = vsel %vm40_vm0, %v780_v45, 0.0  ;;  %v836_v11 = vsel %vm40_vm0, %v775_v37, 0.0  ;;  %v762_v60 = vperm.slane %v2569_v4, 4 }
  0xbb   :  { %v763_v8 = vperm.slane %v2574_v48, 4  ;;  %v810_v62 = vadd.f32 %v809_v35, %v808_v10  ;;  %v835_v38 = vadd.f32 %v834_v55, %v833_v27  ;;  %v781_v25 = vmul.f32 %v757_v58, %v2548_v33 }
  0xbc   :  { %v786_v44 = vmul.f32 %v760_v7, %v2560_v1  ;;  %v813_v59 = vsel %vm40_vm0, %v782_v29, 0.0  ;;  %v838_v24 = vsel %vm40_vm0, %v777_v42, 0.0  ;;  %v764_v30 = vperm.slane %v2581_v15, 4 }
  0xbd   :  { %v765_v28 = vperm.slane %v2585_v16, 4  ;;  %v812_v20 = vadd.f32 %v811_v9, %v810_v62  ;;  %v837_v37 = vadd.f32 %v836_v11, %v835_v38  ;;  %v783_v45 = vmul.f32 %v758_v49, %v2554_v19 }
  0xbe   :  { %v788_v5 = vmul.f32 %v761_v12, %v2564_v52  ;;  %v815_v23 = vsel %vm40_vm0, %v784_v34, 0.0  ;;  %v840_v58 = vsel %vm40_vm0, %v779_v14, 0.0  ;;  %v785_v21 = vmul.f32 %v759_v36, %v2558_v0 }
  0xbf   :  { %v787_v53 = vmul.f32 %v760_v7, %v2562_v2  ;;  %v814_v17 = vadd.f32 %v813_v59, %v812_v20  ;;  %v839_v6 = vadd.f32 %v838_v24, %v837_v37  ;;  %v789_v3 = vmul.f32 %v761_v12, %v2567_v47  ;;  %v4148_v37 = vld [vmem:[#allocation2_spill] sm:$0xff] }
  0xc0   :  { %v790_v42 = vmul.f32 %v762_v60, %v2569_v4  ;;  %v817_v29 = vsel %vm40_vm0, %v786_v44, 0.0  ;;  %v842_v49 = vsel %vm40_vm0, %v781_v25, 0.0  ;;  %v791_v35 = vmul.f32 %v762_v60, %v2571_v57 }
  0xc1   :  { %v792_v55 = vmul.f32 %v763_v8, %v2574_v48  ;;  %v816_v10 = vadd.f32 %v815_v23, %v814_v17  ;;  %v841_v27 = vadd.f32 %v840_v58, %v839_v6  ;;  %v794_v36 = vmul.f32 %v764_v30, %v2581_v15  ;;  %v4149_v17 = vld [vmem:[#allocation21_spill] sm:$0xff] }
  0xc2   :  { %v796_v7 = vmul.f32 %v765_v28, %v2585_v16  ;;  %v819_v14 = vsel %vm40_vm0, %v788_v5, 0.0  ;;  %v844_v12 = vsel %vm40_vm0, %v783_v45, 0.0  ;;  %v793_v34 = vmul.f32 %v763_v8, %v2579_v40 }
  0xc3   :  { %v795_v9 = vmul.f32 %v764_v30, %v2583_v41  ;;  %v818_v11 = vadd.f32 %v817_v29, %v816_v10  ;;  %v843_v62 = vadd.f32 %v842_v49, %v841_v27  ;;  %v797_v60 = vmul.f32 %v765_v28, %v2587_v39  ;;  %v4151_v49 = vld [vmem:[#allocation4_spill] sm:$0xff] }
  0xc4   :  { %v821_v38 = vsel %vm40_vm0, %v790_v42, 0.0  ;;  %v846_v25 = vsel %vm40_vm0, %v785_v21, 0.0  ;;  %v869_v44 = vperm.slane %v2513_v54, 5  ;;  %v870_v20 = vperm.slane %v2519_v32, 5  ;;  %v4150_v21 = vld [vmem:[#allocation3_spill] sm:$0xff] }
  0xc5   :  { %v820_v59 = vadd.f32 %v819_v14, %v818_v11  ;;  %v845_v24 = vadd.f32 %v844_v12, %v843_v62  ;;  %v871_v45 = vperm.slane %v4148_v37, 5  ;;  %v823_v8 = vsel %vm40_vm0, %v792_v55, 0.0 }
  0xc6   :  { %v825_v30 = vsel %vm40_vm0, %v794_v36, 0.0  ;;  %v827_v5 = vsel %vm40_vm0, %v796_v7, 0.0  ;;  %v848_v28 = vsel %vm40_vm0, %v787_v53, 0.0  ;;  %vm860_vm6 = vcmp.eq.s32.totalorder %v4149_v17, 4 }
  0xc7   :  { %v822_v23 = vadd.f32 %v821_v38, %v820_v59  ;;  %v847_v58 = vadd.f32 %v846_v25, %v845_v24  ;;  %v872_v6 = vperm.slane %v4150_v21, 5  ;;  %v850_v42 = vsel %vm40_vm0, %v789_v3, 0.0 }
  0xc8   :  { %v852_v29 = vsel %vm40_vm0, %v791_v35, 0.0  ;;  %v873_v10 = vperm.slane %v4151_v49, 5  ;;  %v885_v55 = vmul.f32 %v869_v44, %v2513_v54  ;;  %v887_v7 = vmul.f32 %v870_v20, %v2519_v32 }
  0xc9   :  { %v824_v27 = vadd.f32 %v823_v8, %v822_v23  ;;  %v849_v36 = vadd.f32 %v848_v28, %v847_v58  ;;  %v889_v53 = vmul.f32 %v871_v45, %v4148_v37  ;;  %v854_v14 = vsel %vm40_vm0, %v793_v34, 0.0 }
  0xca   :  { %v856_v12 = vsel %vm40_vm0, %v795_v9, 0.0  ;;  %v858_v11 = vsel %vm40_vm0, %v797_v60, 0.0  ;;  %v4152_v62 = vmov 0.0   ;;  %v874_v25 = vperm.slane %v2537_v13, 5 }
  0xcb   :  { %v862_v3 = vsel %vm860_vm6, 0.001, %v4152_v62  ;;  %v826_v38 = vadd.f32 %v825_v30, %v824_v27  ;;  %v851_v35 = vadd.f32 %v850_v42, %v849_v36  ;;  %v891_v59 = vmul.f32 %v872_v6, %v4150_v21 }
  0xcc   :  { %v875_v24 = vperm.slane %v2541_v46, 5  ;;  %v876_v8 = vperm.slane %v2546_v22, 5  ;;  %v893_v28 = vmul.f32 %v873_v10, %v4151_v49  ;;  %v917_v34 = vsel %vm40_vm0, %v885_v55, 0.0 }
  0xcd   :  { %v828_v23 = vadd.f32 %v827_v5, %v826_v38  ;;  %v853_v9 = vadd.f32 %v852_v29, %v851_v35  ;;  %v918_v60 = vsel %vm40_vm0, %v887_v7, 0.0  ;;  %v920_v58 = vsel %vm40_vm0, %v889_v53, 0.0 }
  0xce   :  { %v886_v30 = vmul.f32 %v869_v44, %v2523_v26  ;;  %v888_v42 = vmul.f32 %v870_v20, %v2525_v61  ;;  %v890_v27 = vmul.f32 %v871_v45, %v2527_v18  ;;  %v919_v36 = vadd.f32 %v918_v60, %v917_v34 }
  0xcf   :  { %v855_v62 = vadd.f32 %v854_v14, %v853_v9  ;;  %v864_v17 = vadd.f32 %v862_v3, %v828_v23  ;;  %v895_v21 = vmul.f32 %v874_v25, %v2537_v13  ;;  %v922_v49 = vsel %vm40_vm0, %v891_v59, 0.0 }
  0xd0   :  { %v877_v5 = vperm.slane %v2552_v43, 5  ;;  %v878_v29 = vperm.slane %v2556_v56, 5  ;;  %v879_v55 = vperm.slane %v2560_v1, 5  ;;  %v921_v7 = vadd.f32 %v920_v58, %v919_v36 }
  0xd1   :  { %v857_v53 = vadd.f32 %v856_v12, %v855_v62  ;;  %2188 = vst.msk [vmem:[%s4031_s1 + $0x40] sm:$0xff] %vm40_vm0, %v864_v17  ;;  %v892_v44 = vmul.f32 %v872_v6, %v2531_v50  ;;  %v897_v20 = vmul.f32 %v875_v24, %v2541_v46  ;;  %v924_v45 = vsel %vm40_vm0, %v893_v28, 0.0 }
  0xd2   :  { %v894_v14 = vmul.f32 %v873_v10, %v4133_v51  ;;  %v899_v3 = vmul.f32 %v876_v8, %v2546_v22  ;;  %v923_v38 = vadd.f32 %v922_v49, %v921_v7  ;;  %v948_v35 = vsel %vm40_vm0, %v886_v30, 0.0 }
  0xd3   :  { %v859_v59 = vadd.f32 %v858_v11, %v857_v53  ;;  %v926_v12 = vsel %vm40_vm0, %v895_v21, 0.0  ;;  %v949_v62 = vsel %vm40_vm0, %v888_v42, 0.0  ;;  %v951_v17 = vsel %vm40_vm0, %v890_v27, 0.0 }
  0xd4   :  { %v880_v6 = vperm.slane %v2564_v52, 5  ;;  %v881_v34 = vperm.slane %v2569_v4, 5  ;;  %v925_v23 = vadd.f32 %v924_v45, %v923_v38  ;;  %v950_v28 = vadd.f32 %v949_v62, %v948_v35 }
  0xd5   :  { %2189 = vst.msk [vmem:[%s4031_s1 + $0x48] sm:$0xff] %vm40_vm0, %v859_v59  ;;  %v896_v49 = vmul.f32 %v874_v25, %v2539_v31  ;;  %v901_v10 = vmul.f32 %v877_v5, %v2552_v43  ;;  %v928_v21 = vsel %vm40_vm0, %v897_v20, 0.0  ;;  %v953_v11 = vsel %vm40_vm0, %v892_v44, 0.0 }
  0xd6   :  { %v882_v9 = vperm.slane %v2574_v48, 5  ;;  %v883_v60 = vperm.slane %v2581_v15, 5  ;;  %v927_v58 = vadd.f32 %v926_v12, %v925_v23  ;;  %v952_v30 = vadd.f32 %v951_v17, %v950_v28 }
  0xd7   :  { %v898_v42 = vmul.f32 %v875_v24, %v2543_v63  ;;  %v903_v27 = vmul.f32 %v878_v29, %v2556_v56  ;;  %v930_v36 = vsel %vm40_vm0, %v899_v3, 0.0  ;;  %v955_v25 = vsel %vm40_vm0, %v894_v14, 0.0 }
  0xd8   :  { %v884_v7 = vperm.slane %v2585_v16, 5  ;;  %v900_v53 = vmul.f32 %v876_v8, %v2548_v33  ;;  %v929_v20 = vadd.f32 %v928_v21, %v927_v58  ;;  %v954_v44 = vadd.f32 %v953_v11, %v952_v30 }
  0xd9   :  { %v902_v45 = vmul.f32 %v877_v5, %v2554_v19  ;;  %v905_v38 = vmul.f32 %v879_v55, %v2560_v1  ;;  %v932_v35 = vsel %vm40_vm0, %v901_v10, 0.0  ;;  %v957_v24 = vsel %vm40_vm0, %v896_v49, 0.0 }
  0xda   :  { %v904_v59 = vmul.f32 %v878_v29, %v2558_v0  ;;  %v906_v3 = vmul.f32 %v879_v55, %v2562_v2  ;;  %v931_v12 = vadd.f32 %v930_v36, %v929_v20  ;;  %v956_v14 = vadd.f32 %v955_v25, %v954_v44 }
  0xdb   :  { %v907_v62 = vmul.f32 %v880_v6, %v2564_v52  ;;  %v908_v8 = vmul.f32 %v880_v6, %v2567_v47  ;;  %v934_v17 = vsel %vm40_vm0, %v903_v27, 0.0  ;;  %v959_v5 = vsel %vm40_vm0, %v898_v42, 0.0 }
  0xdc   :  { %v909_v23 = vmul.f32 %v881_v34, %v2569_v4  ;;  %v911_v28 = vmul.f32 %v882_v9, %v2574_v48  ;;  %v933_v10 = vadd.f32 %v932_v35, %v931_v12  ;;  %v958_v49 = vadd.f32 %v957_v24, %v956_v14 }
  0xdd   :  { %v910_v29 = vmul.f32 %v881_v34, %v2571_v57  ;;  %v912_v55 = vmul.f32 %v882_v9, %v2579_v40  ;;  %v936_v21 = vsel %vm40_vm0, %v905_v38, 0.0  ;;  %v961_v11 = vsel %vm40_vm0, %v900_v53, 0.0 }
  0xde   :  { %v913_v6 = vmul.f32 %v883_v60, %v2581_v15  ;;  %v915_v58 = vmul.f32 %v884_v7, %v2585_v16  ;;  %v935_v30 = vadd.f32 %v934_v17, %v933_v10  ;;  %v960_v42 = vadd.f32 %v959_v5, %v958_v49 }
  0xdf   :  { %v914_v27 = vmul.f32 %v883_v60, %v2583_v41  ;;  %v916_v36 = vmul.f32 %v884_v7, %v2587_v39  ;;  %v938_v25 = vsel %vm40_vm0, %v907_v62, 0.0  ;;  %v963_v34 = vsel %vm40_vm0, %v902_v45, 0.0 }
  0xe0   :  { %v937_v20 = vadd.f32 %v936_v21, %v935_v30  ;;  %v940_v9 = vsel %vm40_vm0, %v909_v23, 0.0  ;;  %v942_v44 = vsel %vm40_vm0, %v911_v28, 0.0  ;;  %v962_v53 = vadd.f32 %v961_v11, %v960_v42  ;;  %v4153_v23 = vld [vmem:[#allocation3_spill] sm:$0xff]  ;;  %v4154_v21 = vld [vmem:[#allocation21_spill] sm:$0xff]  ;;  %v4155_v11 = vld [vmem:[#allocation4_spill] sm:$0xff] }
  0xe1   :  { %v965_v38 = vsel %vm40_vm0, %v904_v59, 0.0  ;;  %v988_v35 = vperm.slane %v2513_v54, 6  ;;  %v989_v24 = vperm.slane %v2519_v32, 6  ;;  %v990_v60 = vperm.slane %v4148_v37, 6 }
  0xe2   :  { %v939_v12 = vadd.f32 %v938_v25, %v937_v20  ;;  %v944_v7 = vsel %vm40_vm0, %v913_v6, 0.0  ;;  %v946_v14 = vsel %vm40_vm0, %v915_v58, 0.0  ;;  %v964_v45 = vadd.f32 %v963_v34, %v962_v53 }
  0xe3   :  { %v967_v62 = vsel %vm40_vm0, %v906_v3, 0.0  ;;  %v969_v17 = vsel %vm40_vm0, %v908_v8, 0.0  ;;  %v971_v5 = vsel %vm40_vm0, %v910_v29, 0.0  ;;  %v991_v59 = vperm.slane %v4153_v23, 6 }
  0xe4   :  { %v941_v28 = vadd.f32 %v940_v9, %v939_v12  ;;  %v966_v10 = vadd.f32 %v965_v38, %v964_v45  ;;  %v973_v49 = vsel %vm40_vm0, %v912_v55, 0.0  ;;  %vm979_vm7 = vcmp.eq.s32.totalorder %v4154_v21, 5 }
  0xe5   :  { %v992_v30 = vperm.slane %v4155_v11, 6  ;;  %v1004_v6 = vmul.f32 %v988_v35, %v2513_v54  ;;  %v1006_v58 = vmul.f32 %v989_v24, %v2519_v32  ;;  %v1008_v3 = vmul.f32 %v990_v60, %v4148_v37 }
  0xe6   :  { %v943_v42 = vadd.f32 %v942_v44, %v941_v28  ;;  %v968_v8 = vadd.f32 %v967_v62, %v966_v10  ;;  %v975_v29 = vsel %vm40_vm0, %v914_v27, 0.0  ;;  %v977_v25 = vsel %vm40_vm0, %v916_v36, 0.0 }
  0xe7   :  { %v4156_v34 = vmov 0.0   ;;  %v993_v55 = vperm.slane %v2537_v13, 6  ;;  %v994_v9 = vperm.slane %v2541_v46, 6  ;;  %v1010_v53 = vmul.f32 %v991_v59, %v4153_v23 }
  0xe8   :  { %v981_v20 = vsel %vm979_vm7, 0.001, %v4156_v34  ;;  %v945_v38 = vadd.f32 %v944_v7, %v943_v42  ;;  %v970_v12 = vadd.f32 %v969_v17, %v968_v8  ;;  %v995_v45 = vperm.slane %v2546_v22, 6 }
  0xe9   :  { %v996_v21 = vperm.slane %v2552_v43, 6  ;;  %v1012_v44 = vmul.f32 %v992_v30, %v4155_v11  ;;  %v1036_v27 = vsel %vm40_vm0, %v1004_v6, 0.0  ;;  %v1037_v36 = vsel %vm40_vm0, %v1006_v58, 0.0 }
  0xea   :  { %v1039_v62 = vsel %vm40_vm0, %v1008_v3, 0.0  ;;  %v947_v28 = vadd.f32 %v946_v14, %v945_v38  ;;  %v972_v10 = vadd.f32 %v971_v5, %v970_v12  ;;  %v1005_v34 = vmul.f32 %v988_v35, %v2523_v26 }
  0xeb   :  { %v1038_v37 = vadd.f32 %v1037_v36, %v1036_v27  ;;  %v1007_v7 = vmul.f32 %v989_v24, %v2525_v61  ;;  %v1009_v17 = vmul.f32 %v990_v60, %v2527_v18  ;;  %v1014_v42 = vmul.f32 %v993_v55, %v2537_v13 }
  0xec   :  { %v1041_v8 = vsel %vm40_vm0, %v1010_v53, 0.0  ;;  %v974_v11 = vadd.f32 %v973_v49, %v972_v10  ;;  %v983_v23 = vadd.f32 %v981_v20, %v947_v28  ;;  %v997_v6 = vperm.slane %v2556_v56, 6 }
  0xed   :  { %v1040_v58 = vadd.f32 %v1039_v62, %v1038_v37  ;;  %v998_v3 = vperm.slane %v2560_v1, 6  ;;  %v1011_v14 = vmul.f32 %v991_v59, %v2531_v50  ;;  %v1016_v35 = vmul.f32 %v994_v9, %v2541_v46 }
  0xee   :  { %v1043_v5 = vsel %vm40_vm0, %v1012_v44, 0.0  ;;  %v976_v24 = vadd.f32 %v975_v29, %v974_v11  ;;  %2190 = vst.msk [vmem:[%s4031_s1 + $0x50] sm:$0xff] %vm40_vm0, %v983_v23  ;;  %v1013_v60 = vmul.f32 %v992_v30, %v4133_v51  ;;  %v1018_v49 = vmul.f32 %v995_v45, %v2546_v22 }
  0xef   :  { %v1042_v20 = vadd.f32 %v1041_v8, %v1040_v58  ;;  %v1045_v37 = vsel %vm40_vm0, %v1014_v42, 0.0  ;;  %v1067_v53 = vsel %vm40_vm0, %v1005_v34, 0.0  ;;  %v1068_v59 = vsel %vm40_vm0, %v1007_v7, 0.0 }
  0xf0   :  { %v1070_v38 = vsel %vm40_vm0, %v1009_v17, 0.0  ;;  %v978_v12 = vadd.f32 %v977_v25, %v976_v24  ;;  %v999_v11 = vperm.slane %v2564_v52, 6  ;;  %v1069_v44 = vadd.f32 %v1068_v59, %v1067_v53 }
  0xf1   :  { %v1044_v29 = vadd.f32 %v1043_v5, %v1042_v20  ;;  %v1015_v23 = vmul.f32 %v993_v55, %v2539_v31  ;;  %v1020_v30 = vmul.f32 %v996_v21, %v2552_v43  ;;  %v1047_v27 = vsel %vm40_vm0, %v1016_v35, 0.0 }
  0xf2   :  { %v1072_v36 = vsel %vm40_vm0, %v1011_v14, 0.0  ;;  %2191 = vst.msk [vmem:[%s4031_s1 + $0x58] sm:$0xff] %vm40_vm0, %v978_v12  ;;  %v1000_v34 = vperm.slane %v2569_v4, 6  ;;  %v1001_v25 = vperm.slane %v2574_v48, 6  ;;  %v1071_v28 = vadd.f32 %v1070_v38, %v1069_v44 }
  0xf3   :  { %v1046_v62 = vadd.f32 %v1045_v37, %v1044_v29  ;;  %v1017_v10 = vmul.f32 %v994_v9, %v2543_v63  ;;  %v1022_v55 = vmul.f32 %v997_v6, %v2556_v56  ;;  %v1049_v7 = vsel %vm40_vm0, %v1018_v49, 0.0 }
  0xf4   :  { %v1074_v17 = vsel %vm40_vm0, %v1013_v60, 0.0  ;;  %v1002_v42 = vperm.slane %v2581_v15, 6  ;;  %v1003_v8 = vperm.slane %v2585_v16, 6  ;;  %v1073_v14 = vadd.f32 %v1072_v36, %v1071_v28 }
  0xf5   :  { %v1048_v58 = vadd.f32 %v1047_v27, %v1046_v62  ;;  %v1019_v35 = vmul.f32 %v995_v45, %v2548_v33  ;;  %v1024_v5 = vmul.f32 %v998_v3, %v2560_v1  ;;  %v1051_v24 = vsel %vm40_vm0, %v1020_v30, 0.0 }
  0xf6   :  { %v1076_v9 = vsel %vm40_vm0, %v1015_v23, 0.0  ;;  %v1021_v20 = vmul.f32 %v996_v21, %v2554_v19  ;;  %v1023_v49 = vmul.f32 %v997_v6, %v2558_v0  ;;  %v1075_v60 = vadd.f32 %v1074_v17, %v1073_v14 }
  0xf7   :  { %v1050_v37 = vadd.f32 %v1049_v7, %v1048_v58  ;;  %v1025_v53 = vmul.f32 %v998_v3, %v2562_v2  ;;  %v1026_v59 = vmul.f32 %v999_v11, %v2564_v52  ;;  %v1053_v38 = vsel %vm40_vm0, %v1022_v55, 0.0 }
  0xf8   :  { %v1078_v45 = vsel %vm40_vm0, %v1017_v10, 0.0  ;;  %v1027_v12 = vmul.f32 %v999_v11, %v2567_v47  ;;  %v1028_v29 = vmul.f32 %v1000_v34, %v2569_v4  ;;  %v1077_v23 = vadd.f32 %v1076_v9, %v1075_v60 }
  0xf9   :  { %v1052_v44 = vadd.f32 %v1051_v24, %v1050_v37  ;;  %v1029_v21 = vmul.f32 %v1000_v34, %v2571_v57  ;;  %v1030_v6 = vmul.f32 %v1001_v25, %v2574_v48  ;;  %v1055_v30 = vsel %vm40_vm0, %v1024_v5, 0.0  ;;  %v4157_v24 = vld [vmem:[#allocation2_spill] sm:$0xff] }
  0xfa   :  { %v1080_v3 = vsel %vm40_vm0, %v1019_v35, 0.0  ;;  %v1031_v27 = vmul.f32 %v1001_v25, %v2579_v40  ;;  %v1032_v36 = vmul.f32 %v1002_v42, %v2581_v15  ;;  %v1079_v28 = vadd.f32 %v1078_v45, %v1077_v23  ;;  %v4158_v45 = vld [vmem:[#allocation3_spill] sm:$0xff] }
  0xfb   :  { %v1054_v62 = vadd.f32 %v1053_v38, %v1052_v44  ;;  %v1033_v11 = vmul.f32 %v1002_v42, %v2583_v41  ;;  %v1034_v10 = vmul.f32 %v1003_v8, %v2585_v16  ;;  %v1057_v55 = vsel %vm40_vm0, %v1026_v59, 0.0 }
  0xfc   :  { %v1082_v34 = vsel %vm40_vm0, %v1021_v20, 0.0  ;;  %v1035_v7 = vmul.f32 %v1003_v8, %v2587_v39  ;;  %v1059_v58 = vsel %vm40_vm0, %v1028_v29, 0.0  ;;  %v1081_v14 = vadd.f32 %v1080_v3, %v1079_v28  ;;  %v4160_v3 = vld [vmem:[#allocation4_spill] sm:$0xff] }
  0xfd   :  { %v1056_v17 = vadd.f32 %v1055_v30, %v1054_v62  ;;  %v1084_v25 = vsel %vm40_vm0, %v1023_v49, 0.0  ;;  %v1107_v35 = vperm.slane %v2513_v54, 7  ;;  %v1108_v5 = vperm.slane %v2519_v32, 7  ;;  %v4159_v30 = vld [vmem:[#allocation21_spill] sm:$0xff] }
  0xfe   :  { %v1109_v42 = vperm.slane %v4157_v24, 7  ;;  %v1061_v37 = vsel %vm40_vm0, %v1030_v6, 0.0  ;;  %v1063_v60 = vsel %vm40_vm0, %v1032_v36, 0.0  ;;  %v1083_v20 = vadd.f32 %v1082_v34, %v1081_v14 }
  0xff   :  { %v1058_v9 = vadd.f32 %v1057_v55, %v1056_v17  ;;  %v1065_v8 = vsel %vm40_vm0, %v1034_v10, 0.0  ;;  %v1086_v59 = vsel %vm40_vm0, %v1025_v53, 0.0  ;;  %v1088_v38 = vsel %vm40_vm0, %v1027_v12, 0.0 }
 0x100   :  { %v1110_v49 = vperm.slane %v4158_v45, 7  ;;  %v1085_v44 = vadd.f32 %v1084_v25, %v1083_v20  ;;  %v1090_v23 = vsel %vm40_vm0, %v1029_v21, 0.0  ;;  %vm1098_vm8 = vcmp.eq.s32.totalorder %v4159_v30, 6 }
 0x101   :  { %v1060_v29 = vadd.f32 %v1059_v58, %v1058_v9  ;;  %v1111_v62 = vperm.slane %v4160_v3, 7  ;;  %v1123_v6 = vmul.f32 %v1107_v35, %v2513_v54  ;;  %v1125_v36 = vmul.f32 %v1108_v5, %v2519_v32 }
 0x102   :  { %v1127_v28 = vmul.f32 %v1109_v42, %v4157_v24  ;;  %v1087_v53 = vadd.f32 %v1086_v59, %v1085_v44  ;;  %v1092_v12 = vsel %vm40_vm0, %v1031_v27, 0.0  ;;  %v1094_v55 = vsel %vm40_vm0, %v1033_v11, 0.0 }
 0x103   :  { %v1062_v10 = vadd.f32 %v1061_v37, %v1060_v29  ;;  %v1096_v34 = vsel %vm40_vm0, %v1035_v7, 0.0  ;;  %v4161_v17 = vmov 0.0   ;;  %v1112_v58 = vperm.slane %v2537_v13, 7 }
 0x104   :  { %v1100_v21 = vsel %vm1098_vm8, 0.001, %v4161_v17  ;;  %v1129_v14 = vmul.f32 %v1110_v49, %v4158_v45  ;;  %v1089_v9 = vadd.f32 %v1088_v38, %v1087_v53  ;;  %v1113_v20 = vperm.slane %v2541_v46, 7 }
 0x105   :  { %v1064_v25 = vadd.f32 %v1063_v60, %v1062_v10  ;;  %v1114_v24 = vperm.slane %v2546_v22, 7  ;;  %v1131_v37 = vmul.f32 %v1111_v62, %v4160_v3  ;;  %v1155_v27 = vsel %vm40_vm0, %v1123_v6, 0.0 }
 0x106   :  { %v1156_v11 = vsel %vm40_vm0, %v1125_v36, 0.0  ;;  %v1158_v7 = vsel %vm40_vm0, %v1127_v28, 0.0  ;;  %v1091_v29 = vadd.f32 %v1090_v23, %v1089_v9  ;;  %v1124_v44 = vmul.f32 %v1107_v35, %v2523_v26 }
 0x107   :  { %v1066_v59 = vadd.f32 %v1065_v8, %v1064_v25  ;;  %v1157_v17 = vadd.f32 %v1156_v11, %v1155_v27  ;;  %v1126_v60 = vmul.f32 %v1108_v5, %v2525_v61  ;;  %v1128_v38 = vmul.f32 %v1109_v42, %v2527_v18 }
 0x108   :  { %v1133_v10 = vmul.f32 %v1112_v58, %v2537_v13  ;;  %v1160_v53 = vsel %vm40_vm0, %v1129_v14, 0.0  ;;  %v1093_v3 = vadd.f32 %v1092_v12, %v1091_v29  ;;  %v1115_v6 = vperm.slane %v2552_v43, 7 }
 0x109   :  { %v1102_v45 = vadd.f32 %v1100_v21, %v1066_v59  ;;  %v1159_v36 = vadd.f32 %v1158_v7, %v1157_v17  ;;  %v1116_v28 = vperm.slane %v2556_v56, 7  ;;  %v1130_v8 = vmul.f32 %v1110_v49, %v2531_v50 }
 0x10a   :  { %v1135_v35 = vmul.f32 %v1113_v20, %v2541_v46  ;;  %v1162_v23 = vsel %vm40_vm0, %v1131_v37, 0.0  ;;  %v1095_v5 = vadd.f32 %v1094_v55, %v1093_v3  ;;  %v1132_v42 = vmul.f32 %v1111_v62, %v4133_v51 }
 0x10b   :  { %2192 = vst.msk [vmem:[%s4031_s1 + $0x60] sm:$0xff] %vm40_vm0, %v1102_v45  ;;  %v1137_v12 = vmul.f32 %v1114_v24, %v2546_v22  ;;  %v1161_v21 = vadd.f32 %v1160_v53, %v1159_v36  ;;  %v1164_v17 = vsel %vm40_vm0, %v1133_v10, 0.0  ;;  %v1186_v14 = vsel %vm40_vm0, %v1124_v44, 0.0 }
 0x10c   :  { %v1187_v49 = vsel %vm40_vm0, %v1126_v60, 0.0  ;;  %v1189_v25 = vsel %vm40_vm0, %v1128_v38, 0.0  ;;  %v1097_v9 = vadd.f32 %v1096_v34, %v1095_v5  ;;  %v1117_v3 = vperm.slane %v2560_v1, 7 }
 0x10d   :  { %v1163_v55 = vadd.f32 %v1162_v23, %v1161_v21  ;;  %v1188_v37 = vadd.f32 %v1187_v49, %v1186_v14  ;;  %v1134_v45 = vmul.f32 %v1112_v58, %v2539_v31  ;;  %v1139_v62 = vmul.f32 %v1115_v6, %v2552_v43 }
 0x10e   :  { %v1166_v27 = vsel %vm40_vm0, %v1135_v35, 0.0  ;;  %v1191_v11 = vsel %vm40_vm0, %v1130_v8, 0.0  ;;  %2193 = vst.msk [vmem:[%s4031_s1 + $0x68] sm:$0xff] %vm40_vm0, %v1097_v9  ;;  %v1118_v7 = vperm.slane %v2564_v52, 7  ;;  %v1119_v34 = vperm.slane %v2569_v4, 7 }
 0x10f   :  { %v1165_v59 = vadd.f32 %v1164_v17, %v1163_v55  ;;  %v1190_v29 = vadd.f32 %v1189_v25, %v1188_v37  ;;  %v1136_v44 = vmul.f32 %v1113_v20, %v2543_v63  ;;  %v1141_v58 = vmul.f32 %v1116_v28, %v2556_v56 }
 0x110   :  { %v1168_v60 = vsel %vm40_vm0, %v1137_v12, 0.0  ;;  %v1193_v38 = vsel %vm40_vm0, %v1132_v42, 0.0  ;;  %v1120_v10 = vperm.slane %v2574_v48, 7  ;;  %v1121_v53 = vperm.slane %v2581_v15, 7 }
 0x111   :  { %v1167_v36 = vadd.f32 %v1166_v27, %v1165_v59  ;;  %v1192_v8 = vadd.f32 %v1191_v11, %v1190_v29  ;;  %v1138_v35 = vmul.f32 %v1114_v24, %v2548_v33  ;;  %v1143_v23 = vmul.f32 %v1117_v3, %v2560_v1 }
 0x112   :  { %v1170_v5 = vsel %vm40_vm0, %v1139_v62, 0.0  ;;  %v1195_v20 = vsel %vm40_vm0, %v1134_v45, 0.0  ;;  %v1122_v21 = vperm.slane %v2585_v16, 7  ;;  %v1140_v12 = vmul.f32 %v1115_v6, %v2554_v19 }
 0x113   :  { %v1169_v17 = vadd.f32 %v1168_v60, %v1167_v36  ;;  %v1194_v42 = vadd.f32 %v1193_v38, %v1192_v8  ;;  %v1142_v14 = vmul.f32 %v1116_v28, %v2558_v0  ;;  %v1145_v49 = vmul.f32 %v1118_v7, %v2564_v52 }
 0x114   :  { %v1172_v25 = vsel %vm40_vm0, %v1141_v58, 0.0  ;;  %v1197_v24 = vsel %vm40_vm0, %v1136_v44, 0.0  ;;  %v1144_v9 = vmul.f32 %v1117_v3, %v2562_v2  ;;  %v1147_v55 = vmul.f32 %v1119_v34, %v2569_v4 }
 0x115   :  { %v1171_v37 = vadd.f32 %v1170_v5, %v1169_v17  ;;  %v1196_v45 = vadd.f32 %v1195_v20, %v1194_v42  ;;  %v1149_v62 = vmul.f32 %v1120_v10, %v2574_v48  ;;  %v1151_v6 = vmul.f32 %v1121_v53, %v2581_v15 }
 0x116   :  { %v1174_v27 = vsel %vm40_vm0, %v1143_v23, 0.0  ;;  %v1199_v28 = vsel %vm40_vm0, %v1138_v35, 0.0  ;;  %v1146_v11 = vmul.f32 %v1118_v7, %v2567_v47  ;;  %v1153_v59 = vmul.f32 %v1122_v21, %v2585_v16 }
 0x117   :  { %v1173_v29 = vadd.f32 %v1172_v25, %v1171_v37  ;;  %v1198_v44 = vadd.f32 %v1197_v24, %v1196_v45  ;;  %v1148_v3 = vmul.f32 %v1119_v34, %v2571_v57  ;;  %v1150_v58 = vmul.f32 %v1120_v10, %v2579_v40 }
 0x118   :  { %v1176_v60 = vsel %vm40_vm0, %v1145_v49, 0.0  ;;  %v1201_v38 = vsel %vm40_vm0, %v1140_v12, 0.0  ;;  %v1152_v36 = vmul.f32 %v1121_v53, %v2583_v41  ;;  %v1154_v8 = vmul.f32 %v1122_v21, %v2587_v39 }
 0x119   :  { %v1175_v23 = vadd.f32 %v1174_v27, %v1173_v29  ;;  %v1200_v35 = vadd.f32 %v1199_v28, %v1198_v44  ;;  %v1178_v7 = vsel %vm40_vm0, %v1147_v55, 0.0  ;;  %v1180_v5 = vsel %vm40_vm0, %v1149_v62, 0.0 }
 0x11a   :  { %v1182_v20 = vsel %vm40_vm0, %v1151_v6, 0.0  ;;  %v1203_v34 = vsel %vm40_vm0, %v1142_v14, 0.0  ;;  %v1184_v10 = vsel %vm40_vm0, %v1153_v59, 0.0  ;;  %v1205_v12 = vsel %vm40_vm0, %v1144_v9, 0.0 }
 0x11b   :  { %v1177_v17 = vadd.f32 %v1176_v60, %v1175_v23  ;;  %v1202_v42 = vadd.f32 %v1201_v38, %v1200_v35  ;;  %v1207_v53 = vsel %vm40_vm0, %v1146_v11, 0.0  ;;  %v1209_v21 = vsel %vm40_vm0, %v1148_v3, 0.0  ;;  %v4162_v11 = vld [vmem:[#allocation2_spill] sm:$0xff]  ;;  %v4164_v38 = vld [vmem:[#allocation3_spill] sm:$0xff] }
 0x11c   :  { %v1226_v49 = vperm.slane %v2523_v26, 0  ;;  %v1227_v25 = vperm.slane %v2525_v61, 0  ;;  %vm1217_vm9 = vcmp.eq.s32.totalorder %v4159_v30, 7  ;;  %v1228_v14 = vperm.slane %v2527_v18, 0 }
 0x11d   :  { %v1179_v24 = vadd.f32 %v1178_v7, %v1177_v17  ;;  %v1204_v55 = vadd.f32 %v1203_v34, %v1202_v42  ;;  %v1211_v37 = vsel %vm40_vm0, %v1150_v58, 0.0  ;;  %v1229_v45 = vperm.slane %v2531_v50, 0  ;;  %v4165_v17 = vld [vmem:[#allocation4_spill] sm:$0xff] }
 0x11e   :  { %v1242_v9 = vmul.f32 %v1226_v49, %v2513_v54  ;;  %v1244_v62 = vmul.f32 %v1227_v25, %v2519_v32  ;;  %v1213_v28 = vsel %vm40_vm0, %v1152_v36, 0.0  ;;  %v1246_v59 = vmul.f32 %v1228_v14, %v4162_v11 }
 0x11f   :  { %v1181_v6 = vadd.f32 %v1180_v5, %v1179_v24  ;;  %v1206_v27 = vadd.f32 %v1205_v12, %v1204_v55  ;;  %v1215_v29 = vsel %vm40_vm0, %v1154_v8, 0.0  ;;  %v4163_v44 = vmov 0.0  }
 0x120   :  { %v1219_v3 = vsel %vm1217_vm9, 0.001, %v4163_v44  ;;  %v1230_v60 = vperm.slane %v4133_v51, 0  ;;  %v1248_v58 = vmul.f32 %v1229_v45, %v4164_v38  ;;  %v1231_v7 = vperm.slane %v2539_v31, 0 }
 0x121   :  { %v1183_v23 = vadd.f32 %v1182_v20, %v1181_v6  ;;  %v1208_v35 = vadd.f32 %v1207_v53, %v1206_v27  ;;  %v1232_v34 = vperm.slane %v2543_v63, 0  ;;  %v1233_v5 = vperm.slane %v2548_v33, 0 }
 0x122   :  { %v1250_v36 = vmul.f32 %v1230_v60, %v4165_v17  ;;  %v1274_v42 = vsel %vm40_vm0, %v1242_v9, 0.0  ;;  %v1275_v8 = vsel %vm40_vm0, %v1244_v62, 0.0  ;;  %v1277_v44 = vsel %vm40_vm0, %v1246_v59, 0.0 }
 0x123   :  { %v1185_v12 = vadd.f32 %v1184_v10, %v1183_v23  ;;  %v1210_v24 = vadd.f32 %v1209_v21, %v1208_v35  ;;  %v1276_v55 = vadd.f32 %v1275_v8, %v1274_v42  ;;  %v1243_v20 = vmul.f32 %v1226_v49, %v2523_v26 }
 0x124   :  { %v1245_v53 = vmul.f32 %v1227_v25, %v2525_v61  ;;  %v1252_v6 = vmul.f32 %v1231_v7, %v2537_v13  ;;  %v1279_v27 = vsel %vm40_vm0, %v1248_v58, 0.0  ;;  %v1247_v17 = vmul.f32 %v1228_v14, %v2527_v18 }
 0x125   :  { %v1212_v38 = vadd.f32 %v1211_v37, %v1210_v24  ;;  %v1221_v11 = vadd.f32 %v1219_v3, %v1185_v12  ;;  %v1278_v9 = vadd.f32 %v1277_v44, %v1276_v55  ;;  %v1234_v62 = vperm.slane %v2554_v19, 0 }
 0x126   :  { %v1249_v10 = vmul.f32 %v1229_v45, %v2531_v50  ;;  %v1254_v21 = vmul.f32 %v1232_v34, %v2541_v46  ;;  %v1281_v59 = vsel %vm40_vm0, %v1250_v36, 0.0  ;;  %v1235_v25 = vperm.slane %v2558_v0, 0 }
 0x127   :  { %v1214_v49 = vadd.f32 %v1213_v28, %v1212_v38  ;;  %2194 = vst.msk [vmem:[%s4031_s1 + $0x70] sm:$0xff] %vm40_vm0, %v1221_v11  ;;  %v1251_v37 = vmul.f32 %v1230_v60, %v4133_v51  ;;  %v1280_v14 = vadd.f32 %v1279_v27, %v1278_v9  ;;  %v1256_v44 = vmul.f32 %v1233_v5, %v2546_v22 }
 0x128   :  { %v1283_v3 = vsel %vm40_vm0, %v1252_v6, 0.0  ;;  %v1305_v45 = vsel %vm40_vm0, %v1243_v20, 0.0  ;;  %v1306_v58 = vsel %vm40_vm0, %v1245_v53, 0.0  ;;  %v1308_v35 = vsel %vm40_vm0, %v1247_v17, 0.0 }
 0x129   :  { %v1216_v23 = vadd.f32 %v1215_v29, %v1214_v49  ;;  %v1282_v28 = vadd.f32 %v1281_v59, %v1280_v14  ;;  %v1307_v38 = vadd.f32 %v1306_v58, %v1305_v45  ;;  %v1253_v11 = vmul.f32 %v1231_v7, %v2539_v31 }
 0x12a   :  { %v1258_v36 = vmul.f32 %v1234_v62, %v2552_v43  ;;  %v1285_v60 = vsel %vm40_vm0, %v1254_v21, 0.0  ;;  %v1310_v42 = vsel %vm40_vm0, %v1249_v10, 0.0  ;;  %v3334_v8 = vadd.s32 8, %v4159_v30 }
 0x12b   :  { %2195 = vst.msk [vmem:[%s4031_s1 + $0x78] sm:$0xff] %vm40_vm0, %v1216_v23  ;;  %v1236_v29 = vperm.slane %v2562_v2, 0  ;;  %v1284_v12 = vadd.f32 %v1283_v3, %v1282_v28  ;;  %v1309_v17 = vadd.f32 %v1308_v35, %v1307_v38  ;;  %v1255_v7 = vmul.f32 %v1232_v34, %v2543_v63 }
 0x12c   :  { %v1260_v24 = vmul.f32 %v1235_v25, %v2556_v56  ;;  %v1287_v55 = vsel %vm40_vm0, %v1256_v44, 0.0  ;;  %v1312_v20 = vsel %vm40_vm0, %v1251_v37, 0.0  ;;  %v1237_v30 = vperm.slane %v2567_v47, 0 }
 0x12d   :  { %v1238_v53 = vperm.slane %v2571_v57, 0  ;;  %v1286_v6 = vadd.f32 %v1285_v60, %v1284_v12  ;;  %v1311_v27 = vadd.f32 %v1310_v42, %v1309_v17  ;;  %v1257_v9 = vmul.f32 %v1233_v5, %v2548_v33 }
 0x12e   :  { %v1262_v10 = vmul.f32 %v1236_v29, %v2560_v1  ;;  %v1289_v21 = vsel %vm40_vm0, %v1258_v36, 0.0  ;;  %v1314_v34 = vsel %vm40_vm0, %v1253_v11, 0.0  ;;  %v1239_v59 = vperm.slane %v2579_v40, 0 }
 0x12f   :  { %v1240_v49 = vperm.slane %v2583_v41, 0  ;;  %v1288_v14 = vadd.f32 %v1287_v55, %v1286_v6  ;;  %v1313_v37 = vadd.f32 %v1312_v20, %v1311_v27  ;;  %v1259_v44 = vmul.f32 %v1234_v62, %v2554_v19 }
 0x130   :  { %v1264_v3 = vmul.f32 %v1237_v30, %v2564_v52  ;;  %v1291_v45 = vsel %vm40_vm0, %v1260_v24, 0.0  ;;  %v1316_v5 = vsel %vm40_vm0, %v1255_v7, 0.0  ;;  %v1241_v58 = vperm.slane %v2587_v39, 0 }
 0x131   :  { %v1261_v23 = vmul.f32 %v1235_v25, %v2558_v0  ;;  %v1290_v28 = vadd.f32 %v1289_v21, %v1288_v14  ;;  %v1315_v38 = vadd.f32 %v1314_v34, %v1313_v37  ;;  %v1263_v35 = vmul.f32 %v1236_v29, %v2562_v2 }
 0x132   :  { %v1266_v11 = vmul.f32 %v1238_v53, %v2569_v4  ;;  %v1293_v36 = vsel %vm40_vm0, %v1262_v10, 0.0  ;;  %v1318_v62 = vsel %vm40_vm0, %v1257_v9, 0.0  ;;  %v1268_v60 = vmul.f32 %v1239_v59, %v2574_v48 }
 0x133   :  { %v1270_v42 = vmul.f32 %v1240_v49, %v2581_v15  ;;  %v1292_v12 = vadd.f32 %v1291_v45, %v1290_v28  ;;  %v1317_v17 = vadd.f32 %v1316_v5, %v1315_v38  ;;  %v1265_v7 = vmul.f32 %v1237_v30, %v2567_v47 }
 0x134   :  { %v1272_v25 = vmul.f32 %v1241_v58, %v2585_v16  ;;  %v1295_v24 = vsel %vm40_vm0, %v1264_v3, 0.0  ;;  %v1320_v29 = vsel %vm40_vm0, %v1259_v44, 0.0  ;;  %v1267_v55 = vmul.f32 %v1238_v53, %v2571_v57 }
 0x135   :  { %v1269_v20 = vmul.f32 %v1239_v59, %v2579_v40  ;;  %v1294_v6 = vadd.f32 %v1293_v36, %v1292_v12  ;;  %v1319_v27 = vadd.f32 %v1318_v62, %v1317_v17  ;;  %v1271_v9 = vmul.f32 %v1240_v49, %v2583_v41 }
 0x136   :  { %v1273_v10 = vmul.f32 %v1241_v58, %v2587_v39  ;;  %v1297_v21 = vsel %vm40_vm0, %v1266_v11, 0.0  ;;  %v1322_v30 = vsel %vm40_vm0, %v1261_v23, 0.0  ;;  %v1299_v14 = vsel %vm40_vm0, %v1268_v60, 0.0  ;;  %v4166_v60 = vld [vmem:[#allocation2_spill] sm:$0xff] }
 0x137   :  { %v1296_v34 = vadd.f32 %v1295_v24, %v1294_v6  ;;  %v1301_v37 = vsel %vm40_vm0, %v1270_v42, 0.0  ;;  %v1321_v44 = vadd.f32 %v1320_v29, %v1319_v27  ;;  %v1303_v53 = vsel %vm40_vm0, %v1272_v25, 0.0  ;;  %v4168_v27 = vld [vmem:[#allocation3_spill] sm:$0xff] }
 0x138   :  { %v1324_v59 = vsel %vm40_vm0, %v1263_v35, 0.0  ;;  %v1326_v3 = vsel %vm40_vm0, %v1265_v7, 0.0  ;;  %v1345_v49 = vperm.slane %v2523_v26, 1  ;;  %v1346_v58 = vperm.slane %v2525_v61, 1 }
 0x139   :  { %v1298_v45 = vadd.f32 %v1297_v21, %v1296_v34  ;;  %v1323_v5 = vadd.f32 %v1322_v30, %v1321_v44  ;;  %v1347_v23 = vperm.slane %v2527_v18, 1  ;;  %v1328_v28 = vsel %vm40_vm0, %v1267_v55, 0.0 }
 0x13a   :  { %vm1337_vm10 = vcmp.eq.s32.totalorder %v3334_v8, 8  ;;  %v1348_v38 = vperm.slane %v2531_v50, 1  ;;  %v1361_v11 = vmul.f32 %v1345_v49, %v2513_v54  ;;  %v1363_v62 = vmul.f32 %v1346_v58, %v2519_v32 }
 0x13b   :  { %v1300_v36 = vadd.f32 %v1299_v14, %v1298_v45  ;;  %v1325_v35 = vadd.f32 %v1324_v59, %v1323_v5  ;;  %v1365_v42 = vmul.f32 %v1347_v23, %v4166_v60  ;;  %v1330_v12 = vsel %vm40_vm0, %v1269_v20, 0.0  ;;  %v4169_v14 = vld [vmem:[#allocation4_spill] sm:$0xff] }
 0x13c   :  { %v1332_v17 = vsel %vm40_vm0, %v1271_v9, 0.0  ;;  %v1334_v7 = vsel %vm40_vm0, %v1273_v10, 0.0  ;;  %v1349_v25 = vperm.slane %v4133_v51, 1  ;;  %v4167_v55 = vmov 0.0  }
 0x13d   :  { %v1302_v24 = vadd.f32 %v1301_v37, %v1300_v36  ;;  %v1327_v29 = vadd.f32 %v1326_v3, %v1325_v35  ;;  %v1339_v6 = vsel %vm1337_vm10, 0.001, %v4167_v55  ;;  %v1367_v21 = vmul.f32 %v1348_v38, %v4168_v27 }
 0x13e   :  { %v1350_v30 = vperm.slane %v2539_v31, 1  ;;  %v1351_v34 = vperm.slane %v2543_v63, 1  ;;  %v1369_v44 = vmul.f32 %v1349_v25, %v4169_v14  ;;  %v1393_v20 = vsel %vm40_vm0, %v1361_v11, 0.0 }
 0x13f   :  { %v1304_v59 = vadd.f32 %v1303_v53, %v1302_v24  ;;  %v1329_v9 = vadd.f32 %v1328_v28, %v1327_v29  ;;  %v1394_v10 = vsel %vm40_vm0, %v1363_v62, 0.0  ;;  %v1396_v45 = vsel %vm40_vm0, %v1365_v42, 0.0 }
 0x140   :  { %v1352_v37 = vperm.slane %v2548_v33, 1  ;;  %v1362_v3 = vmul.f32 %v1345_v49, %v2523_v26  ;;  %v1364_v5 = vmul.f32 %v1346_v58, %v2525_v61  ;;  %v1395_v36 = vadd.f32 %v1394_v10, %v1393_v20 }
 0x141   :  { %v1331_v35 = vadd.f32 %v1330_v12, %v1329_v9  ;;  %2196 = vst.msk [vmem:[%s4031_s1 + $0x80] sm:$0xff] %vm40_vm0, %v1304_v59  ;;  %v1366_v53 = vmul.f32 %v1347_v23, %v2527_v18  ;;  %v1371_v28 = vmul.f32 %v1350_v30, %v2537_v13  ;;  %v1398_v11 = vsel %vm40_vm0, %v1367_v21, 0.0 }
 0x142   :  { %v1353_v62 = vperm.slane %v2554_v19, 1  ;;  %v1354_v42 = vperm.slane %v2558_v0, 1  ;;  %v1368_v49 = vmul.f32 %v1348_v38, %v2531_v50  ;;  %v1397_v58 = vadd.f32 %v1396_v45, %v1395_v36 }
 0x143   :  { %v1333_v24 = vadd.f32 %v1332_v17, %v1331_v35  ;;  %v1370_v12 = vmul.f32 %v1349_v25, %v4133_v51  ;;  %v1373_v29 = vmul.f32 %v1351_v34, %v2541_v46  ;;  %v1400_v20 = vsel %vm40_vm0, %v1369_v44, 0.0 }
 0x144   :  { %v1375_v23 = vmul.f32 %v1352_v37, %v2546_v22  ;;  %v1399_v59 = vadd.f32 %v1398_v11, %v1397_v58  ;;  %v1424_v9 = vsel %vm40_vm0, %v1362_v3, 0.0  ;;  %v1425_v21 = vsel %vm40_vm0, %v1364_v5, 0.0 }
 0x145   :  { %v1335_v10 = vadd.f32 %v1334_v7, %v1333_v24  ;;  %v1402_v13 = vsel %vm40_vm0, %v1371_v28, 0.0  ;;  %v1426_v14 = vadd.f32 %v1425_v21, %v1424_v9  ;;  %v1427_v38 = vsel %vm40_vm0, %v1366_v53, 0.0 }
 0x146   :  { %v1355_v17 = vperm.slane %v2562_v2, 1  ;;  %v1372_v25 = vmul.f32 %v1350_v30, %v2539_v31  ;;  %v1401_v45 = vadd.f32 %v1400_v20, %v1399_v59  ;;  %v1429_v44 = vsel %vm40_vm0, %v1368_v49, 0.0 }
 0x147   :  { %v1341_v36 = vadd.f32 %v1339_v6, %v1335_v10  ;;  %v1377_v35 = vmul.f32 %v1353_v62, %v2552_v43  ;;  %v1404_v3 = vsel %vm40_vm0, %v1373_v29, 0.0  ;;  %v1428_v11 = vadd.f32 %v1427_v38, %v1426_v14 }
 0x148   :  { %v1356_v7 = vperm.slane %v2567_v47, 1  ;;  %v1374_v5 = vmul.f32 %v1351_v34, %v2543_v63  ;;  %v1403_v28 = vadd.f32 %v1402_v13, %v1401_v45  ;;  %v1431_v53 = vsel %vm40_vm0, %v1370_v12, 0.0 }
 0x149   :  { %2197 = vst.msk [vmem:[%s4031_s1 + $0x88] sm:$0xff] %vm40_vm0, %v1341_v36  ;;  %v1357_v30 = vperm.slane %v2571_v57, 1  ;;  %v1379_v6 = vmul.f32 %v1354_v42, %v2556_v56  ;;  %v1406_v49 = vsel %vm40_vm0, %v1375_v23, 0.0  ;;  %v1430_v58 = vadd.f32 %v1429_v44, %v1428_v11 }
 0x14a   :  { %v1358_v14 = vperm.slane %v2579_v40, 1  ;;  %v1376_v24 = vmul.f32 %v1352_v37, %v2548_v33  ;;  %v1405_v34 = vadd.f32 %v1404_v3, %v1403_v28  ;;  %v1433_v13 = vsel %vm40_vm0, %v1372_v25, 0.0 }
 0x14b   :  { %v1359_v12 = vperm.slane %v2583_v41, 1  ;;  %v1381_v29 = vmul.f32 %v1355_v17, %v2560_v1  ;;  %v1408_v20 = vsel %vm40_vm0, %v1377_v35, 0.0  ;;  %v1432_v59 = vadd.f32 %v1431_v53, %v1430_v58 }
 0x14c   :  { %v1360_v9 = vperm.slane %v2587_v39, 1  ;;  %v1378_v21 = vmul.f32 %v1353_v62, %v2554_v19  ;;  %v1407_v23 = vadd.f32 %v1406_v49, %v1405_v34  ;;  %v1435_v10 = vsel %vm40_vm0, %v1374_v5, 0.0 }
 0x14d   :  { %v1380_v38 = vmul.f32 %v1354_v42, %v2558_v0  ;;  %v1383_v37 = vmul.f32 %v1356_v7, %v2564_v52  ;;  %v1410_v25 = vsel %vm40_vm0, %v1379_v6, 0.0  ;;  %v1434_v45 = vadd.f32 %v1433_v13, %v1432_v59 }
 0x14e   :  { %v1382_v44 = vmul.f32 %v1355_v17, %v2562_v2  ;;  %v1385_v36 = vmul.f32 %v1357_v30, %v2569_v4  ;;  %v1409_v35 = vadd.f32 %v1408_v20, %v1407_v23  ;;  %v1437_v3 = vsel %vm40_vm0, %v1376_v24, 0.0 }
 0x14f   :  { %v1387_v11 = vmul.f32 %v1358_v14, %v2574_v48  ;;  %v1389_v62 = vmul.f32 %v1359_v12, %v2581_v15  ;;  %v1412_v5 = vsel %vm40_vm0, %v1381_v29, 0.0  ;;  %v1436_v28 = vadd.f32 %v1435_v10, %v1434_v45 }
 0x150   :  { %v1384_v42 = vmul.f32 %v1356_v7, %v2567_v47  ;;  %v1391_v53 = vmul.f32 %v1360_v9, %v2585_v16  ;;  %v1411_v6 = vadd.f32 %v1410_v25, %v1409_v35  ;;  %v1439_v49 = vsel %vm40_vm0, %v1378_v21, 0.0 }
 0x151   :  { %v1386_v17 = vmul.f32 %v1357_v30, %v2571_v57  ;;  %v1388_v58 = vmul.f32 %v1358_v14, %v2579_v40  ;;  %v1414_v24 = vsel %vm40_vm0, %v1383_v37, 0.0  ;;  %v1438_v34 = vadd.f32 %v1437_v3, %v1436_v28 }
 0x152   :  { %v1390_v13 = vmul.f32 %v1359_v12, %v2583_v41  ;;  %v1392_v20 = vmul.f32 %v1360_v9, %v2587_v39  ;;  %v1413_v29 = vadd.f32 %v1412_v5, %v1411_v6  ;;  %v1441_v59 = vsel %vm40_vm0, %v1380_v38, 0.0 }
 0x153   :  { %v1416_v7 = vsel %vm40_vm0, %v1385_v36, 0.0  ;;  %v1418_v23 = vsel %vm40_vm0, %v1387_v11, 0.0  ;;  %v1420_v21 = vsel %vm40_vm0, %v1389_v62, 0.0  ;;  %v1440_v10 = vadd.f32 %v1439_v49, %v1438_v34 }
 0x154   :  { %v1415_v30 = vadd.f32 %v1414_v24, %v1413_v29  ;;  %v1422_v14 = vsel %vm40_vm0, %v1391_v53, 0.0  ;;  %v1443_v37 = vsel %vm40_vm0, %v1382_v44, 0.0  ;;  %v1445_v25 = vsel %vm40_vm0, %v1384_v42, 0.0 }
 0x155   :  { %v1442_v12 = vadd.f32 %v1441_v59, %v1440_v10  ;;  %v1464_v9 = vperm.slane %v2523_v26, 2  ;;  %v1465_v45 = vperm.slane %v2525_v61, 2  ;;  %v1466_v38 = vperm.slane %v2527_v18, 2  ;;  %v4170_v10 = vld [vmem:[#allocation4_spill] sm:$0xff] }
 0x156   :  { %v1417_v36 = vadd.f32 %v1416_v7, %v1415_v30  ;;  %v1447_v35 = vsel %vm40_vm0, %v1386_v17, 0.0  ;;  %vm1456_vm11 = vcmp.eq.s32.totalorder %v3334_v8, 9  ;;  %v1467_v3 = vperm.slane %v2531_v50, 2 }
 0x157   :  { %v1444_v11 = vadd.f32 %v1443_v37, %v1442_v12  ;;  %v1480_v62 = vmul.f32 %v1464_v9, %v2513_v54  ;;  %v1482_v44 = vmul.f32 %v1465_v45, %v2519_v32  ;;  %v1484_v5 = vmul.f32 %v1466_v38, %v4166_v60 }
 0x158   :  { %v1419_v28 = vadd.f32 %v1418_v23, %v1417_v36  ;;  %v1449_v42 = vsel %vm40_vm0, %v1388_v58, 0.0  ;;  %v1451_v53 = vsel %vm40_vm0, %v1390_v13, 0.0  ;;  %v1468_v6 = vperm.slane %v4133_v51, 2 }
 0x159   :  { %v1446_v49 = vadd.f32 %v1445_v25, %v1444_v11  ;;  %v1453_v17 = vsel %vm40_vm0, %v1392_v20, 0.0  ;;  %v1458_v24 = vsel %vm1456_vm11, 0.001, %v4167_v55  ;;  %v1486_v34 = vmul.f32 %v1467_v3, %v4168_v27 }
 0x15a   :  { %v1421_v29 = vadd.f32 %v1420_v21, %v1419_v28  ;;  %v1469_v59 = vperm.slane %v2539_v31, 2  ;;  %v1470_v7 = vperm.slane %v2543_v63, 2  ;;  %v1488_v23 = vmul.f32 %v1468_v6, %v4170_v10  ;;  %v4171_v28 = vld [vmem:[#allocation6_spill] sm:$0xff] }
 0x15b   :  { %v1448_v30 = vadd.f32 %v1447_v35, %v1446_v49  ;;  %v1512_v58 = vsel %vm40_vm0, %v1480_v62, 0.0  ;;  %v1513_v13 = vsel %vm40_vm0, %v1482_v44, 0.0  ;;  %v1515_v37 = vsel %vm40_vm0, %v1484_v5, 0.0 }
 0x15c   :  { %v1423_v25 = vadd.f32 %v1422_v14, %v1421_v29  ;;  %v1481_v20 = vmul.f32 %v1464_v9, %v2523_v26  ;;  %v1483_v12 = vmul.f32 %v1465_v45, %v2525_v61  ;;  %v1514_v36 = vadd.f32 %v1513_v13, %v1512_v58 }
 0x15d   :  { %v1450_v21 = vadd.f32 %v1449_v42, %v1448_v30  ;;  %v1485_v11 = vmul.f32 %v1466_v38, %v2527_v18  ;;  %v1490_v27 = vmul.f32 %v1469_v59, %v4171_v28  ;;  %v1517_v10 = vsel %vm40_vm0, %v1486_v34, 0.0 }
 0x15e   :  { %2198 = vst.msk [vmem:[%s4031_s1 + $0x90] sm:$0xff] %vm40_vm0, %v1423_v25  ;;  %v1471_v35 = vperm.slane %v2548_v33, 2  ;;  %v1472_v14 = vperm.slane %v2554_v19, 2  ;;  %v1473_v9 = vperm.slane %v2558_v0, 2  ;;  %v1516_v45 = vadd.f32 %v1515_v37, %v1514_v36 }
 0x15f   :  { %v1452_v62 = vadd.f32 %v1451_v53, %v1450_v21  ;;  %v1487_v44 = vmul.f32 %v1467_v3, %v2531_v50  ;;  %v1492_v38 = vmul.f32 %v1470_v7, %v2541_v46  ;;  %v1519_v5 = vsel %vm40_vm0, %v1488_v23, 0.0 }
 0x160   :  { %v1489_v42 = vmul.f32 %v1468_v6, %v4133_v51  ;;  %v1494_v49 = vmul.f32 %v1471_v35, %v2546_v22  ;;  %v1518_v34 = vadd.f32 %v1517_v10, %v1516_v45  ;;  %v1543_v29 = vsel %vm40_vm0, %v1481_v20, 0.0 }
 0x161   :  { %v1454_v30 = vadd.f32 %v1453_v17, %v1452_v62  ;;  %v1521_v58 = vsel %vm40_vm0, %v1490_v27, 0.0  ;;  %v1544_v13 = vsel %vm40_vm0, %v1483_v12, 0.0  ;;  %v1546_v53 = vsel %vm40_vm0, %v1485_v11, 0.0 }
 0x162   :  { %v1474_v3 = vperm.slane %v2562_v2, 2  ;;  %v1491_v37 = vmul.f32 %v1469_v59, %v2539_v31  ;;  %v1520_v25 = vadd.f32 %v1519_v5, %v1518_v34  ;;  %v1545_v23 = vadd.f32 %v1544_v13, %v1543_v29 }
 0x163   :  { %v1460_v36 = vadd.f32 %v1458_v24, %v1454_v30  ;;  %v1496_v6 = vmul.f32 %v1472_v14, %v2552_v43  ;;  %v1523_v10 = vsel %vm40_vm0, %v1492_v38, 0.0  ;;  %v1548_v20 = vsel %vm40_vm0, %v1487_v44, 0.0 }
 0x164   :  { %v1475_v17 = vperm.slane %v2567_v47, 2  ;;  %v1476_v27 = vperm.slane %v2571_v57, 2  ;;  %v1522_v12 = vadd.f32 %v1521_v58, %v1520_v25  ;;  %v1547_v21 = vadd.f32 %v1546_v53, %v1545_v23 }
 0x165   :  { %2199 = vst.msk [vmem:[%s4031_s1 + $0x98] sm:$0xff] %vm40_vm0, %v1460_v36  ;;  %v1493_v59 = vmul.f32 %v1470_v7, %v2543_v63  ;;  %v1498_v24 = vmul.f32 %v1473_v9, %v2556_v56  ;;  %v1525_v11 = vsel %vm40_vm0, %v1494_v49, 0.0  ;;  %v1550_v45 = vsel %vm40_vm0, %v1489_v42, 0.0 }
 0x166   :  { %v1477_v62 = vperm.slane %v2579_v40, 2  ;;  %v1478_v44 = vperm.slane %v2583_v41, 2  ;;  %v1524_v38 = vadd.f32 %v1523_v10, %v1522_v12  ;;  %v1549_v5 = vadd.f32 %v1548_v20, %v1547_v21 }
 0x167   :  { %v1495_v34 = vmul.f32 %v1471_v35, %v2548_v33  ;;  %v1500_v29 = vmul.f32 %v1474_v3, %v2560_v1  ;;  %v1527_v30 = vsel %vm40_vm0, %v1496_v6, 0.0  ;;  %v1552_v7 = vsel %vm40_vm0, %v1491_v37, 0.0 }
 0x168   :  { %v1479_v58 = vperm.slane %v2587_v39, 2  ;;  %v1497_v49 = vmul.f32 %v1472_v14, %v2554_v19  ;;  %v1526_v13 = vadd.f32 %v1525_v11, %v1524_v38  ;;  %v1551_v42 = vadd.f32 %v1550_v45, %v1549_v5 }
 0x169   :  { %v1499_v53 = vmul.f32 %v1473_v9, %v2558_v0  ;;  %v1502_v25 = vmul.f32 %v1475_v17, %v2564_v52  ;;  %v1529_v23 = vsel %vm40_vm0, %v1498_v24, 0.0  ;;  %v1554_v35 = vsel %vm40_vm0, %v1493_v59, 0.0 }
 0x16a   :  { %v1501_v36 = vmul.f32 %v1474_v3, %v2562_v2  ;;  %v1504_v6 = vmul.f32 %v1476_v27, %v2569_v4  ;;  %v1528_v10 = vadd.f32 %v1527_v30, %v1526_v13  ;;  %v1553_v37 = vadd.f32 %v1552_v7, %v1551_v42 }
 0x16b   :  { %v1506_v20 = vmul.f32 %v1477_v62, %v2574_v48  ;;  %v1508_v14 = vmul.f32 %v1478_v44, %v2581_v15  ;;  %v1531_v12 = vsel %vm40_vm0, %v1500_v29, 0.0  ;;  %v1556_v9 = vsel %vm40_vm0, %v1495_v34, 0.0 }
 0x16c   :  { %v1503_v21 = vmul.f32 %v1475_v17, %v2567_v47  ;;  %v1510_v24 = vmul.f32 %v1479_v58, %v2585_v16  ;;  %v1530_v11 = vadd.f32 %v1529_v23, %v1528_v10  ;;  %v1555_v59 = vadd.f32 %v1554_v35, %v1553_v37 }
 0x16d   :  { %v1505_v3 = vmul.f32 %v1476_v27, %v2571_v57  ;;  %v1507_v45 = vmul.f32 %v1477_v62, %v2579_v40  ;;  %v1533_v38 = vsel %vm40_vm0, %v1502_v25, 0.0  ;;  %v1558_v5 = vsel %vm40_vm0, %v1497_v49, 0.0 }
 0x16e   :  { %v1509_v30 = vmul.f32 %v1478_v44, %v2583_v41  ;;  %v1511_v29 = vmul.f32 %v1479_v58, %v2587_v39  ;;  %v1532_v7 = vadd.f32 %v1531_v12, %v1530_v11  ;;  %v1557_v34 = vadd.f32 %v1556_v9, %v1555_v59 }
 0x16f   :  { %v1535_v17 = vsel %vm40_vm0, %v1504_v6, 0.0  ;;  %v1537_v13 = vsel %vm40_vm0, %v1506_v20, 0.0  ;;  %v1539_v42 = vsel %vm40_vm0, %v1508_v14, 0.0  ;;  %v1560_v27 = vsel %vm40_vm0, %v1499_v53, 0.0 }
 0x170   :  { %v1534_v23 = vadd.f32 %v1533_v38, %v1532_v7  ;;  %v1541_v62 = vsel %vm40_vm0, %v1510_v24, 0.0  ;;  %v1559_v25 = vadd.f32 %v1558_v5, %v1557_v34  ;;  %v1562_v49 = vsel %vm40_vm0, %v1501_v36, 0.0  ;;  %v4172_v5 = vld [vmem:[#allocation3_spill] sm:$0xff] }
 0x171   :  { %v1564_v44 = vsel %vm40_vm0, %v1503_v21, 0.0  ;;  %v1583_v58 = vperm.slane %v2523_v26, 3  ;;  %v1584_v35 = vperm.slane %v2525_v61, 3  ;;  %v1585_v6 = vperm.slane %v2527_v18, 3 }
 0x172   :  { %v1536_v10 = vadd.f32 %v1535_v17, %v1534_v23  ;;  %v1561_v37 = vadd.f32 %v1560_v27, %v1559_v25  ;;  %v1566_v20 = vsel %vm40_vm0, %v1505_v3, 0.0  ;;  %vm1575_vm12 = vcmp.eq.s32.totalorder %v3334_v8, 10 }
 0x173   :  { %v1586_v53 = vperm.slane %v2531_v50, 3  ;;  %v1599_v14 = vmul.f32 %v1583_v58, %v2513_v54  ;;  %v1601_v36 = vmul.f32 %v1584_v35, %v2519_v32  ;;  %v1603_v12 = vmul.f32 %v1585_v6, %v4166_v60 }
 0x174   :  { %v1538_v9 = vadd.f32 %v1537_v13, %v1536_v10  ;;  %v1563_v21 = vadd.f32 %v1562_v49, %v1561_v37  ;;  %v1568_v24 = vsel %vm40_vm0, %v1507_v45, 0.0  ;;  %v1570_v11 = vsel %vm40_vm0, %v1509_v30, 0.0  ;;  %v4173_v13 = vld [vmem:[#allocation4_spill] sm:$0xff] }
 0x175   :  { %v1572_v59 = vsel %vm40_vm0, %v1511_v29, 0.0  ;;  %v1577_v3 = vsel %vm1575_vm12, 0.001, %v4167_v55  ;;  %v1587_v38 = vperm.slane %v4133_v51, 3  ;;  %v1605_v7 = vmul.f32 %v1586_v53, %v4172_v5 }
 0x176   :  { %v1540_v34 = vadd.f32 %v1539_v42, %v1538_v9  ;;  %v1565_v17 = vadd.f32 %v1564_v44, %v1563_v21  ;;  %v1588_v27 = vperm.slane %v2539_v31, 3  ;;  %v1589_v23 = vperm.slane %v2543_v63, 3 }
 0x177   :  { %v1607_v25 = vmul.f32 %v1587_v38, %v4173_v13  ;;  %v1631_v45 = vsel %vm40_vm0, %v1599_v14, 0.0  ;;  %v1632_v30 = vsel %vm40_vm0, %v1601_v36, 0.0  ;;  %v1634_v29 = vsel %vm40_vm0, %v1603_v12, 0.0 }
 0x178   :  { %v1542_v49 = vadd.f32 %v1541_v62, %v1540_v34  ;;  %v1567_v10 = vadd.f32 %v1566_v20, %v1565_v17  ;;  %v1600_v37 = vmul.f32 %v1583_v58, %v2523_v26  ;;  %v1633_v55 = vadd.f32 %v1632_v30, %v1631_v45 }
 0x179   :  { %v1602_v42 = vmul.f32 %v1584_v35, %v2525_v61  ;;  %v1604_v44 = vmul.f32 %v1585_v6, %v2527_v18  ;;  %v1609_v9 = vmul.f32 %v1588_v27, %v4171_v28  ;;  %v1636_v21 = vsel %vm40_vm0, %v1605_v7, 0.0 }
 0x17a   :  { %v1569_v13 = vadd.f32 %v1568_v24, %v1567_v10  ;;  %2200 = vst.msk [vmem:[%s4031_s1 + $0xa0] sm:$0xff] %vm40_vm0, %v1542_v49  ;;  %v1590_v62 = vperm.slane %v2548_v33, 3  ;;  %v1591_v20 = vperm.slane %v2554_v19, 3  ;;  %v1635_v58 = vadd.f32 %v1634_v29, %v1633_v55 }
 0x17b   :  { %v1592_v14 = vperm.slane %v2558_v0, 3  ;;  %v1606_v35 = vmul.f32 %v1586_v53, %v2531_v50  ;;  %v1611_v6 = vmul.f32 %v1589_v23, %v2541_v46  ;;  %v1638_v36 = vsel %vm40_vm0, %v1607_v25, 0.0 }
 0x17c   :  { %v1571_v12 = vadd.f32 %v1570_v11, %v1569_v13  ;;  %v1608_v24 = vmul.f32 %v1587_v38, %v4133_v51  ;;  %v1613_v7 = vmul.f32 %v1590_v62, %v2546_v22  ;;  %v1637_v34 = vadd.f32 %v1636_v21, %v1635_v58 }
 0x17d   :  { %v1640_v17 = vsel %vm40_vm0, %v1609_v9, 0.0  ;;  %v1662_v45 = vsel %vm40_vm0, %v1600_v37, 0.0  ;;  %v1663_v55 = vsel %vm40_vm0, %v1602_v42, 0.0  ;;  %v1665_v30 = vsel %vm40_vm0, %v1604_v44, 0.0 }
 0x17e   :  { %v1573_v29 = vadd.f32 %v1572_v59, %v1571_v12  ;;  %v1593_v53 = vperm.slane %v2562_v2, 3  ;;  %v1639_v49 = vadd.f32 %v1638_v36, %v1637_v34  ;;  %v1664_v10 = vadd.f32 %v1663_v55, %v1662_v45 }
 0x17f   :  { %v1610_v11 = vmul.f32 %v1588_v27, %v2539_v31  ;;  %v1615_v38 = vmul.f32 %v1591_v20, %v2552_v43  ;;  %v1642_v13 = vsel %vm40_vm0, %v1611_v6, 0.0  ;;  %v1667_v25 = vsel %vm40_vm0, %v1606_v35, 0.0 }
 0x180   :  { %v1579_v9 = vadd.f32 %v1577_v3, %v1573_v29  ;;  %v1594_v37 = vperm.slane %v2567_v47, 3  ;;  %v1641_v21 = vadd.f32 %v1640_v17, %v1639_v49  ;;  %v1666_v42 = vadd.f32 %v1665_v30, %v1664_v10 }
 0x181   :  { %v1612_v44 = vmul.f32 %v1589_v23, %v2543_v63  ;;  %v1617_v59 = vmul.f32 %v1592_v14, %v2556_v56  ;;  %v1644_v58 = vsel %vm40_vm0, %v1613_v7, 0.0  ;;  %v1669_v36 = vsel %vm40_vm0, %v1608_v24, 0.0 }
 0x182   :  { %2201 = vst.msk [vmem:[%s4031_s1 + $0xa8] sm:$0xff] %vm40_vm0, %v1579_v9  ;;  %v1595_v27 = vperm.slane %v2571_v57, 3  ;;  %v1596_v3 = vperm.slane %v2579_v40, 3  ;;  %v1643_v35 = vadd.f32 %v1642_v13, %v1641_v21  ;;  %v1668_v6 = vadd.f32 %v1667_v25, %v1666_v42 }
 0x183   :  { %v1614_v12 = vmul.f32 %v1590_v62, %v2548_v33  ;;  %v1619_v23 = vmul.f32 %v1593_v53, %v2560_v1  ;;  %v1646_v34 = vsel %vm40_vm0, %v1615_v38, 0.0  ;;  %v1671_v7 = vsel %vm40_vm0, %v1610_v11, 0.0 }
 0x184   :  { %v1597_v24 = vperm.slane %v2583_v41, 3  ;;  %v1598_v17 = vperm.slane %v2587_v39, 3  ;;  %v1645_v45 = vadd.f32 %v1644_v58, %v1643_v35  ;;  %v1670_v55 = vadd.f32 %v1669_v36, %v1668_v6 }
 0x185   :  { %v1616_v30 = vmul.f32 %v1591_v20, %v2554_v19  ;;  %v1621_v29 = vmul.f32 %v1594_v37, %v2564_v52  ;;  %v1648_v49 = vsel %vm40_vm0, %v1617_v59, 0.0  ;;  %v1673_v62 = vsel %vm40_vm0, %v1612_v44, 0.0 }
 0x186   :  { %v1618_v10 = vmul.f32 %v1592_v14, %v2558_v0  ;;  %v1620_v38 = vmul.f32 %v1593_v53, %v2562_v2  ;;  %v1647_v13 = vadd.f32 %v1646_v34, %v1645_v45  ;;  %v1672_v11 = vadd.f32 %v1671_v7, %v1670_v55 }
 0x187   :  { %v1623_v25 = vmul.f32 %v1595_v27, %v2569_v4  ;;  %v1625_v9 = vmul.f32 %v1596_v3, %v2574_v48  ;;  %v1650_v21 = vsel %vm40_vm0, %v1619_v23, 0.0  ;;  %v1675_v20 = vsel %vm40_vm0, %v1614_v12, 0.0 }
 0x188   :  { %v1627_v42 = vmul.f32 %v1597_v24, %v2581_v15  ;;  %v1629_v59 = vmul.f32 %v1598_v17, %v2585_v16  ;;  %v1649_v58 = vadd.f32 %v1648_v49, %v1647_v13  ;;  %v1674_v44 = vadd.f32 %v1673_v62, %v1672_v11 }
 0x189   :  { %v1622_v14 = vmul.f32 %v1594_v37, %v2567_v47  ;;  %v1624_v53 = vmul.f32 %v1595_v27, %v2571_v57  ;;  %v1652_v36 = vsel %vm40_vm0, %v1621_v29, 0.0  ;;  %v1677_v35 = vsel %vm40_vm0, %v1616_v30, 0.0 }
 0x18a   :  { %v1626_v6 = vmul.f32 %v1596_v3, %v2579_v40  ;;  %v1628_v23 = vmul.f32 %v1597_v24, %v2583_v41  ;;  %v1651_v34 = vadd.f32 %v1650_v21, %v1649_v58  ;;  %v1676_v12 = vadd.f32 %v1675_v20, %v1674_v44 }
 0x18b   :  { %v1630_v7 = vmul.f32 %v1598_v17, %v2587_v39  ;;  %v1654_v45 = vsel %vm40_vm0, %v1623_v25, 0.0  ;;  %v1656_v55 = vsel %vm40_vm0, %v1625_v9, 0.0  ;;  %v1679_v37 = vsel %vm40_vm0, %v1618_v10, 0.0 }
 0x18c   :  { %v1653_v49 = vadd.f32 %v1652_v36, %v1651_v34  ;;  %v1658_v27 = vsel %vm40_vm0, %v1627_v42, 0.0  ;;  %v1660_v29 = vsel %vm40_vm0, %v1629_v59, 0.0  ;;  %v1678_v30 = vadd.f32 %v1677_v35, %v1676_v12 }
 0x18d   :  { %v1681_v3 = vsel %vm40_vm0, %v1620_v38, 0.0  ;;  %v1683_v24 = vsel %vm40_vm0, %v1622_v14, 0.0  ;;  %v1702_v62 = vperm.slane %v2523_v26, 4  ;;  %v1703_v17 = vperm.slane %v2525_v61, 4 }
 0x18e   :  { %v1655_v13 = vadd.f32 %v1654_v45, %v1653_v49  ;;  %v1680_v11 = vadd.f32 %v1679_v37, %v1678_v30  ;;  %v1685_v25 = vsel %vm40_vm0, %v1624_v53, 0.0  ;;  %v1704_v10 = vperm.slane %v2527_v18, 4 }
 0x18f   :  { %v1687_v9 = vsel %vm40_vm0, %v1626_v6, 0.0  ;;  %v1705_v21 = vperm.slane %v2531_v50, 4  ;;  %v1718_v20 = vmul.f32 %v1702_v62, %v2513_v54  ;;  %v1720_v38 = vmul.f32 %v1703_v17, %v2519_v32 }
 0x190   :  { %v1657_v42 = vadd.f32 %v1656_v55, %v1655_v13  ;;  %v1682_v59 = vadd.f32 %v1681_v3, %v1680_v11  ;;  %v1689_v58 = vsel %vm40_vm0, %v1628_v23, 0.0  ;;  %v1722_v44 = vmul.f32 %v1704_v10, %v4166_v60  ;;  %v4174_v55 = vld [vmem:[#allocation4_spill] sm:$0xff] }
 0x191   :  { %v1691_v14 = vsel %vm40_vm0, %v1630_v7, 0.0  ;;  %vm1694_vm13 = vcmp.eq.s32.totalorder %v3334_v8, 11  ;;  %v1706_v53 = vperm.slane %v4133_v51, 4  ;;  %v1724_v36 = vmul.f32 %v1705_v21, %v4172_v5 }
 0x192   :  { %v1659_v35 = vadd.f32 %v1658_v27, %v1657_v42  ;;  %v1684_v6 = vadd.f32 %v1683_v24, %v1682_v59  ;;  %v1707_v34 = vperm.slane %v2539_v31, 4  ;;  %v1708_v12 = vperm.slane %v2543_v63, 4 }
 0x193   :  { %v1719_v45 = vmul.f32 %v1702_v62, %v2523_v26  ;;  %v1726_v23 = vmul.f32 %v1706_v53, %v4174_v55  ;;  %v1750_v37 = vsel %vm40_vm0, %v1718_v20, 0.0  ;;  %v1751_v7 = vsel %vm40_vm0, %v1720_v38, 0.0 }
 0x194   :  { %v1661_v49 = vadd.f32 %v1660_v29, %v1659_v35  ;;  %v1686_v30 = vadd.f32 %v1685_v25, %v1684_v6  ;;  %v1752_v3 = vadd.f32 %v1751_v7, %v1750_v37  ;;  %v1753_v13 = vsel %vm40_vm0, %v1722_v44, 0.0 }
 0x195   :  { %v1721_v27 = vmul.f32 %v1703_v17, %v2525_v61  ;;  %v1723_v24 = vmul.f32 %v1704_v10, %v2527_v18  ;;  %v1728_v11 = vmul.f32 %v1707_v34, %v4171_v28  ;;  %v1755_v42 = vsel %vm40_vm0, %v1724_v36, 0.0 }
 0x196   :  { %v1688_v62 = vadd.f32 %v1687_v9, %v1686_v30  ;;  %v4175_v59 = vmov 0.0   ;;  %2202 = vst.msk [vmem:[%s4031_s1 + $0xb0] sm:$0xff] %vm40_vm0, %v1661_v49  ;;  %v1709_v29 = vperm.slane %v2548_v33, 4  ;;  %v1754_v25 = vadd.f32 %v1753_v13, %v1752_v3 }
 0x197   :  { %v1696_v20 = vsel %vm1694_vm13, 0.001, %v4175_v59  ;;  %v1710_v17 = vperm.slane %v2554_v19, 4  ;;  %v1725_v10 = vmul.f32 %v1705_v21, %v2531_v50  ;;  %v1730_v38 = vmul.f32 %v1708_v12, %v2541_v46 }
 0x198   :  { %v1757_v9 = vsel %vm40_vm0, %v1726_v23, 0.0  ;;  %v1690_v44 = vadd.f32 %v1689_v58, %v1688_v62  ;;  %v1727_v36 = vmul.f32 %v1706_v53, %v4133_v51  ;;  %v1732_v35 = vmul.f32 %v1709_v29, %v2546_v22 }
 0x199   :  { %v1756_v6 = vadd.f32 %v1755_v42, %v1754_v25  ;;  %v1759_v37 = vsel %vm40_vm0, %v1728_v11, 0.0  ;;  %v1781_v7 = vsel %vm40_vm0, %v1719_v45, 0.0  ;;  %v1782_v49 = vsel %vm40_vm0, %v1721_v27, 0.0 }
 0x19a   :  { %v1784_v30 = vsel %vm40_vm0, %v1723_v24, 0.0  ;;  %v1692_v3 = vadd.f32 %v1691_v14, %v1690_v44  ;;  %v1711_v21 = vperm.slane %v2558_v0, 4  ;;  %v1783_v46 = vadd.f32 %v1782_v49, %v1781_v7 }
 0x19b   :  { %v1758_v13 = vadd.f32 %v1757_v9, %v1756_v6  ;;  %v1729_v58 = vmul.f32 %v1707_v34, %v2539_v31  ;;  %v1734_v53 = vmul.f32 %v1710_v17, %v2552_v43  ;;  %v1761_v23 = vsel %vm40_vm0, %v1730_v38, 0.0 }
 0x19c   :  { %v1786_v42 = vsel %vm40_vm0, %v1725_v10, 0.0  ;;  %v1698_v11 = vadd.f32 %v1696_v20, %v1692_v3  ;;  %v1712_v45 = vperm.slane %v2562_v2, 4  ;;  %v1785_v27 = vadd.f32 %v1784_v30, %v1783_v46 }
 0x19d   :  { %v1760_v62 = vadd.f32 %v1759_v37, %v1758_v13  ;;  %v1731_v24 = vmul.f32 %v1708_v12, %v2543_v63  ;;  %v1736_v14 = vmul.f32 %v1711_v21, %v2556_v56  ;;  %v1763_v25 = vsel %vm40_vm0, %v1732_v35, 0.0 }
 0x19e   :  { %v1788_v9 = vsel %vm40_vm0, %v1727_v36, 0.0  ;;  %2203 = vst.msk [vmem:[%s4031_s1 + $0xb8] sm:$0xff] %vm40_vm0, %v1698_v11  ;;  %v1713_v34 = vperm.slane %v2567_v47, 4  ;;  %v1787_v10 = vadd.f32 %v1786_v42, %v1785_v27  ;;  %v1733_v38 = vmul.f32 %v1709_v29, %v2548_v33 }
 0x19f   :  { %v1762_v20 = vadd.f32 %v1761_v23, %v1760_v62  ;;  %v1738_v46 = vmul.f32 %v1712_v45, %v2560_v1  ;;  %v1765_v12 = vsel %vm40_vm0, %v1734_v53, 0.0  ;;  %v1790_v44 = vsel %vm40_vm0, %v1729_v58, 0.0 }
 0x1a0   :  { %v1714_v35 = vperm.slane %v2571_v57, 4  ;;  %v1715_v36 = vperm.slane %v2579_v40, 4  ;;  %v1789_v37 = vadd.f32 %v1788_v9, %v1787_v10  ;;  %v1735_v7 = vmul.f32 %v1710_v17, %v2554_v19 }
 0x1a1   :  { %v1764_v6 = vadd.f32 %v1763_v25, %v1762_v20  ;;  %v1740_v49 = vmul.f32 %v1713_v34, %v2564_v52  ;;  %v1767_v30 = vsel %vm40_vm0, %v1736_v14, 0.0  ;;  %v1792_v29 = vsel %vm40_vm0, %v1731_v24, 0.0 }
 0x1a2   :  { %v1716_v3 = vperm.slane %v2583_v41, 4  ;;  %v1717_v13 = vperm.slane %v2587_v39, 4  ;;  %v1791_v58 = vadd.f32 %v1790_v44, %v1789_v37  ;;  %v1737_v23 = vmul.f32 %v1711_v21, %v2558_v0 }
 0x1a3   :  { %v1766_v53 = vadd.f32 %v1765_v12, %v1764_v6  ;;  %v1742_v42 = vmul.f32 %v1714_v35, %v2569_v4  ;;  %v1769_v11 = vsel %vm40_vm0, %v1738_v46, 0.0  ;;  %v1794_v17 = vsel %vm40_vm0, %v1733_v38, 0.0 }
 0x1a4   :  { %v1739_v62 = vmul.f32 %v1712_v45, %v2562_v2  ;;  %v1744_v27 = vmul.f32 %v1715_v36, %v2574_v48  ;;  %v1793_v24 = vadd.f32 %v1792_v29, %v1791_v58  ;;  %v1746_v25 = vmul.f32 %v1716_v3, %v2581_v15 }
 0x1a5   :  { %v1768_v14 = vadd.f32 %v1767_v30, %v1766_v53  ;;  %v1748_v9 = vmul.f32 %v1717_v13, %v2585_v16  ;;  %v1771_v20 = vsel %vm40_vm0, %v1740_v49, 0.0  ;;  %v1796_v21 = vsel %vm40_vm0, %v1735_v7, 0.0 }
 0x1a6   :  { %v1741_v10 = vmul.f32 %v1713_v34, %v2567_v47  ;;  %v1743_v46 = vmul.f32 %v1714_v35, %v2571_v57  ;;  %v1795_v38 = vadd.f32 %v1794_v17, %v1793_v24  ;;  %v1745_v45 = vmul.f32 %v1715_v36, %v2579_v40 }
 0x1a7   :  { %v1770_v12 = vadd.f32 %v1769_v11, %v1768_v14  ;;  %v1747_v44 = vmul.f32 %v1716_v3, %v2583_v41  ;;  %v1773_v6 = vsel %vm40_vm0, %v1742_v42, 0.0  ;;  %v1798_v37 = vsel %vm40_vm0, %v1737_v23, 0.0 }
 0x1a8   :  { %v1749_v30 = vmul.f32 %v1717_v13, %v2587_v39  ;;  %v1775_v49 = vsel %vm40_vm0, %v1744_v27, 0.0  ;;  %v1797_v7 = vadd.f32 %v1796_v21, %v1795_v38  ;;  %v1777_v34 = vsel %vm40_vm0, %v1746_v25, 0.0 }
 0x1a9   :  { %v1772_v29 = vadd.f32 %v1771_v20, %v1770_v12  ;;  %v1779_v35 = vsel %vm40_vm0, %v1748_v9, 0.0  ;;  %v1800_v53 = vsel %vm40_vm0, %v1739_v62, 0.0  ;;  %v1821_v36 = vperm.slane %v2523_v26, 5 }
 0x1aa   :  { %v1799_v3 = vadd.f32 %v1798_v37, %v1797_v7  ;;  %v1822_v42 = vperm.slane %v2525_v61, 5  ;;  %v1823_v23 = vperm.slane %v2527_v18, 5  ;;  %v1802_v13 = vsel %vm40_vm0, %v1741_v10, 0.0 }
 0x1ab   :  { %v1774_v58 = vadd.f32 %v1773_v6, %v1772_v29  ;;  %vm1813_vm14 = vcmp.eq.s32.totalorder %v3334_v8, 12  ;;  %v1824_v11 = vperm.slane %v2531_v50, 5  ;;  %v1837_v17 = vmul.f32 %v1821_v36, %v2513_v54 }
 0x1ac   :  { %v1801_v14 = vadd.f32 %v1800_v53, %v1799_v3  ;;  %v1839_v62 = vmul.f32 %v1822_v42, %v2519_v32  ;;  %v1841_v24 = vmul.f32 %v1823_v23, %v4166_v60  ;;  %v1804_v25 = vsel %vm40_vm0, %v1743_v46, 0.0 }
 0x1ad   :  { %v1776_v27 = vadd.f32 %v1775_v49, %v1774_v58  ;;  %v1806_v9 = vsel %vm40_vm0, %v1745_v45, 0.0  ;;  %v1808_v20 = vsel %vm40_vm0, %v1747_v44, 0.0  ;;  %v1825_v21 = vperm.slane %v4133_v51, 5 }
 0x1ae   :  { %v1803_v12 = vadd.f32 %v1802_v13, %v1801_v14  ;;  %v1810_v38 = vsel %vm40_vm0, %v1749_v30, 0.0  ;;  %v1843_v6 = vmul.f32 %v1824_v11, %v4172_v5  ;;  %v1815_v37 = vsel %vm1813_vm14, 0.001, %v4175_v59 }
 0x1af   :  { %v1778_v10 = vadd.f32 %v1777_v34, %v1776_v27  ;;  %v1826_v29 = vperm.slane %v2539_v31, 5  ;;  %v1845_v49 = vmul.f32 %v1825_v21, %v4174_v55  ;;  %v1869_v46 = vsel %vm40_vm0, %v1837_v17, 0.0 }
 0x1b0   :  { %v1805_v45 = vadd.f32 %v1804_v25, %v1803_v12  ;;  %v1870_v44 = vsel %vm40_vm0, %v1839_v62, 0.0  ;;  %v1872_v53 = vsel %vm40_vm0, %v1841_v24, 0.0  ;;  %v1827_v34 = vperm.slane %v2543_v63, 5 }
 0x1b1   :  { %v1780_v7 = vadd.f32 %v1779_v35, %v1778_v10  ;;  %v1838_v30 = vmul.f32 %v1821_v36, %v2523_v26  ;;  %v1840_v58 = vmul.f32 %v1822_v42, %v2525_v61  ;;  %v1871_v3 = vadd.f32 %v1870_v44, %v1869_v46 }
 0x1b2   :  { %v1807_v13 = vadd.f32 %v1806_v9, %v1805_v45  ;;  %v1842_v35 = vmul.f32 %v1823_v23, %v2527_v18  ;;  %v1847_v17 = vmul.f32 %v1826_v29, %v4171_v28  ;;  %v1874_v27 = vsel %vm40_vm0, %v1843_v6, 0.0  ;;  %v4176_v9 = vld [vmem:[#allocation7_spill] sm:$0xff] }
 0x1b3   :  { %2204 = vst.msk [vmem:[%s4031_s1 + $0xc0] sm:$0xff] %vm40_vm0, %v1780_v7  ;;  %v1828_v14 = vperm.slane %v2548_v33, 5  ;;  %v1829_v62 = vperm.slane %v2554_v19, 5  ;;  %v1844_v36 = vmul.f32 %v1824_v11, %v2531_v50  ;;  %v1873_v42 = vadd.f32 %v1872_v53, %v1871_v3 }
 0x1b4   :  { %v1809_v24 = vadd.f32 %v1808_v20, %v1807_v13  ;;  %v1846_v25 = vmul.f32 %v1825_v21, %v4133_v51  ;;  %v1849_v10 = vmul.f32 %v1827_v34, %v4176_v9  ;;  %v1876_v12 = vsel %vm40_vm0, %v1845_v49, 0.0 }
 0x1b5   :  { %v1851_v23 = vmul.f32 %v1828_v14, %v2546_v22  ;;  %v1875_v46 = vadd.f32 %v1874_v27, %v1873_v42  ;;  %v1900_v7 = vsel %vm40_vm0, %v1838_v30, 0.0  ;;  %v1901_v6 = vsel %vm40_vm0, %v1840_v58, 0.0 }
 0x1b6   :  { %v1811_v45 = vadd.f32 %v1810_v38, %v1809_v24  ;;  %v1878_v44 = vsel %vm40_vm0, %v1847_v17, 0.0  ;;  %v1902_v59 = vadd.f32 %v1901_v6, %v1900_v7  ;;  %v1903_v11 = vsel %vm40_vm0, %v1842_v35, 0.0 }
 0x1b7   :  { %v1830_v20 = vperm.slane %v2558_v0, 5  ;;  %v1848_v21 = vmul.f32 %v1826_v29, %v2539_v31  ;;  %v1877_v53 = vadd.f32 %v1876_v12, %v1875_v46  ;;  %v1905_v49 = vsel %vm40_vm0, %v1844_v36, 0.0 }
 0x1b8   :  { %v1817_v3 = vadd.f32 %v1815_v37, %v1811_v45  ;;  %v1853_v13 = vmul.f32 %v1829_v62, %v2552_v43  ;;  %v1880_v30 = vsel %vm40_vm0, %v1849_v10, 0.0  ;;  %v1904_v27 = vadd.f32 %v1903_v11, %v1902_v59 }
 0x1b9   :  { %v1831_v38 = vperm.slane %v2562_v2, 5  ;;  %v1850_v58 = vmul.f32 %v1827_v34, %v2543_v63  ;;  %v1879_v17 = vadd.f32 %v1878_v44, %v1877_v53  ;;  %v1907_v35 = vsel %vm40_vm0, %v1846_v25, 0.0 }
 0x1ba   :  { %2205 = vst.msk [vmem:[%s4031_s1 + $0xc8] sm:$0xff] %vm40_vm0, %v1817_v3  ;;  %v1832_v29 = vperm.slane %v2567_v47, 5  ;;  %v1855_v37 = vmul.f32 %v1830_v20, %v2556_v56  ;;  %v1882_v36 = vsel %vm40_vm0, %v1851_v23, 0.0  ;;  %v1906_v42 = vadd.f32 %v1905_v49, %v1904_v27 }
 0x1bb   :  { %v1833_v59 = vperm.slane %v2571_v57, 5  ;;  %v1852_v24 = vmul.f32 %v1828_v14, %v2548_v33  ;;  %v1881_v34 = vadd.f32 %v1880_v30, %v1879_v17  ;;  %v1909_v10 = vsel %vm40_vm0, %v1848_v21, 0.0 }
 0x1bc   :  { %v1834_v25 = vperm.slane %v2579_v40, 5  ;;  %v1857_v12 = vmul.f32 %v1831_v38, %v2560_v1  ;;  %v1884_v46 = vsel %vm40_vm0, %v1853_v13, 0.0  ;;  %v1908_v7 = vadd.f32 %v1907_v35, %v1906_v42 }
 0x1bd   :  { %v1835_v6 = vperm.slane %v2583_v41, 5  ;;  %v1854_v45 = vmul.f32 %v1829_v62, %v2554_v19  ;;  %v1883_v23 = vadd.f32 %v1882_v36, %v1881_v34  ;;  %v1911_v44 = vsel %vm40_vm0, %v1850_v58, 0.0 }
 0x1be   :  { %v1836_v11 = vperm.slane %v2587_v39, 5  ;;  %v1859_v14 = vmul.f32 %v1832_v29, %v2564_v52  ;;  %v1886_v21 = vsel %vm40_vm0, %v1855_v37, 0.0  ;;  %v1910_v53 = vadd.f32 %v1909_v10, %v1908_v7 }
 0x1bf   :  { %v1856_v49 = vmul.f32 %v1830_v20, %v2558_v0  ;;  %v1858_v3 = vmul.f32 %v1831_v38, %v2562_v2  ;;  %v1885_v13 = vadd.f32 %v1884_v46, %v1883_v23  ;;  %v1913_v30 = vsel %vm40_vm0, %v1852_v24, 0.0 }
 0x1c0   :  { %v1861_v27 = vmul.f32 %v1833_v59, %v2569_v4  ;;  %v1863_v62 = vmul.f32 %v1834_v25, %v2574_v48  ;;  %v1888_v58 = vsel %vm40_vm0, %v1857_v12, 0.0  ;;  %v1912_v17 = vadd.f32 %v1911_v44, %v1910_v53 }
 0x1c1   :  { %v1865_v35 = vmul.f32 %v1835_v6, %v2581_v15  ;;  %v1867_v36 = vmul.f32 %v1836_v11, %v2585_v16  ;;  %v1887_v37 = vadd.f32 %v1886_v21, %v1885_v13  ;;  %v1915_v42 = vsel %vm40_vm0, %v1854_v45, 0.0 }
 0x1c2   :  { %v1860_v20 = vmul.f32 %v1832_v29, %v2567_v47  ;;  %v1862_v38 = vmul.f32 %v1833_v59, %v2571_v57  ;;  %v1890_v24 = vsel %vm40_vm0, %v1859_v14, 0.0  ;;  %v1914_v34 = vadd.f32 %v1913_v30, %v1912_v17 }
 0x1c3   :  { %v1864_v10 = vmul.f32 %v1834_v25, %v2579_v40  ;;  %v1866_v46 = vmul.f32 %v1835_v6, %v2583_v41  ;;  %v1889_v12 = vadd.f32 %v1888_v58, %v1887_v37  ;;  %v1917_v7 = vsel %vm40_vm0, %v1856_v49, 0.0 }
 0x1c4   :  { %v1868_v23 = vmul.f32 %v1836_v11, %v2587_v39  ;;  %v1892_v44 = vsel %vm40_vm0, %v1861_v27, 0.0  ;;  %v1894_v45 = vsel %vm40_vm0, %v1863_v62, 0.0  ;;  %v1916_v21 = vadd.f32 %v1915_v42, %v1914_v34 }
 0x1c5   :  { %v1891_v29 = vadd.f32 %v1890_v24, %v1889_v12  ;;  %v1896_v59 = vsel %vm40_vm0, %v1865_v35, 0.0  ;;  %v1898_v14 = vsel %vm40_vm0, %v1867_v36, 0.0  ;;  %v1919_v53 = vsel %vm40_vm0, %v1858_v3, 0.0 }
 0x1c6   :  { %v1918_v25 = vadd.f32 %v1917_v7, %v1916_v21  ;;  %v1940_v6 = vperm.slane %v2523_v26, 6  ;;  %v1941_v13 = vperm.slane %v2525_v61, 6  ;;  %v1942_v49 = vperm.slane %v2527_v18, 6 }
 0x1c7   :  { %v1893_v11 = vadd.f32 %v1892_v44, %v1891_v29  ;;  %v1921_v30 = vsel %vm40_vm0, %v1860_v20, 0.0  ;;  %v1923_v27 = vsel %vm40_vm0, %v1862_v38, 0.0  ;;  %v1943_v62 = vperm.slane %v2531_v50, 6 }
 0x1c8   :  { %v1920_v58 = vadd.f32 %v1919_v53, %v1918_v25  ;;  %v1956_v17 = vmul.f32 %v1940_v6, %v2513_v54  ;;  %v1958_v35 = vmul.f32 %v1941_v13, %v2519_v32  ;;  %v1960_v3 = vmul.f32 %v1942_v49, %v4166_v60 }
 0x1c9   :  { %v1895_v36 = vadd.f32 %v1894_v45, %v1893_v11  ;;  %v1925_v37 = vsel %vm40_vm0, %v1864_v10, 0.0  ;;  %v1927_v42 = vsel %vm40_vm0, %v1866_v46, 0.0  ;;  %v1944_v24 = vperm.slane %v4133_v51, 6 }
 0x1ca   :  { %v1922_v34 = vadd.f32 %v1921_v30, %v1920_v58  ;;  %v1929_v20 = vsel %vm40_vm0, %v1868_v23, 0.0  ;;  %vm1932_vm15 = vcmp.eq.s32.totalorder %v3334_v8, 13  ;;  %v1962_v38 = vmul.f32 %v1943_v62, %v4172_v5 }
 0x1cb   :  { %v1897_v12 = vadd.f32 %v1896_v59, %v1895_v36  ;;  %v1945_v7 = vperm.slane %v2539_v31, 6  ;;  %v1946_v44 = vperm.slane %v2543_v63, 6  ;;  %v1964_v45 = vmul.f32 %v1944_v24, %v4174_v55 }
 0x1cc   :  { %v1924_v21 = vadd.f32 %v1923_v27, %v1922_v34  ;;  %v1988_v10 = vsel %vm40_vm0, %v1956_v17, 0.0  ;;  %v1989_v46 = vsel %vm40_vm0, %v1958_v35, 0.0  ;;  %v1991_v29 = vsel %vm40_vm0, %v1960_v3, 0.0 }
 0x1cd   :  { %v1899_v53 = vadd.f32 %v1898_v14, %v1897_v12  ;;  %v1957_v23 = vmul.f32 %v1940_v6, %v2523_v26  ;;  %v1959_v25 = vmul.f32 %v1941_v13, %v2525_v61  ;;  %v1990_v11 = vadd.f32 %v1989_v46, %v1988_v10 }
 0x1ce   :  { %v1926_v59 = vadd.f32 %v1925_v37, %v1924_v21  ;;  %v1961_v30 = vmul.f32 %v1942_v49, %v2527_v18  ;;  %v1966_v58 = vmul.f32 %v1945_v7, %v4171_v28  ;;  %v1993_v36 = vsel %vm40_vm0, %v1962_v38, 0.0 }
 0x1cf   :  { %v4177_v27 = vmov 0.0   ;;  %2206 = vst.msk [vmem:[%s4031_s1 + $0xd0] sm:$0xff] %vm40_vm0, %v1899_v53  ;;  %v1947_v14 = vperm.slane %v2548_v33, 6  ;;  %v1948_v6 = vperm.slane %v2554_v19, 6  ;;  %v1992_v13 = vadd.f32 %v1991_v29, %v1990_v11 }
 0x1d0   :  { %v1934_v17 = vsel %vm1932_vm15, 0.001, %v4177_v27  ;;  %v1928_v35 = vadd.f32 %v1927_v42, %v1926_v59  ;;  %v1963_v49 = vmul.f32 %v1943_v62, %v2531_v50  ;;  %v1968_v3 = vmul.f32 %v1946_v44, %v4176_v9 }
 0x1d1   :  { %v1995_v37 = vsel %vm40_vm0, %v1964_v45, 0.0  ;;  %v1965_v34 = vmul.f32 %v1944_v24, %v4133_v51  ;;  %v1970_v38 = vmul.f32 %v1947_v14, %v2546_v22  ;;  %v1994_v12 = vadd.f32 %v1993_v36, %v1992_v13 }
 0x1d2   :  { %v2019_v21 = vsel %vm40_vm0, %v1957_v23, 0.0  ;;  %v1930_v10 = vadd.f32 %v1929_v20, %v1928_v35  ;;  %v1997_v46 = vsel %vm40_vm0, %v1966_v58, 0.0  ;;  %v2020_v53 = vsel %vm40_vm0, %v1959_v25, 0.0 }
 0x1d3   :  { %v2022_v42 = vsel %vm40_vm0, %v1961_v30, 0.0  ;;  %v1949_v62 = vperm.slane %v2558_v0, 6  ;;  %v1967_v29 = vmul.f32 %v1945_v7, %v2539_v31  ;;  %v1996_v11 = vadd.f32 %v1995_v37, %v1994_v12 }
 0x1d4   :  { %v2021_v45 = vadd.f32 %v2020_v53, %v2019_v21  ;;  %v1936_v59 = vadd.f32 %v1934_v17, %v1930_v10  ;;  %v1972_v24 = vmul.f32 %v1948_v6, %v2552_v43  ;;  %v1999_v36 = vsel %vm40_vm0, %v1968_v3, 0.0 }
 0x1d5   :  { %v2024_v23 = vsel %vm40_vm0, %v1963_v49, 0.0  ;;  %v1950_v20 = vperm.slane %v2562_v2, 6  ;;  %v1951_v58 = vperm.slane %v2567_v47, 6  ;;  %v1998_v25 = vadd.f32 %v1997_v46, %v1996_v11 }
 0x1d6   :  { %v2023_v13 = vadd.f32 %v2022_v42, %v2021_v45  ;;  %2207 = vst.msk [vmem:[%s4031_s1 + $0xd8] sm:$0xff] %vm40_vm0, %v1936_v59  ;;  %v1969_v7 = vmul.f32 %v1946_v44, %v2543_v63  ;;  %v1974_v30 = vmul.f32 %v1949_v62, %v2556_v56  ;;  %v2001_v17 = vsel %vm40_vm0, %v1970_v38, 0.0 }
 0x1d7   :  { %v2026_v35 = vsel %vm40_vm0, %v1965_v34, 0.0  ;;  %v1952_v49 = vperm.slane %v2571_v57, 6  ;;  %v1953_v3 = vperm.slane %v2579_v40, 6  ;;  %v2000_v37 = vadd.f32 %v1999_v36, %v1998_v25 }
 0x1d8   :  { %v2025_v12 = vadd.f32 %v2024_v23, %v2023_v13  ;;  %v1971_v21 = vmul.f32 %v1947_v14, %v2548_v33  ;;  %v1976_v10 = vmul.f32 %v1950_v20, %v2560_v1  ;;  %v2003_v46 = vsel %vm40_vm0, %v1972_v24, 0.0 }
 0x1d9   :  { %v2028_v44 = vsel %vm40_vm0, %v1967_v29, 0.0  ;;  %v1954_v53 = vperm.slane %v2583_v41, 6  ;;  %v1955_v38 = vperm.slane %v2587_v39, 6  ;;  %v2002_v42 = vadd.f32 %v2001_v17, %v2000_v37 }
 0x1da   :  { %v2027_v34 = vadd.f32 %v2026_v35, %v2025_v12  ;;  %v1973_v11 = vmul.f32 %v1948_v6, %v2554_v19  ;;  %v1978_v45 = vmul.f32 %v1951_v58, %v2564_v52  ;;  %v2005_v59 = vsel %vm40_vm0, %v1974_v30, 0.0 }
 0x1db   :  { %v2030_v14 = vsel %vm40_vm0, %v1969_v7, 0.0  ;;  %v1975_v36 = vmul.f32 %v1949_v62, %v2558_v0  ;;  %v1977_v24 = vmul.f32 %v1950_v20, %v2562_v2  ;;  %v2004_v23 = vadd.f32 %v2003_v46, %v2002_v42 }
 0x1dc   :  { %v2029_v29 = vadd.f32 %v2028_v44, %v2027_v34  ;;  %v1980_v25 = vmul.f32 %v1952_v49, %v2569_v4  ;;  %v1982_v13 = vmul.f32 %v1953_v3, %v2574_v48  ;;  %v2007_v17 = vsel %vm40_vm0, %v1976_v10, 0.0 }
 0x1dd   :  { %v2032_v6 = vsel %vm40_vm0, %v1971_v21, 0.0  ;;  %v1984_v35 = vmul.f32 %v1954_v53, %v2581_v15  ;;  %v1986_v30 = vmul.f32 %v1955_v38, %v2585_v16  ;;  %v2006_v37 = vadd.f32 %v2005_v59, %v2004_v23 }
 0x1de   :  { %v2031_v7 = vadd.f32 %v2030_v14, %v2029_v29  ;;  %v1979_v62 = vmul.f32 %v1951_v58, %v2567_v47  ;;  %v1981_v20 = vmul.f32 %v1952_v49, %v2571_v57  ;;  %v2009_v12 = vsel %vm40_vm0, %v1978_v45, 0.0 }
 0x1df   :  { %v2034_v46 = vsel %vm40_vm0, %v1973_v11, 0.0  ;;  %v1983_v44 = vmul.f32 %v1953_v3, %v2579_v40  ;;  %v1985_v10 = vmul.f32 %v1954_v53, %v2583_v41  ;;  %v2008_v42 = vadd.f32 %v2007_v17, %v2006_v37 }
 0x1e0   :  { %v2033_v21 = vadd.f32 %v2032_v6, %v2031_v7  ;;  %v1987_v34 = vmul.f32 %v1955_v38, %v2587_v39  ;;  %v2011_v16 = vsel %vm40_vm0, %v1980_v25, 0.0  ;;  %v2013_v59 = vsel %vm40_vm0, %v1982_v13, 0.0 }
 0x1e1   :  { %v2036_v58 = vsel %vm40_vm0, %v1975_v36, 0.0  ;;  %v2010_v14 = vadd.f32 %v2009_v12, %v2008_v42  ;;  %v2015_v49 = vsel %vm40_vm0, %v1984_v35, 0.0  ;;  %v2017_v45 = vsel %vm40_vm0, %v1986_v30, 0.0 }
 0x1e2   :  { %v2035_v11 = vadd.f32 %v2034_v46, %v2033_v21  ;;  %v2038_v3 = vsel %vm40_vm0, %v1977_v24, 0.0  ;;  %v2059_v53 = vperm.slane %v2523_v26, 7  ;;  %v2060_v23 = vperm.slane %v2525_v61, 7 }
 0x1e3   :  { %v2061_v38 = vperm.slane %v2527_v18, 7  ;;  %v2012_v29 = vadd.f32 %v2011_v16, %v2010_v14  ;;  %v2040_v13 = vsel %vm40_vm0, %v1979_v62, 0.0  ;;  %v2042_v36 = vsel %vm40_vm0, %v1981_v20, 0.0 }
 0x1e4   :  { %v2037_v25 = vadd.f32 %v2036_v58, %v2035_v11  ;;  %v2062_v17 = vperm.slane %v2531_v50, 7  ;;  %v2075_v6 = vmul.f32 %v2059_v53, %v2513_v54  ;;  %v2077_v35 = vmul.f32 %v2060_v23, %v2519_v32 }
 0x1e5   :  { %v2079_v24 = vmul.f32 %v2061_v38, %v4166_v60  ;;  %v2014_v30 = vadd.f32 %v2013_v59, %v2012_v29  ;;  %v2044_v7 = vsel %vm40_vm0, %v1983_v44, 0.0  ;;  %v2046_v12 = vsel %vm40_vm0, %v1985_v10, 0.0 }
 0x1e6   :  { %v2039_v37 = vadd.f32 %v2038_v3, %v2037_v25  ;;  %v2048_v16 = vsel %vm40_vm0, %v1987_v34, 0.0  ;;  %vm2051_vm1 = vcmp.eq.s32.totalorder %v3334_v8, 14  ;;  %v2063_v62 = vperm.slane %v4133_v51, 7 }
 0x1e7   :  { %v2081_v20 = vmul.f32 %v2062_v17, %v4172_v5  ;;  %v2016_v46 = vadd.f32 %v2015_v49, %v2014_v30  ;;  %v2064_v32 = vperm.slane %v2539_v31, 7  ;;  %v2065_v60 = vperm.slane %v2543_v63, 7 }
 0x1e8   :  { %v2041_v54 = vadd.f32 %v2040_v13, %v2039_v37  ;;  %v2083_v42 = vmul.f32 %v2063_v62, %v4174_v55  ;;  %v2107_v44 = vsel %vm40_vm0, %v2075_v6, 0.0  ;;  %v2108_v10 = vsel %vm40_vm0, %v2077_v35, 0.0 }
 0x1e9   :  { %v2110_v21 = vsel %vm40_vm0, %v2079_v24, 0.0  ;;  %v2018_v34 = vadd.f32 %v2017_v45, %v2016_v46  ;;  %v2076_v58 = vmul.f32 %v2059_v53, %v2523_v26  ;;  %v2109_v14 = vadd.f32 %v2108_v10, %v2107_v44 }
 0x1ea   :  { %v2043_v59 = vadd.f32 %v2042_v36, %v2041_v54  ;;  %v2078_v5 = vmul.f32 %v2060_v23, %v2525_v61  ;;  %v2080_v49 = vmul.f32 %v2061_v38, %v2527_v18  ;;  %v2085_v11 = vmul.f32 %v2064_v32, %v4171_v28 }
 0x1eb   :  { %v2112_v3 = vsel %vm40_vm0, %v2081_v20, 0.0  ;;  %v2053_v29 = vsel %vm2051_vm1, 0.001, %v4177_v27  ;;  %2208 = vst.msk [vmem:[%s4031_s1 + $0xe0] sm:$0xff] %vm40_vm0, %v2018_v34  ;;  %v2066_v26 = vperm.slane %v2548_v33, 7  ;;  %v2111_v45 = vadd.f32 %v2110_v21, %v2109_v14 }
 0x1ec   :  { %v2045_v55 = vadd.f32 %v2044_v7, %v2043_v59  ;;  %v2067_v61 = vperm.slane %v2554_v19, 7  ;;  %v2082_v18 = vmul.f32 %v2062_v17, %v2531_v50  ;;  %v2087_v28 = vmul.f32 %v2065_v60, %v4176_v9 }
 0x1ed   :  { %v2114_v53 = vsel %vm40_vm0, %v2083_v42, 0.0  ;;  %v2084_v38 = vmul.f32 %v2063_v62, %v4133_v51  ;;  %v2089_v25 = vmul.f32 %v2066_v26, %v2546_v22  ;;  %v2113_v13 = vadd.f32 %v2112_v3, %v2111_v45 }
 0x1ee   :  { %v2047_v23 = vadd.f32 %v2046_v12, %v2045_v55  ;;  %v2116_v36 = vsel %vm40_vm0, %v2085_v11, 0.0  ;;  %v2138_v6 = vsel %vm40_vm0, %v2076_v58, 0.0  ;;  %v2139_v35 = vsel %vm40_vm0, %v2078_v5, 0.0 }
 0x1ef   :  { %v2141_v24 = vsel %vm40_vm0, %v2080_v49, 0.0  ;;  %v2068_v50 = vperm.slane %v2558_v0, 7  ;;  %v2115_v9 = vadd.f32 %v2114_v53, %v2113_v13  ;;  %v2140_v17 = vadd.f32 %v2139_v35, %v2138_v6  ;;  %v4178_v35 = vld [vmem:[#allocation8_spill] sm:$0xff] }
 0x1f0   :  { %v2049_v30 = vadd.f32 %v2048_v16, %v2047_v23  ;;  %v2086_v37 = vmul.f32 %v2064_v32, %v2539_v31  ;;  %v2091_v51 = vmul.f32 %v2067_v61, %v2552_v43  ;;  %v2118_v22 = vsel %vm40_vm0, %v2087_v28, 0.0 }
 0x1f1   :  { %v2143_v7 = vsel %vm40_vm0, %v2082_v18, 0.0  ;;  %v2069_v62 = vperm.slane %v2562_v2, 7  ;;  %v2117_v20 = vadd.f32 %v2116_v36, %v2115_v9  ;;  %v2142_v46 = vadd.f32 %v2141_v24, %v2140_v17 }
 0x1f2   :  { %v2055_v12 = vadd.f32 %v2053_v29, %v2049_v30  ;;  %v2088_v54 = vmul.f32 %v2065_v60, %v2543_v63  ;;  %v2093_v16 = vmul.f32 %v2068_v50, %v2556_v56  ;;  %v2120_v42 = vsel %vm40_vm0, %v2089_v25, 0.0 }
 0x1f3   :  { %v2145_v44 = vsel %vm40_vm0, %v2084_v38, 0.0  ;;  %v2070_v31 = vperm.slane %v2567_v47, 7  ;;  %v2119_v43 = vadd.f32 %v2118_v22, %v2117_v20  ;;  %v2144_v32 = vadd.f32 %v2143_v7, %v2142_v46 }
 0x1f4   :  { %2209 = vst.msk [vmem:[%s4031_s1 + $0xe8] sm:$0xff] %vm40_vm0, %v2055_v12  ;;  %v2090_v10 = vmul.f32 %v2066_v26, %v2548_v33  ;;  %v2095_v21 = vmul.f32 %v2069_v62, %v2560_v1  ;;  %v2122_v63 = vsel %vm40_vm0, %v2091_v51, 0.0  ;;  %v2147_v56 = vsel %vm40_vm0, %v2086_v37, 0.0 }
 0x1f5   :  { %v2071_v60 = vperm.slane %v2571_v57, 7  ;;  %v2121_v34 = vadd.f32 %v2120_v42, %v2119_v43  ;;  %v2146_v59 = vadd.f32 %v2145_v44, %v2144_v32  ;;  %v2092_v58 = vmul.f32 %v2067_v61, %v2554_v19 }
 0x1f6   :  { %v2097_v14 = vmul.f32 %v2070_v31, %v2564_v52  ;;  %v2124_v5 = vsel %vm40_vm0, %v2093_v16, 0.0  ;;  %v2149_v49 = vsel %vm40_vm0, %v2088_v54, 0.0  ;;  %v2072_v33 = vperm.slane %v2579_v40, 7 }
 0x1f7   :  { %v2123_v11 = vadd.f32 %v2122_v63, %v2121_v34  ;;  %v2148_v1 = vadd.f32 %v2147_v56, %v2146_v59  ;;  %v2094_v3 = vmul.f32 %v2068_v50, %v2558_v0  ;;  %v2099_v55 = vmul.f32 %v2071_v60, %v2569_v4 }
 0x1f8   :  { %v2126_v29 = vsel %vm40_vm0, %v2095_v21, 0.0  ;;  %v2151_v26 = vsel %vm40_vm0, %v2090_v10, 0.0  ;;  %v2073_v19 = vperm.slane %v2583_v41, 7  ;;  %v2096_v61 = vmul.f32 %v2069_v62, %v2562_v2 }
 0x1f9   :  { %v2125_v45 = vadd.f32 %v2124_v5, %v2123_v11  ;;  %v2150_v52 = vadd.f32 %v2149_v49, %v2148_v1  ;;  %v2101_v18 = vmul.f32 %v2072_v33, %v2574_v48  ;;  %v2128_v28 = vsel %vm40_vm0, %v2097_v14, 0.0 }
 0x1fa   :  { %v2153_v53 = vsel %vm40_vm0, %v2092_v58, 0.0  ;;  %v2074_v0 = vperm.slane %v2587_v39, 7  ;;  %v2098_v38 = vmul.f32 %v2070_v31, %v2567_v47  ;;  %v2103_v25 = vmul.f32 %v2073_v19, %v2581_v15 }
 0x1fb   :  { %v2127_v23 = vadd.f32 %v2126_v29, %v2125_v45  ;;  %v2152_v4 = vadd.f32 %v2151_v26, %v2150_v52  ;;  %v2130_v13 = vsel %vm40_vm0, %v2099_v55, 0.0  ;;  %v2155_v36 = vsel %vm40_vm0, %v2094_v3, 0.0 }
 0x1fc   :  { %v2100_v48 = vmul.f32 %v2071_v60, %v2571_v57  ;;  %v2105_v24 = vmul.f32 %v2074_v0, %v4178_v35  ;;  %v2132_v30 = vsel %vm40_vm0, %v2101_v18, 0.0  ;;  %v2157_v50 = vsel %vm40_vm0, %v2096_v61, 0.0 }
 0x1fd   :  { %v2129_v6 = vadd.f32 %v2128_v28, %v2127_v23  ;;  %v2154_v2 = vadd.f32 %v2153_v53, %v2152_v4  ;;  %v2102_v47 = vmul.f32 %v2072_v33, %v2579_v40  ;;  %v2134_v15 = vsel %vm40_vm0, %v2103_v25, 0.0 }
 0x1fe   :  { %v2159_v37 = vsel %vm40_vm0, %v2098_v38, 0.0  ;;  %v2104_v7 = vmul.f32 %v2073_v19, %v2583_v41  ;;  %v2136_v57 = vsel %vm40_vm0, %v2105_v24, 0.0  ;;  %v2161_v12 = vsel %vm40_vm0, %v2100_v48, 0.0 }
 0x1ff   :  { %v2131_v9 = vadd.f32 %v2130_v13, %v2129_v6  ;;  %v2156_v17 = vadd.f32 %v2155_v36, %v2154_v2  ;;  %v2106_v46 = vmul.f32 %v2074_v0, %v2587_v39  ;;  %v2163_v54 = vsel %vm40_vm0, %v2102_v47, 0.0 }
 0x200   :  { %v2165_v42 = vsel %vm40_vm0, %v2104_v7, 0.0  ;;  %vm2170_vm2 = vcmp.eq.s32.totalorder %v3334_v8, 15 }
 0x201   :  { %v2133_v51 = vadd.f32 %v2132_v30, %v2131_v9  ;;  %v2158_v22 = vadd.f32 %v2157_v50, %v2156_v17  ;;  %v2167_v41 = vsel %vm40_vm0, %v2106_v46, 0.0  ;;  %v2172_v43 = vsel %vm2170_vm2, 0.001, %v4177_v27 }
 0x203   :  { %v2135_v62 = vadd.f32 %v2134_v15, %v2133_v51  ;;  %v2160_v20 = vadd.f32 %v2159_v37, %v2158_v22 }
 0x205   :  { %v2137_v16 = vadd.f32 %v2136_v57, %v2135_v62  ;;  %v2162_v40 = vadd.f32 %v2161_v12, %v2160_v20 }
 0x207   :  { %v2164_v44 = vadd.f32 %v2163_v54, %v2162_v40  ;;  %2210 = vst.msk [vmem:[%s4031_s1 + $0xf0] sm:$0xff] %vm40_vm0, %v2137_v16 }
 0x209   :  { %v2166_v31 = vadd.f32 %v2165_v42, %v2164_v44 }
 0x20b   :  { %v2168_v39 = vadd.f32 %v2167_v41, %v2166_v31 }
 0x20d   :  { %v2174_v32 = vadd.f32 %v2172_v43, %v2168_v39 }
 0x20f   :  { %2211 = vst.msk [vmem:[%s4031_s1 + $0xf8] sm:$0xff] %vm40_vm0, %v2174_v32 }

</bundles_post_ra>
